<compile_context>
chip_gen: v7x
topology: tpu7x:2x2x1
jax: 0.10.0
libtpu: 0.0.40
codegen_flags: <defaults>
</compile_context>

<pallas_src>
import math
import functools

import numpy as np
import jax
import jax.numpy as jnp
from jax import lax
from jax.experimental import pallas as pl
from jax.experimental.pallas import tpu as pltpu


_NEG_INF = -1e30  # finite "minus infinity" for key masking


def qkv_attention_kernel(qkv_ref, out_ref, *, scale, tq, t_valid, mm_dtype):
    """One grid step: attention for a block of (batch*head) groups.

    qkv_ref: [G, 3, C, Tp]   (q|k|v stacked on axis 1, Tp lane-aligned)
    out_ref: [G, C, Tp]
    """
    t_pad = qkv_ref.shape[-1]
    nq = t_pad // tq

    def _process(q_start):
        # Load + scale operands for this query chunk.  The ch**-0.25 scaling
        # lands on the small [G, C, *] operands, not on the [G, tq, Tp]
        # logits, so the VPU pass is T/ch times cheaper.
        q = qkv_ref[:, 0, :, pl.ds(q_start, tq)] * scale      # [G, C, tq]
        k = qkv_ref[:, 1] * scale                             # [G, C, Tp]
        v = qkv_ref[:, 2]                                     # [G, C, Tp]
        if mm_dtype is not None:
            q = q.astype(mm_dtype)
            k = k.astype(mm_dtype)
            v = v.astype(mm_dtype)

        # scores: w[g, t, s] = sum_c q[g, c, t] * k[g, c, s]  ('gct,gcs->gts')
        # Default MXU precision; f32 inputs differ from a HIGHEST-precision
        # reference at ~1e-4 relative for these sizes (documented trade-off).
        w = lax.dot_general(
            q, k,
            dimension_numbers=(((1,), (1,)), ((0,), (0,))),
            preferred_element_type=jnp.float32)                # [G, tq, Tp] f32

        if t_valid < t_pad:  # mask padded keys (sequence was lane-padded)
            key_idx = lax.broadcasted_iota(jnp.int32, w.shape, 2)
            w = jnp.where(key_idx < t_valid, w, _NEG_INF)

        # f32 softmax (matches th.softmax(weight.float(), -1)); normalization
        # is deferred to the [G, C, tq] output, so there is no second
        # elementwise pass over the [G, tq, Tp] logits.
        m = jnp.max(w, axis=-1, keepdims=True)
        p = jnp.exp(w - m)
        l = jnp.sum(p, axis=-1)                                # [G, tq]
        p = p.astype(v.dtype)                                  # '.type(weight.dtype)'

        # a[g, c, t] = sum_s v[g, c, s] * p[g, t, s]           ('gcs,gts->gct')
        a = lax.dot_general(
            v, p,
            dimension_numbers=(((2,), (2,)), ((0,), (0,))),
            preferred_element_type=jnp.float32)                # [G, C, tq] f32

        # Deferred normalization on the ch*tq output (tiny reciprocal).
        inv_l = pl.reciprocal(l, approx=False)                 # [G, tq]
        a = a * inv_l[:, None, :]
        out_ref[:, :, pl.ds(q_start, tq)] = a.astype(out_ref.dtype)

    if nq == 1:
        _process(0)
    else:
        @pl.loop(0, nq)
        def _(i):
            _process(pl.multiple_of(i * tq, 128))


def _tpu_memory_info():
    """(physical VMEM bytes, chip has >1 TensorCore) with safe fallbacks."""
    vmem_bytes = 64 * 1024 * 1024            # v7x worst case as safe default
    try:
        vmem_bytes = int(pltpu.get_tpu_info().vmem_capacity_bytes)
    except Exception:
        pass
    multi_tc = False
    try:
        kind = jax.devices()[0].device_kind.lower()
        multi_tc = any(tag in kind for tag in ("v7", "7x", "v4", "v5p"))
    except Exception:
        pass
    return vmem_bytes, multi_tc


def _largest_divisor_leq(n, bound):
    bound = int(max(1, min(n, bound)))
    for d in range(bound, 0, -1):
        if n % d == 0:
            return d
    return 1


def _pick_query_tile(t_pad):
    """Largest multiple-of-128 divisor of t_pad that is <= 512."""
    for mult in (4, 3, 2, 1):
        cand = 128 * mult
        if cand <= t_pad and t_pad % cand == 0:
            return cand
    return t_pad


def _pick_group_block(G, ch, t_pad, tq, itemsize, vmem_bytes, multi_tc):
    """Number of (batch*head) groups per grid step."""
    # Per-group, per-step VMEM footprint:
    #   double-buffered input tile  : 2 * 3*ch*Tp*itemsize
    #   double-buffered output tile : 2 * ch*Tp*itemsize
    #   live f32 intermediates      : ~3 * tq*Tp*4   (logits, exp, cast copy)
    #   operand copies (scaled/cast): ~4 * ch*Tp*4
    per_g = (2 * 4 * ch * t_pad * itemsize
             + 3 * tq * t_pad * 4
             + 4 * ch * t_pad * 4)
    if vmem_bytes <= 80 * 1024 * 1024:
        # v7x-class: 64 MiB physical -> cap per-step working set ~26 MiB.
        budget = 26 * 1024 * 1024
    else:
        # v5e/v6e: 128 MiB physical -> large tiles (HBM-bound regime).
        budget = min(int(0.55 * vmem_bytes), 96 * 1024 * 1024)
    bound = max(1, budget // max(per_g, 1))
    gb = _largest_divisor_leq(G, bound)
    # On multi-TensorCore chips keep >=2 grid steps so both cores get work;
    # if G is prime, one big block beats G tiny ones.
    if multi_tc and G > 1 and gb >= G:
        gb_half = _largest_divisor_leq(G, G // 2)
        if gb_half > 1 or G <= 2:
            gb = gb_half
    return gb


def qkv_attention_legacy(qkv, *, n_heads, block_g=None, matmul_in_bf16=False):
    """Pallas TPU forward of QKVAttentionLegacy.

    qkv: [N, n_heads * 3 * ch, T]  ->  [N, n_heads * ch, T]  (dtype preserved)
    """
    N, width, T = qkv.shape
    assert width % (3 * n_heads) == 0
    ch = width // (3 * n_heads)
    G = N * n_heads

    # Contiguity-preserving reshape only (free in XLA, no HBM transpose):
    # the legacy layout puts [q(ch) | k(ch) | v(ch)] inside each head's slab.
    qkv_g = qkv.reshape(G, 3, ch, T)

    # Lane-align the sequence axis so stores are full-lane (unmasked) vst.
    t_pad = ((T + 127) // 128) * 128
    if t_pad != T:
        qkv_g = jnp.pad(qkv_g, ((0, 0), (0, 0), (0, 0), (0, t_pad - T)))

    tq = _pick_query_tile(t_pad)

    vmem_bytes, multi_tc = _tpu_memory_info()
    if block_g is None:
        block_g = _pick_group_block(G, ch, t_pad, tq, qkv.dtype.itemsize,
                                    vmem_bytes, multi_tc)
    assert G % block_g == 0, (G, block_g)

    mm_dtype = (jnp.bfloat16
                if (matmul_in_bf16 and qkv.dtype == jnp.float32) else None)
    kernel = functools.partial(
        qkv_attention_kernel,
        scale=1.0 / math.sqrt(math.sqrt(ch)),
        tq=tq, t_valid=T, mm_dtype=mm_dtype)

    itemsize = qkv.dtype.itemsize
    cost = pl.CostEstimate(
        flops=int(4 * G * t_pad * t_pad * ch),
        transcendentals=int(G * t_pad * t_pad),
        bytes_accessed=int(G * 4 * ch * t_pad * itemsize))

    out = pl.pallas_call(
        kernel,
        out_shape=jax.ShapeDtypeStruct((G, ch, t_pad), qkv.dtype),
        grid_spec=pltpu.PrefetchScalarGridSpec(
            num_scalar_prefetch=0,
            grid=(G // block_g,),
            in_specs=[pl.BlockSpec((block_g, 3, ch, t_pad),
                                   lambda g: (g, 0, 0, 0))],
            out_specs=pl.BlockSpec((block_g, ch, t_pad),
                                   lambda g: (g, 0, 0)),
        ),
        compiler_params=pltpu.CompilerParams(
            dimension_semantics=("parallel",),
            vmem_limit_bytes=int(0.9 * vmem_bytes),
        ),
        cost_estimate=cost,
    )(qkv_g)

    if t_pad != T:
        out = out[:, :, :T]
    return out.reshape(N, n_heads * ch, T)


def reference_qkv_attention_legacy(qkv, n_heads):
    """Pure-JAX mirror of the PyTorch forward (f32 math) for correctness."""
    bs, width, length = qkv.shape
    assert width % (3 * n_heads) == 0
    ch = width // (3 * n_heads)
    qkv_r = qkv.reshape(bs * n_heads, 3 * ch, length).astype(jnp.float32)
    q = qkv_r[:, :ch]
    k = qkv_r[:, ch:2 * ch]
    v = qkv_r[:, 2 * ch:]
    scale = 1.0 / math.sqrt(math.sqrt(ch))
    w = jnp.einsum('bct,bcs->bts', q * scale, k * scale,
                   precision=lax.Precision.HIGHEST)
    w = jax.nn.softmax(w, axis=-1)
    a = jnp.einsum('bts,bcs->bct', w, v, precision=lax.Precision.HIGHEST)
    return a.reshape(bs, -1, length)


if __name__ == "__main__":
    # Small deterministic config: N=2 batches, 4 heads, ch=16, T=128 tokens.
    N, n_heads, ch, T = 2, 4, 16, 128
    width = 3 * n_heads * ch                     # 192

    key = jax.random.PRNGKey(0)
    qkv_f32 = jax.random.normal(key, (N, width, T), dtype=jnp.float32)

    # float32 path
    out_f32 = jax.block_until_ready(qkv_attention_legacy(qkv_f32, n_heads=n_heads))
    ref_f32 = reference_qkv_attention_legacy(qkv_f32, n_heads)
    np.testing.assert_allclose(np.asarray(out_f32), np.asarray(ref_f32),
                               rtol=1e-3, atol=1e-3)

    # bfloat16 path (native bf16 MXU; softmax/accumulation stay f32)
    qkv_bf16 = qkv_f32.astype(jnp.bfloat16)
    out_bf16 = jax.block_until_ready(qkv_attention_legacy(qkv_bf16, n_heads=n_heads))
    ref_bf16 = reference_qkv_attention_legacy(qkv_bf16, n_heads)
    np.testing.assert_allclose(np.asarray(out_bf16.astype(jnp.float32)),
                               np.asarray(ref_bf16), rtol=2e-2, atol=2e-2)

    # non-lane-aligned T exercises the pad + key-mask path
    T2 = 100
    qkv_ragged = jax.random.normal(jax.random.PRNGKey(1), (N, width, T2),
                                   dtype=jnp.float32)
    out_r = jax.block_until_ready(qkv_attention_legacy(qkv_ragged, n_heads=n_heads))
    ref_r = reference_qkv_attention_legacy(qkv_ragged, n_heads)
    np.testing.assert_allclose(np.asarray(out_r), np.asarray(ref_r),
                               rtol=1e-3, atol=1e-3)

    print("KERNEL_OK")
</pallas_src>

<mosaic_0001>
module attributes {stable_mosaic.version = 11 : i64} {
  func.func @qkv_attention_kernel(%arg0: i32, %arg1: memref<8x3x16x128xf32, #tpu.memory_space<vmem>>, %arg2: memref<8x16x128xf32, #tpu.memory_space<vmem>>) attributes {dimension_semantics = [#tpu.dimension_semantics<parallel>], iteration_bounds = array<i64: 1>, scalar_prefetch = 0 : i64, scratch_operands = 0 : i64, tpu.core_type = #tpu.core_type<tc>, window_params = [{transform_indices = @transform_0, window_bounds = array<i64: 8, 3, 16, 128>}, {transform_indices = @transform_1, window_bounds = array<i64: 8, 16, 128>}]} {
    %c0 = arith.constant 0 : index
    %c0_0 = arith.constant 0 : index
    %c0_1 = arith.constant 0 : index
    %c0_2 = arith.constant 0 : index
    %0 = vector.load %arg1[%c0, %c0_0, %c0_1, %c0_2] : memref<8x3x16x128xf32, #tpu.memory_space<vmem>>, vector<8x1x16x128xf32>
    %1 = vector.shape_cast %0 : vector<8x1x16x128xf32> to vector<8x16x128xf32>
    %cst = arith.constant 5.000000e-01 : f32
    %2 = vector.broadcast %cst : f32 to vector<8x16x128xf32>
    %3 = arith.mulf %1, %2 : vector<8x16x128xf32>
    %c0_3 = arith.constant 0 : index
    %c1 = arith.constant 1 : index
    %c0_4 = arith.constant 0 : index
    %c0_5 = arith.constant 0 : index
    %4 = vector.load %arg1[%c0_3, %c1, %c0_4, %c0_5] : memref<8x3x16x128xf32, #tpu.memory_space<vmem>>, vector<8x1x16x128xf32>
    %5 = vector.shape_cast %4 : vector<8x1x16x128xf32> to vector<8x16x128xf32>
    %cst_6 = arith.constant 5.000000e-01 : f32
    %6 = vector.broadcast %cst_6 : f32 to vector<8x16x128xf32>
    %7 = arith.mulf %5, %6 : vector<8x16x128xf32>
    %c0_7 = arith.constant 0 : index
    %c2 = arith.constant 2 : index
    %c0_8 = arith.constant 0 : index
    %c0_9 = arith.constant 0 : index
    %8 = vector.load %arg1[%c0_7, %c2, %c0_8, %c0_9] : memref<8x3x16x128xf32, #tpu.memory_space<vmem>>, vector<8x1x16x128xf32>
    %9 = vector.shape_cast %8 : vector<8x1x16x128xf32> to vector<8x16x128xf32>
    %cst_10 = arith.constant dense<0.000000e+00> : vector<8x128x128xf32>
    %10 = tpu.matmul %3, %7, %cst_10 {dimension_numbers = #tpu.dot_dimension_numbers<[1], [1], [2], [2], [0, 0, 0, 2, 1, 2], [0], [0]>} : vector<8x16x128xf32>, vector<8x16x128xf32>, vector<8x128x128xf32> -> vector<8x128x128xf32>
    %cst_11 = arith.constant dense<0xFF800000> : vector<8x128xf32>
    %11 = vector.multi_reduction <maximumf>, %10, %cst_11 [2] : vector<8x128x128xf32> to vector<8x128xf32>
    %12 = vector.shape_cast %11 : vector<8x128xf32> to vector<8x128x1xf32>
    %13 = vector.broadcast %12 : vector<8x128x1xf32> to vector<8x128x128xf32>
    %14 = arith.subf %10, %13 : vector<8x128x128xf32>
    %15 = math.exp %14 : vector<8x128x128xf32>
    %cst_12 = arith.constant dense<0.000000e+00> : vector<8x128xf32>
    %16 = vector.multi_reduction <add>, %15, %cst_12 [2] : vector<8x128x128xf32> to vector<8x128xf32>
    %cst_13 = arith.constant dense<0.000000e+00> : vector<8x16x128xf32>
    %17 = tpu.matmul %9, %15, %cst_13 {dimension_numbers = #tpu.dot_dimension_numbers<[2], [2], [1], [1], [0, 0, 0, 1, 1, 1], [0], [0]>} : vector<8x16x128xf32>, vector<8x128x128xf32>, vector<8x16x128xf32> -> vector<8x16x128xf32>
    %18 = tpu.reciprocal %16 : vector<8x128xf32> -> vector<8x128xf32>
    %19 = vector.shape_cast %18 : vector<8x128xf32> to vector<8x1x128xf32>
    %20 = vector.broadcast %19 : vector<8x1x128xf32> to vector<8x16x128xf32>
    %21 = arith.mulf %17, %20 : vector<8x16x128xf32>
    %c0_14 = arith.constant 0 : index
    %c0_15 = arith.constant 0 : index
    %c0_16 = arith.constant 0 : index
    %22 = vector.load %arg2[%c0_14, %c0_15, %c0_16] : memref<8x16x128xf32, #tpu.memory_space<vmem>>, vector<8x16x128xf32>
    tpu.vector_store %arg2[%c0_14, %c0_15, %c0_16], %21 {strides = array<i32>} : memref<8x16x128xf32, #tpu.memory_space<vmem>>, vector<8x16x128xf32>,
    return
  }
  func.func @transform_0(%arg0: i32) -> (i32, i32, i32, i32) {
    %c0_i32 = arith.constant 0 : i32
    %c0_i32_0 = arith.constant 0 : i32
    %c0_i32_1 = arith.constant 0 : i32
    %c0_i32_2 = arith.constant 0 : i32
    return %arg0, %c0_i32, %c0_i32_0, %c0_i32_1 : i32, i32, i32, i32
  }
  func.func @transform_1(%arg0: i32) -> (i32, i32, i32) {
    %c0_i32 = arith.constant 0 : i32
    %c0_i32_0 = arith.constant 0 : i32
    %c0_i32_1 = arith.constant 0 : i32
    return %arg0, %c0_i32, %c0_i32_0 : i32, i32, i32
  }
}

</mosaic_0001>

<bundles_post_ra>
// kernel: tpu_custom_call.1
= control target key start
LH: loop header
LB: loop body
LE: loop exit
PB: predicated region body
PF: predicated region fallthrough
CT: control target
= control target key end

     0   :  { %6 = vsyncpa [#allocation3], 0  ;;  %s7857_s0 = inlined_call_operand.hbm [shape: f32[8,3,16,128], index: 0, kind: input, shape index: {}]   ;;  %s7858_s1 = inlined_call_operand.hbm [shape: f32[8,16,128], index: 1, kind: output, shape index: {}]  }
   0x1   :  { %7 = vsyncpa [#allocation4], 0  ;;  %s6206_s6 = smov [#allocation2]   ;;  %s6158_s10 = scalar_lea.hbm %s7857_s0, 6144 }
   0x2   :  { %s13_s7 = sshll.u32 %s6206_s6, 4  ;;  %p6159_p0 = scmp.ne.s32.totalorder %s7857_s0, %s6158_s10  ;;  %s14_s7 = int_to_ptr.vmem [resolvable:$true] %s13_s7 }
   0x3   :  { %p6162_p1 = scmp.lt.u32.totalorder %s6158_s10, %s7857_s0 }
   0x5   :  { %p6164_p2 = pnand %p6162_p1, %p6159_p0 }
   0x7   :  { %6167 = shalt.err (!%p6164_p2)
}
   0x8   :  { %s6168_s15 = scalar_lea.vmem %s14_s7, 6144  ;;  %p6173_p4 = scmp.lt.s32.totalorder %s14_s7, %s14_s7 }
   0x9   :  { %p6169_p3 = scmp.ne.s32.totalorder %s14_s7, %s6168_s15  ;;  %p6174_p5 = scmp.lt.s32.totalorder %s6168_s15, %s6168_s15 }
   0xb   :  { %p6175_p6 = por %p6174_p5, %p6173_p4 }
   0xd   :  { %p6176_p7 = pnand %p6175_p6, %p6169_p3 }
   0xf   :  { %6179 = shalt.err (!%p6176_p7)
}
  0x10   :  { %s6207_s16 = smov 128   ;;  %s6208_s17 = smov 8  }
  0x11   :  { %19 = dma.hbm_to_vmem [thread:$0]  %s7857_s0, 6144, %s14_s7, [#allocation3], %s6207_s16, %s6207_s16, %s6208_s17  }
  0x12   :  { %6202 = dma.done.wait [#allocation3], 6144  }
  0x13   :  { %6203 = vsyncadd [#allocation3], 4294961152  ;;  %v23_v0 = vld [vmem:[#allocation2] sm:$0xff]  ;;  %v25_v1 = vld [vmem:[#allocation2 + $0x30] sm:$0xff]  ;;  %vm137_vm0 = vcmask 130048   ;;  %vm3669_vm1 = vcmask 130112  }
  0x14   :  { %v24_v2 = vld [vmem:[#allocation2 + $0x8] sm:$0xff]  ;;  %v39_v3 = vmul.f32 0.5, %v23_v0  ;;  %v41_v4 = vmul.f32 0.5, %v25_v1  ;;  %v26_v5 = vld [vmem:[#allocation2 + $0x38] sm:$0xff]  ;;  %v56_v8 = vld [vmem:[#allocation2 + $0x10] sm:$0xff]  ;;  %vm3676_vm2 = vcmask 195712  }
  0x15   :  { %v40_v6 = vmul.f32 0.5, %v24_v2  ;;  %v42_v7 = vmul.f32 0.5, %v26_v5  ;;  %v57_v9 = vld [vmem:[#allocation2 + $0x18] sm:$0xff]  ;;  %v72_v10 = vmul.f32 0.5, %v56_v8  ;;  %v58_v12 = vld [vmem:[#allocation2 + $0x40] sm:$0xff]  ;;  %v59_v13 = vld [vmem:[#allocation2 + $0x48] sm:$0xff] }
  0x16   :  { %105 = vxpose.xlu0.b32.start [1/2] (short) %v39_v3, 128  ;;  %331 = vxpose.xlu1.b32.start [1/2] (short) %v41_v4, 128  ;;  %v73_v11 = vmul.f32 0.5, %v57_v9  ;;  %v74_v14 = vmul.f32 0.5, %v58_v12  ;;  %v75_v15 = vmul.f32 0.5, %v59_v13  ;;  %v60_v18 = vld [vmem:[#allocation2 + $0x70] sm:$0xff]  ;;  %v61_v19 = vld [vmem:[#allocation2 + $0x78] sm:$0xff]  ;;  %v62_v23 = vld [vmem:[#allocation2 + $0xa0] sm:$0xff] }
  0x17   :  { %v76_v20 = vmul.f32 0.5, %v60_v18  ;;  %v77_v21 = vmul.f32 0.5, %v61_v19  ;;  %v63_v24 = vld [vmem:[#allocation2 + $0xa8] sm:$0xff]  ;;  %v78_v25 = vmul.f32 0.5, %v62_v23  ;;  %v27_v28 = vld [vmem:[#allocation2 + $0x60] sm:$0xff]  ;;  %v29_v29 = vld [vmem:[#allocation2 + $0x90] sm:$0xff] }
  0x18   :  { %v5353_v16 = vpack.c.bf16 %v73_v11, %v72_v10  ;;  %v5357_v17 = vpack.c.bf16 %v75_v15, %v74_v14  ;;  %v79_v26 = vmul.f32 0.5, %v63_v24  ;;  %v43_v30 = vmul.f32 0.5, %v27_v28  ;;  %v28_v32 = vld [vmem:[#allocation2 + $0x68] sm:$0xff]  ;;  %v30_v33 = vld [vmem:[#allocation2 + $0x98] sm:$0xff]  ;;  %v31_v36 = vld [vmem:[#allocation2 + $0xc0] sm:$0xff]  ;;  %s6209_s0 = smov [#allocation5]  }
  0x19   :  { %v5361_v22 = vpack.c.bf16 %v77_v21, %v76_v20  ;;  %v45_v31 = vmul.f32 0.5, %v29_v29  ;;  %v44_v34 = vmul.f32 0.5, %v28_v32  ;;  %v46_v35 = vmul.f32 0.5, %v30_v33  ;;  %v33_v37 = vld [vmem:[#allocation2 + $0xf0] sm:$0xff]  ;;  %v32_v40 = vld [vmem:[#allocation2 + $0xc8] sm:$0xff]  ;;  %v34_v41 = vld [vmem:[#allocation2 + $0xf8] sm:$0xff] }
  0x1a   :  { %106 = vxpose.xlu0.b32.end [2/2] (short) %v40_v6, 128  ;;  %332 = vxpose.xlu1.b32.end [2/2] (short) %v42_v7, 128  ;;  %v5365_v27 = vpack.c.bf16 %v79_v26, %v78_v25  ;;  %v47_v38 = vmul.f32 0.5, %v31_v36  ;;  %v49_v39 = vmul.f32 0.5, %v33_v37  ;;  %v48_v42 = vmul.f32 0.5, %v32_v40  ;;  %v64_v44 = vld [vmem:[#allocation2 + $0xd0] sm:$0xff]  ;;  %v65_v45 = vld [vmem:[#allocation2 + $0xd8] sm:$0xff]  ;;  %v66_v46 = vld [vmem:[#allocation2 + $0x100] sm:$0xff] }
  0x1b   :  { %5354 = vmatprep.subr.bf16.mxu0 %v5353_v16  ;;  %5358 = vmatprep.subr.bf16.mxu1 %v5357_v17  ;;  %v50_v43 = vmul.f32 0.5, %v34_v41  ;;  %v67_v47 = vld [vmem:[#allocation2 + $0x108] sm:$0xff]  ;;  %v80_v48 = vmul.f32 0.5, %v64_v44  ;;  %v81_v49 = vmul.f32 0.5, %v65_v45  ;;  %v82_v50 = vmul.f32 0.5, %v66_v46  ;;  %v38_v23 = vld [vmem:[#allocation2 + $0x158] sm:$0xff] }
  0x1c   :  { %5356 = vmatpush3.bf16.msra.mxu0 %v5353_v16  ;;  %5360 = vmatpush3.bf16.msra.mxu1 %v5357_v17  ;;  %v83_v51 = vmul.f32 0.5, %v67_v47  ;;  %v35_v16 = vld [vmem:[#allocation2 + $0x120] sm:$0xff]  ;;  %v37_v17 = vld [vmem:[#allocation2 + $0x150] sm:$0xff]  ;;  %v71_v33 = vld [vmem:[#allocation2 + $0x168] sm:$0xff]  ;;  %vm3683_vm3 = vcmask 261312   ;;  %vm3690_vm4 = vcmask 326912  }
  0x1d   :  { %5362 = vmatprep.subr.bf16.mxu0 %v5361_v22  ;;  %5366 = vmatprep.subr.bf16.mxu1 %v5365_v27  ;;  %v6237_v54 = vpack.c.bf16 %v81_v49, %v80_v48  ;;  %v51_v20 = vmul.f32 0.5, %v35_v16  ;;  %v53_v21 = vmul.f32 0.5, %v37_v17  ;;  %v68_v28 = vld [vmem:[#allocation2 + $0x130] sm:$0xff]  ;;  %v70_v32 = vld [vmem:[#allocation2 + $0x160] sm:$0xff]  ;;  %v87_v37 = vmul.f32 0.5, %v71_v33  ;;  %s4421_s20 = sshll.u32 %s6209_s0, 4  ;;  %s4422_s20 = int_to_ptr.vmem [resolvable:$true] %s4421_s20 }
  0x1e   :  { %v6239_v55 = vpack.c.bf16 %v83_v51, %v82_v50  ;;  %v86_v36 = vmul.f32 0.5, %v70_v32  ;;  %vm3697_vm5 = vcmask 392512   ;;  %vm3704_vm6 = vcmask 458112   ;;  %s6180_s21 = scalar_lea.vmem %s4422_s20, 2048  ;;  %p6185_p9 = scmp.lt.s32.totalorder %s4422_s20, %s4422_s20 }
  0x1f   :  { %vm3711_vm7 = vcmask 523712   ;;  %vm3718_vm8 = vcmask 589312   ;;  %vm3725_vm9 = vcmask 654912   ;;  %vm3732_vm10 = vcmask 720512   ;;  %p6181_p8 = scmp.ne.s32.totalorder %s4422_s20, %s6180_s21  ;;  %p6186_p10 = scmp.lt.s32.totalorder %s6180_s21, %s6180_s21 }
  0x20   :  { %v6277_v41 = vpack.c.bf16 %v87_v37, %v86_v36  ;;  %vm3739_vm11 = vcmask 786112   ;;  %vm3746_vm12 = vcmask 851712   ;;  %vm3753_vm13 = vcmask 917312  }
  0x21   :  { %vm3760_vm14 = vcmask 982912   ;;  %vm3767_vm15 = vcmask 1048512   ;;  %p6187_p11 = por %p6186_p10, %p6185_p9 }
  0x23   :  { %p6188_p12 = pnand %p6187_p11, %p6181_p8 }
  0x53   :  { %556 = vxpose.xlu0.b32.start [1/2] (short) %v43_v30, 128  ;;  %781 = vxpose.xlu1.b32.start [1/2] (short) %v45_v31, 128  ;;  %v69_v31 = vld [vmem:[#allocation2 + $0x138] sm:$0xff] }
  0x57   :  { %557 = vxpose.xlu0.b32.end [2/2] (short) %v44_v34, 128  ;;  %782 = vxpose.xlu1.b32.end [2/2] (short) %v46_v35, 128  ;;  %v84_v34 = vmul.f32 0.5, %v68_v28  ;;  %v85_v35 = vmul.f32 0.5, %v69_v31 }
  0x59   :  { %v6275_v40 = vpack.c.bf16 %v85_v35, %v84_v34 }
  0x90   :  { %1006 = vxpose.xlu0.b32.start [1/2] (short) %v47_v38, 128  ;;  %1231 = vxpose.xlu1.b32.start [1/2] (short) %v49_v39, 128 }
  0x94   :  { %1007 = vxpose.xlu0.b32.end [2/2] (short) %v48_v42, 128  ;;  %1232 = vxpose.xlu1.b32.end [2/2] (short) %v50_v43, 128 }
  0x96   :  { %v121_v52 = vpop.trf.xlu0  ;;  %v347_v53 = vpop.trf.xlu1 }
  0x97   :  { %4853 = vmatprep.mubr.msk.f32.mxu0 %vm137_vm0, %v121_v52  ;;  %4881 = vmatprep.mubr.msk.f32.mxu1 %vm137_vm0, %v347_v53 }
  0x9a   :  { %v122_v56 = vpop.trf.xlu0  ;;  %v348_v57 = vpop.trf.xlu1 }
  0x9b   :  { %4854 = vmatmul.mubr.msk.f32.vlgmr.msra.gmra.mrb[0].mxu0 %vm137_vm0, %v122_v56  ;;  %4882 = vmatmul.mubr.msk.f32.vlgmr.msra.gmra.mrb[0].mxu1 %vm137_vm0, %v348_v57 }
  0x9c   :  { %5364 = vmatpush3.bf16.msra.mxu0 %v5361_v22  ;;  %5368 = vmatpush3.bf16.msra.mxu1 %v5365_v27  ;;  %v36_v22 = vld [vmem:[#allocation2 + $0x128] sm:$0xff]  ;;  %v54_v27 = vmul.f32 0.5, %v38_v23 }
  0x9d   :  { %5370 = vmatprep.subr.bf16.mxu0 %v6237_v54  ;;  %5374 = vmatprep.subr.bf16.mxu1 %v6239_v55  ;;  %v52_v26 = vmul.f32 0.5, %v36_v22 }
  0x9e   :  { %v123_v58 = vpop.trf.xlu0  ;;  %v349_v59 = vpop.trf.xlu1 }
  0x9f   :  { %4856 = vmatprep.mubr.msk.f32.mxu0 %vm137_vm0, %v123_v58  ;;  %4884 = vmatprep.mubr.msk.f32.mxu1 %vm137_vm0, %v349_v59 }
  0xa2   :  { %v124_v60 = vpop.trf.xlu0  ;;  %v350_v61 = vpop.trf.xlu1 }
  0xa3   :  { %4857 = vmatmul.mubr.msk.f32.gmra.mrb[2].mxu0 %vm137_vm0, %v124_v60  ;;  %4885 = vmatmul.mubr.msk.f32.gmra.mrb[2].mxu1 %vm137_vm0, %v350_v61 }
  0xa6   :  { %v125_v62 = vpop.trf.xlu0  ;;  %v351_v63 = vpop.trf.xlu1 }
  0xa7   :  { %4859 = vmatprep.mubr.msk.f32.mxu0 %vm137_vm0, %v125_v62  ;;  %4887 = vmatprep.mubr.msk.f32.mxu1 %vm137_vm0, %v351_v63 }
  0xaa   :  { %v126_v0 = vpop.trf.xlu0  ;;  %v352_v1 = vpop.trf.xlu1 }
  0xab   :  { %4860 = vmatmul.mubr.msk.f32.gmra.mrb[4].mxu0 %vm137_vm0, %v126_v0  ;;  %4888 = vmatmul.mubr.msk.f32.gmra.mrb[4].mxu1 %vm137_vm0, %v352_v1 }
  0xae   :  { %v127_v2 = vpop.trf.xlu0  ;;  %v353_v3 = vpop.trf.xlu1 }
  0xaf   :  { %4862 = vmatprep.mubr.msk.f32.mxu0 %vm137_vm0, %v127_v2  ;;  %4890 = vmatprep.mubr.msk.f32.mxu1 %vm137_vm0, %v353_v3 }
  0xb2   :  { %v128_v4 = vpop.trf.xlu0  ;;  %v354_v5 = vpop.trf.xlu1 }
  0xb3   :  { %4863 = vmatmul.mubr.msk.f32.gmra.mrb[6].mxu0 %vm137_vm0, %v128_v4  ;;  %4891 = vmatmul.mubr.msk.f32.gmra.mrb[6].mxu1 %vm137_vm0, %v354_v5 }
  0xb6   :  { %v129_v6 = vpop.trf.xlu0  ;;  %v355_v7 = vpop.trf.xlu1 }
  0xb7   :  { %4865 = vmatprep.mubr.msk.f32.mxu0 %vm137_vm0, %v129_v6  ;;  %4893 = vmatprep.mubr.msk.f32.mxu1 %vm137_vm0, %v355_v7 }
  0xba   :  { %v130_v8 = vpop.trf.xlu0  ;;  %v356_v9 = vpop.trf.xlu1 }
  0xbb   :  { %4866 = vmatmul.mubr.msk.f32.gmra.mrb[8].mxu0 %vm137_vm0, %v130_v8  ;;  %4894 = vmatmul.mubr.msk.f32.gmra.mrb[8].mxu1 %vm137_vm0, %v356_v9 }
  0xbe   :  { %v131_v10 = vpop.trf.xlu0  ;;  %v357_v11 = vpop.trf.xlu1 }
  0xbf   :  { %4868 = vmatprep.mubr.msk.f32.mxu0 %vm137_vm0, %v131_v10  ;;  %4896 = vmatprep.mubr.msk.f32.mxu1 %vm137_vm0, %v357_v11 }
  0xc2   :  { %v132_v12 = vpop.trf.xlu0  ;;  %v358_v13 = vpop.trf.xlu1 }
  0xc3   :  { %4869 = vmatmul.mubr.msk.f32.gmra.mrb[10].mxu0 %vm137_vm0, %v132_v12  ;;  %4897 = vmatmul.mubr.msk.f32.gmra.mrb[10].mxu1 %vm137_vm0, %v358_v13 }
  0xc6   :  { %v133_v14 = vpop.trf.xlu0  ;;  %v359_v15 = vpop.trf.xlu1 }
  0xc7   :  { %4871 = vmatprep.mubr.msk.f32.mxu0 %vm137_vm0, %v133_v14  ;;  %4899 = vmatprep.mubr.msk.f32.mxu1 %vm137_vm0, %v359_v15 }
  0xca   :  { %v134_v18 = vpop.trf.xlu0  ;;  %v360_v19 = vpop.trf.xlu1 }
  0xcb   :  { %4872 = vmatmul.mubr.msk.f32.gmra.mrb[12].mxu0 %vm137_vm0, %v134_v18  ;;  %4900 = vmatmul.mubr.msk.f32.gmra.mrb[12].mxu1 %vm137_vm0, %v360_v19 }
  0xce   :  { %v135_v24 = vpop.trf.xlu0  ;;  %v361_v25 = vpop.trf.xlu1  ;;  %1456 = vxpose.xlu0.b32.start [1/2] (short) %v51_v20, 128  ;;  %1681 = vxpose.xlu1.b32.start [1/2] (short) %v53_v21, 128 }
  0xcf   :  { %4874 = vmatprep.mubr.msk.f32.mxu0 %vm137_vm0, %v135_v24  ;;  %4902 = vmatprep.mubr.msk.f32.mxu1 %vm137_vm0, %v361_v25 }
  0xd2   :  { %v136_v29 = vpop.trf.xlu0  ;;  %v362_v30 = vpop.trf.xlu1  ;;  %1457 = vxpose.xlu0.b32.end [2/2] (short) %v52_v26, 128  ;;  %1682 = vxpose.xlu1.b32.end [2/2] (short) %v54_v27, 128 }
  0xd3   :  { %4875 = vmatmul.mubr.msk.f32.gmra.mrb[14].mxu0 %vm137_vm0, %v136_v29  ;;  %4903 = vmatmul.mubr.msk.f32.gmra.mrb[14].mxu1 %vm137_vm0, %v362_v30 }
  0xd6   :  { %v572_v38 = vpop.trf.xlu0  ;;  %v797_v39 = vpop.trf.xlu1 }
  0xd7   :  { %4909 = vmatprep.mubr.msk.f32.mxu0 %vm137_vm0, %v572_v38  ;;  %4937 = vmatprep.mubr.msk.f32.mxu1 %vm137_vm0, %v797_v39 }
  0xda   :  { %v573_v42 = vpop.trf.xlu0  ;;  %v798_v43 = vpop.trf.xlu1 }
  0xdb   :  { %4910 = vmatmul.mubr.msk.f32.vlgmr.msra.gmra.mrb[16].mxu0 %vm137_vm0, %v573_v42  ;;  %4938 = vmatmul.mubr.msk.f32.vlgmr.msra.gmra.mrb[16].mxu1 %vm137_vm0, %v798_v43 }
  0xdc   :  { %5372 = vmatpush3.bf16.msra.mxu0 %v6237_v54  ;;  %5376 = vmatpush3.bf16.msra.mxu1 %v6239_v55 }
  0xdd   :  { %5378 = vmatprep.subr.bf16.mxu0 %v6275_v40  ;;  %5382 = vmatprep.subr.bf16.mxu1 %v6277_v41 }
  0xde   :  { %v574_v44 = vpop.trf.xlu0  ;;  %v799_v45 = vpop.trf.xlu1 }
  0xdf   :  { %4912 = vmatprep.mubr.msk.f32.mxu0 %vm137_vm0, %v574_v44  ;;  %4940 = vmatprep.mubr.msk.f32.mxu1 %vm137_vm0, %v799_v45 }
  0xe2   :  { %v575_v46 = vpop.trf.xlu0  ;;  %v800_v47 = vpop.trf.xlu1 }
  0xe3   :  { %4913 = vmatmul.mubr.msk.f32.gmra.mrb[18].mxu0 %vm137_vm0, %v575_v46  ;;  %4941 = vmatmul.mubr.msk.f32.gmra.mrb[18].mxu1 %vm137_vm0, %v800_v47 }
  0xe6   :  { %v576_v48 = vpop.trf.xlu0  ;;  %v801_v49 = vpop.trf.xlu1 }
  0xe7   :  { %4915 = vmatprep.mubr.msk.f32.mxu0 %vm137_vm0, %v576_v48  ;;  %4943 = vmatprep.mubr.msk.f32.mxu1 %vm137_vm0, %v801_v49 }
  0xea   :  { %v577_v50 = vpop.trf.xlu0  ;;  %v802_v51 = vpop.trf.xlu1 }
  0xeb   :  { %4916 = vmatmul.mubr.msk.f32.gmra.mrb[20].mxu0 %vm137_vm0, %v577_v50  ;;  %4944 = vmatmul.mubr.msk.f32.gmra.mrb[20].mxu1 %vm137_vm0, %v802_v51 }
  0xee   :  { %v578_v52 = vpop.trf.xlu0  ;;  %v803_v53 = vpop.trf.xlu1 }
  0xef   :  { %4918 = vmatprep.mubr.msk.f32.mxu0 %vm137_vm0, %v578_v52  ;;  %4946 = vmatprep.mubr.msk.f32.mxu1 %vm137_vm0, %v803_v53 }
  0xf2   :  { %v579_v54 = vpop.trf.xlu0  ;;  %v804_v55 = vpop.trf.xlu1 }
  0xf3   :  { %4919 = vmatmul.mubr.msk.f32.gmra.mrb[22].mxu0 %vm137_vm0, %v579_v54  ;;  %4947 = vmatmul.mubr.msk.f32.gmra.mrb[22].mxu1 %vm137_vm0, %v804_v55 }
  0xf6   :  { %v580_v56 = vpop.trf.xlu0  ;;  %v805_v57 = vpop.trf.xlu1 }
  0xf7   :  { %4921 = vmatprep.mubr.msk.f32.mxu0 %vm137_vm0, %v580_v56  ;;  %4949 = vmatprep.mubr.msk.f32.mxu1 %vm137_vm0, %v805_v57 }
  0xfa   :  { %v581_v58 = vpop.trf.xlu0  ;;  %v806_v59 = vpop.trf.xlu1 }
  0xfb   :  { %4922 = vmatmul.mubr.msk.f32.gmra.mrb[24].mxu0 %vm137_vm0, %v581_v58  ;;  %4950 = vmatmul.mubr.msk.f32.gmra.mrb[24].mxu1 %vm137_vm0, %v806_v59 }
  0xfe   :  { %v582_v60 = vpop.trf.xlu0  ;;  %v807_v61 = vpop.trf.xlu1 }
  0xff   :  { %4924 = vmatprep.mubr.msk.f32.mxu0 %vm137_vm0, %v582_v60  ;;  %4952 = vmatprep.mubr.msk.f32.mxu1 %vm137_vm0, %v807_v61 }
 0x102   :  { %v583_v62 = vpop.trf.xlu0  ;;  %v808_v63 = vpop.trf.xlu1 }
 0x103   :  { %4925 = vmatmul.mubr.msk.f32.gmra.mrb[26].mxu0 %vm137_vm0, %v583_v62  ;;  %4953 = vmatmul.mubr.msk.f32.gmra.mrb[26].mxu1 %vm137_vm0, %v808_v63 }
 0x106   :  { %v584_v0 = vpop.trf.xlu0  ;;  %v809_v1 = vpop.trf.xlu1 }
 0x107   :  { %4927 = vmatprep.mubr.msk.f32.mxu0 %vm137_vm0, %v584_v0  ;;  %4955 = vmatprep.mubr.msk.f32.mxu1 %vm137_vm0, %v809_v1 }
 0x10a   :  { %v585_v2 = vpop.trf.xlu0  ;;  %v810_v3 = vpop.trf.xlu1 }
 0x10b   :  { %4928 = vmatmul.mubr.msk.f32.gmra.mrb[28].mxu0 %vm137_vm0, %v585_v2  ;;  %4956 = vmatmul.mubr.msk.f32.gmra.mrb[28].mxu1 %vm137_vm0, %v810_v3 }
 0x10e   :  { %v586_v4 = vpop.trf.xlu0  ;;  %v811_v5 = vpop.trf.xlu1 }
 0x10f   :  { %4930 = vmatprep.mubr.msk.f32.mxu0 %vm137_vm0, %v586_v4  ;;  %4958 = vmatprep.mubr.msk.f32.mxu1 %vm137_vm0, %v811_v5 }
 0x112   :  { %v587_v6 = vpop.trf.xlu0  ;;  %v812_v7 = vpop.trf.xlu1 }
 0x113   :  { %4931 = vmatmul.mubr.msk.f32.gmra.mrb[30].mxu0 %vm137_vm0, %v587_v6  ;;  %4959 = vmatmul.mubr.msk.f32.gmra.mrb[30].mxu1 %vm137_vm0, %v812_v7 }
 0x116   :  { %v1022_v8 = vpop.trf.xlu0  ;;  %v1247_v9 = vpop.trf.xlu1 }
 0x117   :  { %4965 = vmatprep.mubr.msk.f32.mxu0 %vm137_vm0, %v1022_v8  ;;  %4993 = vmatprep.mubr.msk.f32.mxu1 %vm137_vm0, %v1247_v9 }
 0x11a   :  { %v1023_v10 = vpop.trf.xlu0  ;;  %v1248_v11 = vpop.trf.xlu1 }
 0x11b   :  { %4966 = vmatmul.mubr.msk.f32.vlgmr.msra.gmra.mrb[32].mxu0 %vm137_vm0, %v1023_v10  ;;  %4994 = vmatmul.mubr.msk.f32.vlgmr.msra.gmra.mrb[32].mxu1 %vm137_vm0, %v1248_v11 }
 0x11c   :  { %5380 = vmatpush3.bf16.msra.mxu0 %v6275_v40  ;;  %5384 = vmatpush3.bf16.msra.mxu1 %v6277_v41 }
 0x11e   :  { %v1024_v12 = vpop.trf.xlu0  ;;  %v1249_v13 = vpop.trf.xlu1 }
 0x11f   :  { %4968 = vmatprep.mubr.msk.f32.mxu0 %vm137_vm0, %v1024_v12  ;;  %4996 = vmatprep.mubr.msk.f32.mxu1 %vm137_vm0, %v1249_v13 }
 0x122   :  { %v1025_v14 = vpop.trf.xlu0  ;;  %v1250_v15 = vpop.trf.xlu1 }
 0x123   :  { %4969 = vmatmul.mubr.msk.f32.gmra.mrb[34].mxu0 %vm137_vm0, %v1025_v14  ;;  %4997 = vmatmul.mubr.msk.f32.gmra.mrb[34].mxu1 %vm137_vm0, %v1250_v15 }
 0x126   :  { %v1026_v16 = vpop.trf.xlu0  ;;  %v1251_v17 = vpop.trf.xlu1 }
 0x127   :  { %4971 = vmatprep.mubr.msk.f32.mxu0 %vm137_vm0, %v1026_v16  ;;  %4999 = vmatprep.mubr.msk.f32.mxu1 %vm137_vm0, %v1251_v17 }
 0x12a   :  { %v1027_v18 = vpop.trf.xlu0  ;;  %v1252_v19 = vpop.trf.xlu1 }
 0x12b   :  { %4972 = vmatmul.mubr.msk.f32.gmra.mrb[36].mxu0 %vm137_vm0, %v1027_v18  ;;  %5000 = vmatmul.mubr.msk.f32.gmra.mrb[36].mxu1 %vm137_vm0, %v1252_v19 }
 0x12e   :  { %v1028_v20 = vpop.trf.xlu0  ;;  %v1253_v21 = vpop.trf.xlu1 }
 0x12f   :  { %4974 = vmatprep.mubr.msk.f32.mxu0 %vm137_vm0, %v1028_v20  ;;  %5002 = vmatprep.mubr.msk.f32.mxu1 %vm137_vm0, %v1253_v21 }
 0x132   :  { %v1029_v22 = vpop.trf.xlu0  ;;  %v1254_v23 = vpop.trf.xlu1 }
 0x133   :  { %4975 = vmatmul.mubr.msk.f32.gmra.mrb[38].mxu0 %vm137_vm0, %v1029_v22  ;;  %5003 = vmatmul.mubr.msk.f32.gmra.mrb[38].mxu1 %vm137_vm0, %v1254_v23 }
 0x136   :  { %v1030_v24 = vpop.trf.xlu0  ;;  %v1255_v25 = vpop.trf.xlu1 }
 0x137   :  { %4977 = vmatprep.mubr.msk.f32.mxu0 %vm137_vm0, %v1030_v24  ;;  %5005 = vmatprep.mubr.msk.f32.mxu1 %vm137_vm0, %v1255_v25 }
 0x13a   :  { %v1031_v26 = vpop.trf.xlu0  ;;  %v1256_v27 = vpop.trf.xlu1 }
 0x13b   :  { %4978 = vmatmul.mubr.msk.f32.gmra.mrb[40].mxu0 %vm137_vm0, %v1031_v26  ;;  %5006 = vmatmul.mubr.msk.f32.gmra.mrb[40].mxu1 %vm137_vm0, %v1256_v27 }
 0x13e   :  { %v1032_v28 = vpop.trf.xlu0  ;;  %v1257_v29 = vpop.trf.xlu1 }
 0x13f   :  { %4980 = vmatprep.mubr.msk.f32.mxu0 %vm137_vm0, %v1032_v28  ;;  %5008 = vmatprep.mubr.msk.f32.mxu1 %vm137_vm0, %v1257_v29 }
 0x142   :  { %v1033_v30 = vpop.trf.xlu0  ;;  %v1258_v31 = vpop.trf.xlu1 }
 0x143   :  { %4981 = vmatmul.mubr.msk.f32.gmra.mrb[42].mxu0 %vm137_vm0, %v1033_v30  ;;  %5009 = vmatmul.mubr.msk.f32.gmra.mrb[42].mxu1 %vm137_vm0, %v1258_v31 }
 0x146   :  { %v1034_v32 = vpop.trf.xlu0  ;;  %v1259_v33 = vpop.trf.xlu1 }
 0x147   :  { %4983 = vmatprep.mubr.msk.f32.mxu0 %vm137_vm0, %v1034_v32  ;;  %5011 = vmatprep.mubr.msk.f32.mxu1 %vm137_vm0, %v1259_v33 }
 0x14a   :  { %v1035_v34 = vpop.trf.xlu0  ;;  %v1260_v35 = vpop.trf.xlu1 }
 0x14b   :  { %4984 = vmatmul.mubr.msk.f32.gmra.mrb[44].mxu0 %vm137_vm0, %v1035_v34  ;;  %5012 = vmatmul.mubr.msk.f32.gmra.mrb[44].mxu1 %vm137_vm0, %v1260_v35 }
 0x14e   :  { %v1036_v36 = vpop.trf.xlu0  ;;  %v1261_v37 = vpop.trf.xlu1 }
 0x14f   :  { %4986 = vmatprep.mubr.msk.f32.mxu0 %vm137_vm0, %v1036_v36  ;;  %5014 = vmatprep.mubr.msk.f32.mxu1 %vm137_vm0, %v1261_v37 }
 0x152   :  { %v1037_v38 = vpop.trf.xlu0  ;;  %v1262_v39 = vpop.trf.xlu1 }
 0x153   :  { %4987 = vmatmul.mubr.msk.f32.gmra.mrb[46].mxu0 %vm137_vm0, %v1037_v38  ;;  %5015 = vmatmul.mubr.msk.f32.gmra.mrb[46].mxu1 %vm137_vm0, %v1262_v39 }
 0x156   :  { %v1472_v40 = vpop.trf.xlu0  ;;  %v1697_v41 = vpop.trf.xlu1 }
 0x157   :  { %5021 = vmatprep.mubr.msk.f32.mxu0 %vm137_vm0, %v1472_v40  ;;  %5049 = vmatprep.mubr.msk.f32.mxu1 %vm137_vm0, %v1697_v41 }
 0x15a   :  { %v1473_v42 = vpop.trf.xlu0  ;;  %v1698_v43 = vpop.trf.xlu1 }
 0x15b   :  { %5022 = vmatmul.mubr.msk.f32.vlgmr.msra.gmra.mrb[48].mxu0 %vm137_vm0, %v1473_v42  ;;  %5050 = vmatmul.mubr.msk.f32.vlgmr.msra.gmra.mrb[48].mxu1 %vm137_vm0, %v1698_v43 }
 0x15e   :  { %v1474_v44 = vpop.trf.xlu0  ;;  %v1699_v45 = vpop.trf.xlu1 }
 0x15f   :  { %5024 = vmatprep.mubr.msk.f32.mxu0 %vm137_vm0, %v1474_v44  ;;  %5052 = vmatprep.mubr.msk.f32.mxu1 %vm137_vm0, %v1699_v45 }
 0x162   :  { %v1475_v46 = vpop.trf.xlu0  ;;  %v1700_v47 = vpop.trf.xlu1 }
 0x163   :  { %5025 = vmatmul.mubr.msk.f32.gmra.mrb[50].mxu0 %vm137_vm0, %v1475_v46  ;;  %5053 = vmatmul.mubr.msk.f32.gmra.mrb[50].mxu1 %vm137_vm0, %v1700_v47 }
 0x166   :  { %v1476_v48 = vpop.trf.xlu0  ;;  %v1701_v49 = vpop.trf.xlu1 }
 0x167   :  { %5027 = vmatprep.mubr.msk.f32.mxu0 %vm137_vm0, %v1476_v48  ;;  %5055 = vmatprep.mubr.msk.f32.mxu1 %vm137_vm0, %v1701_v49 }
 0x16a   :  { %v1477_v50 = vpop.trf.xlu0  ;;  %v1702_v51 = vpop.trf.xlu1 }
 0x16b   :  { %5028 = vmatmul.mubr.msk.f32.gmra.mrb[52].mxu0 %vm137_vm0, %v1477_v50  ;;  %5056 = vmatmul.mubr.msk.f32.gmra.mrb[52].mxu1 %vm137_vm0, %v1702_v51 }
 0x16e   :  { %v6359_v52 = vpop.f32.mrb[0].mxu0  ;;  %v1478_v53 = vpop.trf.xlu0 }
 0x16f   :  { %1908 = vmax.xlane.f32.xlu1 %v6359_v52  ;;  %v6362_v54 = vpop.f32.mrb[1].mxu0  ;;  %v6364_v55 = vpop.f32.mrb[0].mxu1  ;;  %5030 = vmatprep.mubr.msk.f32.mxu0 %vm137_vm0, %v1478_v53 }
 0x170   :  { %1906 = vmax.xlane.f32.xlu0 %v6362_v54  ;;  %v6368_v56 = vpop.f32.mrb[1].mxu1  ;;  %v1703_v57 = vpop.trf.xlu1 }
 0x171   :  { %5058 = vmatprep.mubr.msk.f32.mxu1 %vm137_vm0, %v1703_v57 }
 0x172   :  { %v1479_v58 = vpop.trf.xlu0 }
 0x173   :  { %1940 = vmax.xlane.f32.xlu1 %v6364_v55  ;;  %5031 = vmatmul.mubr.msk.f32.gmra.mrb[54].mxu0 %vm137_vm0, %v1479_v58 }
 0x174   :  { %v1704_v59 = vpop.trf.xlu1 }
 0x175   :  { %5059 = vmatmul.mubr.msk.f32.gmra.mrb[54].mxu1 %vm137_vm0, %v1704_v59 }
 0x176   :  { %v6374_v60 = vpop.f32.mrb[2].mxu0  ;;  %v1480_v61 = vpop.trf.xlu0 }
 0x177   :  { %1938 = vmax.xlane.f32.xlu1 %v6368_v56  ;;  %v6377_v62 = vpop.f32.mrb[3].mxu0  ;;  %v6379_v63 = vpop.f32.mrb[2].mxu1  ;;  %5033 = vmatprep.mubr.msk.f32.mxu0 %vm137_vm0, %v1480_v61 }
 0x178   :  { %1910 = vmax.xlane.f32.xlu0 %v6377_v62  ;;  %v1705_v0 = vpop.trf.xlu1  ;;  %v6383_v1 = vpop.f32.mrb[3].mxu1 }
 0x179   :  { %5061 = vmatprep.mubr.msk.f32.mxu1 %vm137_vm0, %v1705_v0 }
 0x17a   :  { %v1481_v2 = vpop.trf.xlu0 }
 0x17b   :  { %1912 = vmax.xlane.f32.xlu1 %v6374_v60  ;;  %5034 = vmatmul.mubr.msk.f32.gmra.mrb[56].mxu0 %vm137_vm0, %v1481_v2 }
 0x17c   :  { %1942 = vmax.xlane.f32.xlu0 %v6383_v1  ;;  %v1706_v3 = vpop.trf.xlu1 }
 0x17d   :  { %5062 = vmatmul.mubr.msk.f32.gmra.mrb[56].mxu1 %vm137_vm0, %v1706_v3 }
 0x17e   :  { %v6390_v4 = vpop.f32.mrb[4].mxu0  ;;  %v1482_v5 = vpop.trf.xlu0 }
 0x17f   :  { %1944 = vmax.xlane.f32.xlu1 %v6379_v63  ;;  %v6393_v6 = vpop.f32.mrb[5].mxu0  ;;  %v6395_v7 = vpop.f32.mrb[4].mxu1  ;;  %5036 = vmatprep.mubr.msk.f32.mxu0 %vm137_vm0, %v1482_v5  ;;  %v89_v5 = vld [vmem:[#allocation2 + $0x20] sm:$0xff] }
 0x180   :  { %1914 = vmax.xlane.f32.xlu0 %v6393_v6  ;;  %v1707_v8 = vpop.trf.xlu1  ;;  %v6399_v9 = vpop.f32.mrb[5].mxu1 }
 0x181   :  { %5064 = vmatprep.mubr.msk.f32.mxu1 %vm137_vm0, %v1707_v8  ;;  %v91_v8 = vld [vmem:[#allocation2 + $0x50] sm:$0xff] }
 0x182   :  { %v1483_v10 = vpop.trf.xlu0 }
 0x183   :  { %1916 = vmax.xlane.f32.xlu1 %v6390_v4  ;;  %5037 = vmatmul.mubr.msk.f32.gmra.mrb[58].mxu0 %vm137_vm0, %v1483_v10 }
 0x184   :  { %1946 = vmax.xlane.f32.xlu0 %v6399_v9  ;;  %v1708_v11 = vpop.trf.xlu1 }
 0x185   :  { %5065 = vmatmul.mubr.msk.f32.gmra.mrb[58].mxu1 %vm137_vm0, %v1708_v11 }
 0x186   :  { %v6406_v12 = vpop.f32.mrb[6].mxu0  ;;  %v1484_v13 = vpop.trf.xlu0 }
 0x187   :  { %1948 = vmax.xlane.f32.xlu1 %v6395_v7  ;;  %v6409_v14 = vpop.f32.mrb[7].mxu0  ;;  %v6411_v15 = vpop.f32.mrb[6].mxu1  ;;  %5039 = vmatprep.mubr.msk.f32.mxu0 %vm137_vm0, %v1484_v13 }
 0x188   :  { %1918 = vmax.xlane.f32.xlu0 %v6409_v14  ;;  %v1709_v16 = vpop.trf.xlu1  ;;  %v6415_v17 = vpop.f32.mrb[7].mxu1 }
 0x189   :  { %5067 = vmatprep.mubr.msk.f32.mxu1 %vm137_vm0, %v1709_v16 }
 0x18a   :  { %v1485_v18 = vpop.trf.xlu0 }
 0x18b   :  { %1920 = vmax.xlane.f32.xlu1 %v6406_v12  ;;  %5040 = vmatmul.mubr.msk.f32.gmra.mrb[60].mxu0 %vm137_vm0, %v1485_v18 }
 0x18c   :  { %1950 = vmax.xlane.f32.xlu0 %v6415_v17  ;;  %v1710_v19 = vpop.trf.xlu1 }
 0x18d   :  { %5068 = vmatmul.mubr.msk.f32.gmra.mrb[60].mxu1 %vm137_vm0, %v1710_v19 }
 0x18e   :  { %v6422_v20 = vpop.f32.mrb[8].mxu0  ;;  %v1486_v21 = vpop.trf.xlu0 }
 0x18f   :  { %1952 = vmax.xlane.f32.xlu1 %v6411_v15  ;;  %v6425_v22 = vpop.f32.mrb[9].mxu0  ;;  %v6427_v23 = vpop.f32.mrb[8].mxu1  ;;  %5042 = vmatprep.mubr.msk.f32.mxu0 %vm137_vm0, %v1486_v21 }
 0x190   :  { %1922 = vmax.xlane.f32.xlu0 %v6425_v22  ;;  %v1711_v24 = vpop.trf.xlu1  ;;  %v6431_v25 = vpop.f32.mrb[9].mxu1 }
 0x191   :  { %5070 = vmatprep.mubr.msk.f32.mxu1 %vm137_vm0, %v1711_v24 }
 0x192   :  { %v1487_v26 = vpop.trf.xlu0 }
 0x193   :  { %1924 = vmax.xlane.f32.xlu1 %v6422_v20  ;;  %5043 = vmatmul.mubr.msk.f32.gmra.mrb[62].mxu0 %vm137_vm0, %v1487_v26 }
 0x194   :  { %1954 = vmax.xlane.f32.xlu0 %v6431_v25  ;;  %v1712_v27 = vpop.trf.xlu1  ;;  %5105 = vmatprep.mubr.f32.mxu0 %v89_v5 }
 0x195   :  { %5071 = vmatmul.mubr.msk.f32.gmra.mrb[62].mxu1 %vm137_vm0, %v1712_v27 }
 0x196   :  { %v6438_v28 = vpop.f32.mrb[10].mxu0  ;;  %v6440_v29 = vpop.f32.mrb[10].mxu1  ;;  %5140 = vmatprep.mubr.f32.mxu1 %v91_v8 }
 0x197   :  { %1956 = vmax.xlane.f32.xlu1 %v6427_v23  ;;  %v6443_v30 = vpop.f32.mrb[11].mxu0  ;;  %v6445_v31 = vpop.f32.mrb[11].mxu1 }
 0x198   :  { %1926 = vmax.xlane.f32.xlu0 %v6443_v30 }
 0x19b   :  { %1928 = vmax.xlane.f32.xlu1 %v6438_v28 }
 0x19c   :  { %1958 = vmax.xlane.f32.xlu0 %v6445_v31 }
 0x19e   :  { %v6450_v32 = vpop.f32.mrb[12].mxu0  ;;  %v6452_v33 = vpop.f32.mrb[12].mxu1 }
 0x19f   :  { %1960 = vmax.xlane.f32.xlu1 %v6440_v29  ;;  %v6455_v34 = vpop.f32.mrb[13].mxu0  ;;  %v6457_v35 = vpop.f32.mrb[13].mxu1 }
 0x1a0   :  { %1930 = vmax.xlane.f32.xlu0 %v6455_v34 }
 0x1a3   :  { %1932 = vmax.xlane.f32.xlu1 %v6450_v32 }
 0x1a4   :  { %1962 = vmax.xlane.f32.xlu0 %v6457_v35 }
 0x1a6   :  { %v6462_v36 = vpop.f32.mrb[14].mxu0  ;;  %v6464_v37 = vpop.f32.mrb[14].mxu1 }
 0x1a7   :  { %1964 = vmax.xlane.f32.xlu1 %v6452_v33  ;;  %v6467_v38 = vpop.f32.mrb[15].mxu0  ;;  %v6469_v39 = vpop.f32.mrb[15].mxu1 }
 0x1a8   :  { %1934 = vmax.xlane.f32.xlu0 %v6467_v38 }
 0x1ab   :  { %1936 = vmax.xlane.f32.xlu1 %v6462_v36 }
 0x1ac   :  { %1966 = vmax.xlane.f32.xlu0 %v6469_v39 }
 0x1ae   :  { %v6474_v40 = vpop.f32.mrb[16].mxu0  ;;  %v6476_v41 = vpop.f32.mrb[16].mxu1 }
 0x1af   :  { %1968 = vmax.xlane.f32.xlu1 %v6464_v37  ;;  %v6479_v42 = vpop.f32.mrb[17].mxu0  ;;  %v6481_v43 = vpop.f32.mrb[17].mxu1 }
 0x1b0   :  { %1970 = vmax.xlane.f32.xlu0 %v6479_v42 }
 0x1b3   :  { %1972 = vmax.xlane.f32.xlu1 %v6474_v40 }
 0x1b4   :  { %2002 = vmax.xlane.f32.xlu0 %v6481_v43 }
 0x1b6   :  { %v6486_v44 = vpop.f32.mrb[18].mxu0  ;;  %v6488_v45 = vpop.f32.mrb[18].mxu1 }
 0x1b7   :  { %2004 = vmax.xlane.f32.xlu1 %v6476_v41  ;;  %v6491_v46 = vpop.f32.mrb[19].mxu0  ;;  %v6493_v47 = vpop.f32.mrb[19].mxu1 }
 0x1b8   :  { %1974 = vmax.xlane.f32.xlu0 %v6491_v46 }
 0x1bb   :  { %1976 = vmax.xlane.f32.xlu1 %v6486_v44 }
 0x1bc   :  { %2006 = vmax.xlane.f32.xlu0 %v6493_v47 }
 0x1be   :  { %v6498_v48 = vpop.f32.mrb[20].mxu0  ;;  %v6500_v49 = vpop.f32.mrb[20].mxu1 }
 0x1bf   :  { %2008 = vmax.xlane.f32.xlu1 %v6488_v45  ;;  %v6503_v50 = vpop.f32.mrb[21].mxu0  ;;  %v6505_v51 = vpop.f32.mrb[21].mxu1 }
 0x1c0   :  { %1978 = vmax.xlane.f32.xlu0 %v6503_v50 }
 0x1c3   :  { %1980 = vmax.xlane.f32.xlu1 %v6498_v48 }
 0x1c4   :  { %2010 = vmax.xlane.f32.xlu0 %v6505_v51 }
 0x1c6   :  { %v6510_v53 = vpop.f32.mrb[22].mxu0  ;;  %v6512_v57 = vpop.f32.mrb[22].mxu1 }
 0x1c7   :  { %2012 = vmax.xlane.f32.xlu1 %v6500_v49  ;;  %v6515_v58 = vpop.f32.mrb[23].mxu0  ;;  %v6517_v59 = vpop.f32.mrb[23].mxu1 }
 0x1c8   :  { %1982 = vmax.xlane.f32.xlu0 %v6515_v58 }
 0x1cb   :  { %1984 = vmax.xlane.f32.xlu1 %v6510_v53 }
 0x1cc   :  { %2014 = vmax.xlane.f32.xlu0 %v6517_v59 }
 0x1ce   :  { %v6522_v61 = vpop.f32.mrb[24].mxu0  ;;  %v6524_v0 = vpop.f32.mrb[24].mxu1 }
 0x1cf   :  { %7945 = vst [vmem:[#allocation8_spill] sm:$0xff] %v6524_v0  ;;  %2016 = vmax.xlane.f32.xlu1 %v6512_v57  ;;  %v6527_v2 = vpop.f32.mrb[25].mxu0  ;;  %v6529_v3 = vpop.f32.mrb[25].mxu1 }
 0x1d0   :  { %1986 = vmax.xlane.f32.xlu0 %v6527_v2 }
 0x1d3   :  { %1988 = vmax.xlane.f32.xlu1 %v6522_v61 }
 0x1d4   :  { %2018 = vmax.xlane.f32.xlu0 %v6529_v3 }
 0x1d6   :  { %v6534_v10 = vpop.f32.mrb[26].mxu0  ;;  %v6536_v11 = vpop.f32.mrb[26].mxu1 }
 0x1d7   :  { %7946 = vst [vmem:[#allocation9_spill] sm:$0xff] %v6534_v10  ;;  %7947 = vst [vmem:[#allocation10_spill] sm:$0xff] %v6536_v11  ;;  %2020 = vmax.xlane.f32.xlu1 %v6524_v0  ;;  %v6539_v13 = vpop.f32.mrb[27].mxu0  ;;  %v6541_v16 = vpop.f32.mrb[27].mxu1 }
 0x1d8   :  { %7948 = vst [vmem:[#allocation11_spill] sm:$0xff] %v6539_v13  ;;  %7949 = vst [vmem:[#allocation12_spill] sm:$0xff] %v6541_v16  ;;  %1990 = vmax.xlane.f32.xlu0 %v6539_v13 }
 0x1db   :  { %1992 = vmax.xlane.f32.xlu1 %v6534_v10 }
 0x1dc   :  { %2022 = vmax.xlane.f32.xlu0 %v6541_v16 }
 0x1de   :  { %v6546_v18 = vpop.f32.mrb[28].mxu0  ;;  %v6548_v19 = vpop.f32.mrb[28].mxu1 }
 0x1df   :  { %7950 = vst [vmem:[#allocation13_spill] sm:$0xff] %v6546_v18  ;;  %7951 = vst [vmem:[#allocation14_spill] sm:$0xff] %v6548_v19  ;;  %2024 = vmax.xlane.f32.xlu1 %v6536_v11  ;;  %v6551_v21 = vpop.f32.mrb[29].mxu0  ;;  %v6553_v24 = vpop.f32.mrb[29].mxu1 }
 0x1e0   :  { %7952 = vst [vmem:[#allocation15_spill] sm:$0xff] %v6551_v21  ;;  %7953 = vst [vmem:[#allocation16_spill] sm:$0xff] %v6553_v24  ;;  %1994 = vmax.xlane.f32.xlu0 %v6551_v21 }
 0x1e3   :  { %1996 = vmax.xlane.f32.xlu1 %v6546_v18 }
 0x1e4   :  { %2026 = vmax.xlane.f32.xlu0 %v6553_v24 }
 0x1e6   :  { %v6558_v26 = vpop.f32.mrb[30].mxu0  ;;  %v6560_v27 = vpop.f32.mrb[30].mxu1 }
 0x1e7   :  { %7954 = vst [vmem:[#allocation17_spill] sm:$0xff] %v6558_v26  ;;  %7955 = vst [vmem:[#allocation18_spill] sm:$0xff] %v6560_v27  ;;  %2028 = vmax.xlane.f32.xlu1 %v6548_v19  ;;  %v6563_v5 = vpop.f32.mrb[31].mxu0  ;;  %v6565_v8 = vpop.f32.mrb[31].mxu1 }
 0x1e8   :  { %7956 = vst [vmem:[#allocation19_spill] sm:$0xff] %v6563_v5  ;;  %7957 = vst [vmem:[#allocation20_spill] sm:$0xff] %v6565_v8  ;;  %1998 = vmax.xlane.f32.xlu0 %v6563_v5 }
 0x1eb   :  { %2000 = vmax.xlane.f32.xlu1 %v6558_v26 }
 0x1ec   :  { %2030 = vmax.xlane.f32.xlu0 %v6565_v8 }
 0x1ee   :  { %v6570_v21 = vpop.f32.mrb[32].mxu0  ;;  %v6572_v18 = vpop.f32.mrb[32].mxu1 }
 0x1ef   :  { %7958 = vst [vmem:[#allocation21_spill] sm:$0xff] %v6570_v21  ;;  %7959 = vst [vmem:[#allocation22_spill] sm:$0xff] %v6572_v18  ;;  %2032 = vmax.xlane.f32.xlu1 %v6560_v27  ;;  %v6575_v24 = vpop.f32.mrb[33].mxu0  ;;  %v6577_v11 = vpop.f32.mrb[33].mxu1 }
 0x1f0   :  { %7960 = vst [vmem:[#allocation23_spill] sm:$0xff] %v6575_v24  ;;  %7961 = vst [vmem:[#allocation24_spill] sm:$0xff] %v6577_v11  ;;  %2034 = vmax.xlane.f32.xlu0 %v6575_v24 }
 0x1f3   :  { %2036 = vmax.xlane.f32.xlu1 %v6570_v21 }
 0x1f4   :  { %2066 = vmax.xlane.f32.xlu0 %v6577_v11 }
 0x1f6   :  { %v6582_v5 = vpop.f32.mrb[34].mxu0  ;;  %v6584_v26 = vpop.f32.mrb[34].mxu1 }
 0x1f7   :  { %7962 = vst [vmem:[#allocation25_spill] sm:$0xff] %v6582_v5  ;;  %7963 = vst [vmem:[#allocation26_spill] sm:$0xff] %v6584_v26  ;;  %2068 = vmax.xlane.f32.xlu1 %v6572_v18  ;;  %v6587_v8 = vpop.f32.mrb[35].mxu0  ;;  %v6589_v19 = vpop.f32.mrb[35].mxu1 }
 0x1f8   :  { %7964 = vst [vmem:[#allocation27_spill] sm:$0xff] %v6587_v8  ;;  %7965 = vst [vmem:[#allocation28_spill] sm:$0xff] %v6589_v19  ;;  %2038 = vmax.xlane.f32.xlu0 %v6587_v8 }
 0x1fb   :  { %2040 = vmax.xlane.f32.xlu1 %v6582_v5 }
 0x1fc   :  { %v1909_v27 = vpop.xlane.xlu1 %1908  ;;  %2070 = vmax.xlane.f32.xlu0 %v6589_v19 }
 0x1fd   :  { %v2163_v21 = vsub.f32 %v6359_v52, %v1909_v27  ;;  %v1907_v11 = vpop.xlane.xlu0 %1906 }
 0x1fe   :  { %v2162_v24 = vsub.f32 %v6362_v54, %v1907_v11  ;;  %v6596_v16 = vpop.f32.mrb[36].mxu0  ;;  %v6598_v10 = vpop.f32.mrb[36].mxu1 }
 0x1ff   :  { %7966 = vst [vmem:[#allocation29_spill] sm:$0xff] %v6598_v10  ;;  %v2292_v18 = vmul.f32 1.442695, %v2163_v21  ;;  %2072 = vmax.xlane.f32.xlu1 %v6584_v26  ;;  %v6601_v13 = vpop.f32.mrb[37].mxu0  ;;  %v6603_v8 = vpop.f32.mrb[37].mxu1 }
 0x200   :  { %7967 = vst [vmem:[#allocation30_spill] sm:$0xff] %v6601_v13  ;;  %v2290_v5 = vmul.f32 1.442695, %v2162_v24  ;;  %v1941_v0 = vpop.xlane.xlu1 %1940  ;;  %2042 = vmax.xlane.f32.xlu0 %v6601_v13 }
 0x201   :  { %5646 = vpow2.f32 %v2292_v18  ;;  %v2179_v52 = vsub.f32 %v6364_v55, %v1941_v0 }
 0x202   :  { %5648 = vpow2.f32 %v2290_v5 }
 0x203   :  { %2044 = vmax.xlane.f32.xlu1 %v6596_v16  ;;  %v2324_v54 = vmul.f32 1.442695, %v2179_v52 }
 0x204   :  { %v1939_v11 = vpop.xlane.xlu1 %1938  ;;  %2074 = vmax.xlane.f32.xlu0 %v6603_v8 }
 0x205   :  { %v2178_v21 = vsub.f32 %v6368_v56, %v1939_v11  ;;  %v1911_v27 = vpop.xlane.xlu0 %1910  ;;  %5650 = vpow2.f32 %v2324_v54 }
 0x206   :  { %v2164_v26 = vsub.f32 %v6377_v62, %v1911_v27  ;;  %v6611_v19 = vpop.f32.mrb[38].mxu0  ;;  %v6613_v24 = vpop.f32.mrb[38].mxu1 }
 0x207   :  { %7968 = vst [vmem:[#allocation31_spill] sm:$0xff] %v6613_v24  ;;  %v2322_v13 = vmul.f32 1.442695, %v2178_v21  ;;  %2076 = vmax.xlane.f32.xlu1 %v6598_v10  ;;  %v6616_v55 = vpop.f32.mrb[39].mxu0  ;;  %v6618_v0 = vpop.f32.mrb[39].mxu1 }
 0x208   :  { %7969 = vst [vmem:[#allocation32_spill] sm:$0xff] %v6618_v0  ;;  %v2294_v18 = vmul.f32 1.442695, %v2164_v26  ;;  %v1913_v5 = vpop.xlane.xlu1 %1912  ;;  %2046 = vmax.xlane.f32.xlu0 %v6616_v55 }
 0x209   :  { %5652 = vpow2.f32 %v2322_v13  ;;  %v2165_v56 = vsub.f32 %v6374_v60, %v1913_v5  ;;  %v1943_v62 = vpop.xlane.xlu0 %1942 }
 0x20a   :  { %v2180_v52 = vsub.f32 %v6383_v1, %v1943_v62  ;;  %5654 = vpow2.f32 %v2294_v18 }
 0x20b   :  { %v6623_v11 = vpop.eup %5646  ;;  %v2296_v21 = vmul.f32 1.442695, %v2165_v56  ;;  %2048 = vmax.xlane.f32.xlu1 %v6611_v19 }
 0x20c   :  { %v6626_v27 = vpop.eup %5648  ;;  %v2326_v10 = vmul.f32 1.442695, %v2180_v52  ;;  %v1945_v54 = vpop.xlane.xlu1 %1944  ;;  %2078 = vmax.xlane.f32.xlu0 %v6618_v0 }
 0x20d   :  { %5656 = vpow2.f32 %v2296_v21  ;;  %v2181_v13 = vsub.f32 %v6379_v63, %v1945_v54  ;;  %v1915_v26 = vpop.xlane.xlu0 %1914  ;;  %v5385_v60 = vpack.c.bf16 %v6623_v11, %v6626_v27 }
 0x20e   :  { %v2166_v1 = vsub.f32 %v6393_v6, %v1915_v26  ;;  %v6633_v5 = vpop.f32.mrb[40].mxu0  ;;  %v6635_v56 = vpop.f32.mrb[40].mxu1  ;;  %5658 = vpow2.f32 %v2326_v10 }
 0x20f   :  { %7970 = vst [vmem:[#allocation33_spill] sm:$0xff] %v6633_v5  ;;  %7971 = vst [vmem:[#allocation34_spill] sm:$0xff] %v6635_v56  ;;  %v2328_v62 = vmul.f32 1.442695, %v2181_v13  ;;  %2080 = vmax.xlane.f32.xlu1 %v6613_v24  ;;  %v6638_v18 = vpop.f32.mrb[41].mxu0  ;;  %5386 = vmatprep.subr.bf16.mxu0 %v5385_v60  ;;  %v6640_v52 = vpop.f32.mrb[41].mxu1 }
 0x210   :  { %7972 = vst [vmem:[#allocation35_spill] sm:$0xff] %v6638_v18  ;;  %7973 = vst [vmem:[#allocation36_spill] sm:$0xff] %v6640_v52  ;;  %v2298_v63 = vmul.f32 1.442695, %v2166_v1  ;;  %v1917_v21 = vpop.xlane.xlu1 %1916  ;;  %2050 = vmax.xlane.f32.xlu0 %v6638_v18  ;;  %5388 = vmatpush3.bf16.xpose.msra.mxu0 %v5385_v60  ;;  %v6644_v26 = vpop.eup %5650 }
 0x211   :  { %5660 = vpow2.f32 %v2328_v62  ;;  %v2167_v6 = vsub.f32 %v6390_v4, %v1917_v21  ;;  %v1947_v54 = vpop.xlane.xlu0 %1946 }
 0x212   :  { %v2182_v13 = vsub.f32 %v6399_v9, %v1947_v54  ;;  %5662 = vpow2.f32 %v2298_v63 }
 0x213   :  { %v6647_v24 = vpop.eup %5652  ;;  %v2300_v0 = vmul.f32 1.442695, %v2167_v6  ;;  %2052 = vmax.xlane.f32.xlu1 %v6633_v5 }
 0x214   :  { %v2330_v10 = vmul.f32 1.442695, %v2182_v13  ;;  %v1949_v1 = vpop.xlane.xlu1 %1948  ;;  %2082 = vmax.xlane.f32.xlu0 %v6640_v52  ;;  %v5417_v60 = vpack.c.bf16 %v6644_v26, %v6647_v24  ;;  %v6654_v21 = vpop.eup %5654 }
 0x215   :  { %5664 = vpow2.f32 %v2300_v0  ;;  %v2183_v4 = vsub.f32 %v6395_v7, %v1949_v1  ;;  %v1919_v62 = vpop.xlane.xlu0 %1918 }
 0x216   :  { %v2168_v9 = vsub.f32 %v6409_v14, %v1919_v62  ;;  %v6657_v54 = vpop.f32.mrb[42].mxu0  ;;  %5418 = vmatprep.subr.bf16.mxu1 %v5417_v60  ;;  %v6659_v6 = vpop.f32.mrb[42].mxu1  ;;  %5666 = vpow2.f32 %v2330_v10 }
 0x217   :  { %7974 = vst [vmem:[#allocation37_spill] sm:$0xff] %v6657_v54  ;;  %7975 = vst [vmem:[#allocation38_spill] sm:$0xff] %v6659_v6  ;;  %v6661_v63 = vpop.eup %5656  ;;  %v2332_v13 = vmul.f32 1.442695, %v2183_v4  ;;  %5420 = vmatpush3.bf16.xpose.msra.mxu1 %v5417_v60  ;;  %2084 = vmax.xlane.f32.xlu1 %v6635_v56  ;;  %v6664_v52 = vpop.f32.mrb[43].mxu0 }
 0x218   :  { %7976 = vst [vmem:[#allocation39_spill] sm:$0xff] %v6664_v52  ;;  %v6666_v0 = vpop.f32.mrb[43].mxu1  ;;  %v2302_v7 = vmul.f32 1.442695, %v2168_v9  ;;  %v1921_v1 = vpop.xlane.xlu1 %1920  ;;  %2054 = vmax.xlane.f32.xlu0 %v6664_v52  ;;  %v5389_v14 = vpack.c.bf16 %v6661_v63, %v6654_v21 }
 0x219   :  { %7977 = vst [vmem:[#allocation40_spill] sm:$0xff] %v6666_v0  ;;  %5668 = vpow2.f32 %v2332_v13  ;;  %v2169_v62 = vsub.f32 %v6406_v12, %v1921_v1  ;;  %v1951_v5 = vpop.xlane.xlu0 %1950  ;;  %v6672_v4 = vpop.eup %5658 }
 0x21a   :  { %v2184_v60 = vsub.f32 %v6415_v17, %v1951_v5  ;;  %5390 = vmatprep.subr.bf16.mxu0 %v5389_v14  ;;  %5670 = vpow2.f32 %v2302_v7 }
 0x21b   :  { %v6675_v56 = vpop.eup %5660  ;;  %v2304_v18 = vmul.f32 1.442695, %v2169_v62  ;;  %2056 = vmax.xlane.f32.xlu1 %v6657_v54  ;;  %5392 = vmatpush3.bf16.xpose.msra.mxu0 %v5389_v14 }
 0x21c   :  { %v2334_v10 = vmul.f32 1.442695, %v2184_v60  ;;  %v1953_v9 = vpop.xlane.xlu1 %1952  ;;  %2086 = vmax.xlane.f32.xlu0 %v6666_v0  ;;  %v5421_v12 = vpack.c.bf16 %v6675_v56, %v6672_v4  ;;  %v6682_v17 = vpop.eup %5662 }
 0x21d   :  { %5672 = vpow2.f32 %v2304_v18  ;;  %v2185_v13 = vsub.f32 %v6411_v15, %v1953_v9  ;;  %v1923_v1 = vpop.xlane.xlu0 %1922 }
 0x21e   :  { %v2170_v5 = vsub.f32 %v6425_v22, %v1923_v1  ;;  %v6685_v62 = vpop.f32.mrb[44].mxu0  ;;  %5422 = vmatprep.subr.bf16.mxu1 %v5421_v12  ;;  %v6687_v14 = vpop.f32.mrb[44].mxu1  ;;  %5674 = vpow2.f32 %v2334_v10 }
 0x21f   :  { %7978 = vst [vmem:[#allocation41_spill] sm:$0xff] %v6685_v62  ;;  %7979 = vst [vmem:[#allocation42_spill] sm:$0xff] %v6687_v14  ;;  %v6689_v7 = vpop.eup %5664  ;;  %v2336_v60 = vmul.f32 1.442695, %v2185_v13  ;;  %2088 = vmax.xlane.f32.xlu1 %v6659_v6  ;;  %v6692_v0 = vpop.f32.mrb[45].mxu0  ;;  %5424 = vmatpush3.bf16.xpose.msra.mxu1 %v5421_v12 }
 0x220   :  { %7980 = vst [vmem:[#allocation43_spill] sm:$0xff] %v6692_v0  ;;  %v6694_v18 = vpop.f32.mrb[45].mxu1  ;;  %v2306_v15 = vmul.f32 1.442695, %v2170_v5  ;;  %v1925_v9 = vpop.xlane.xlu1 %1924  ;;  %2058 = vmax.xlane.f32.xlu0 %v6692_v0  ;;  %v5393_v22 = vpack.c.bf16 %v6689_v7, %v6682_v17 }
 0x221   :  { %7981 = vst [vmem:[#allocation44_spill] sm:$0xff] %v6694_v18  ;;  %5676 = vpow2.f32 %v2336_v60  ;;  %v2171_v1 = vsub.f32 %v6422_v20, %v1925_v9  ;;  %v1955_v54 = vpop.xlane.xlu0 %1954  ;;  %v6700_v13 = vpop.eup %5666 }
 0x222   :  { %v2186_v6 = vsub.f32 %v6431_v25, %v1955_v54  ;;  %5394 = vmatprep.subr.bf16.mxu0 %v5393_v22  ;;  %5678 = vpow2.f32 %v2306_v15 }
 0x223   :  { %v6703_v12 = vpop.eup %5668  ;;  %v2308_v52 = vmul.f32 1.442695, %v2171_v1  ;;  %2060 = vmax.xlane.f32.xlu1 %v6685_v62  ;;  %5396 = vmatpush3.bf16.xpose.msra.mxu0 %v5393_v22 }
 0x224   :  { %v2338_v10 = vmul.f32 1.442695, %v2186_v6  ;;  %v1957_v5 = vpop.xlane.xlu1 %1956  ;;  %2090 = vmax.xlane.f32.xlu0 %v6694_v18  ;;  %v5425_v20 = vpack.c.bf16 %v6703_v12, %v6700_v13  ;;  %v6710_v25 = vpop.eup %5670 }
 0x225   :  { %5680 = vpow2.f32 %v2308_v52  ;;  %v2187_v60 = vsub.f32 %v6427_v23, %v1957_v5  ;;  %v1927_v9 = vpop.xlane.xlu0 %1926 }
 0x226   :  { %v2172_v54 = vsub.f32 %v6443_v30, %v1927_v9  ;;  %v6713_v1 = vpop.f32.mrb[46].mxu0  ;;  %5426 = vmatprep.subr.bf16.mxu1 %v5425_v20  ;;  %v6715_v22 = vpop.f32.mrb[46].mxu1  ;;  %5682 = vpow2.f32 %v2338_v10 }
 0x227   :  { %7982 = vst [vmem:[#allocation45_spill] sm:$0xff] %v6713_v1  ;;  %7983 = vst [vmem:[#allocation46_spill] sm:$0xff] %v6715_v22  ;;  %v6717_v6 = vpop.eup %5672  ;;  %v2340_v15 = vmul.f32 1.442695, %v2187_v60  ;;  %2092 = vmax.xlane.f32.xlu1 %v6687_v14  ;;  %v6720_v18 = vpop.f32.mrb[47].mxu0  ;;  %5428 = vmatpush3.bf16.xpose.msra.mxu1 %v5425_v20 }
 0x228   :  { %7984 = vst [vmem:[#allocation47_spill] sm:$0xff] %v6720_v18  ;;  %v6722_v52 = vpop.f32.mrb[47].mxu1  ;;  %v2310_v23 = vmul.f32 1.442695, %v2172_v54  ;;  %v1929_v5 = vpop.xlane.xlu1 %1928  ;;  %2062 = vmax.xlane.f32.xlu0 %v6720_v18  ;;  %v5397_v30 = vpack.c.bf16 %v6717_v6, %v6710_v25 }
 0x229   :  { %7985 = vst [vmem:[#allocation48_spill] sm:$0xff] %v6722_v52  ;;  %5684 = vpow2.f32 %v2340_v15  ;;  %v2173_v9 = vsub.f32 %v6438_v28, %v1929_v5  ;;  %v1959_v62 = vpop.xlane.xlu0 %1958  ;;  %v6728_v60 = vpop.eup %5674 }
 0x22a   :  { %v2188_v14 = vsub.f32 %v6445_v31, %v1959_v62  ;;  %5398 = vmatprep.subr.bf16.mxu0 %v5397_v30  ;;  %5686 = vpow2.f32 %v2310_v23 }
 0x22b   :  { %v6731_v20 = vpop.eup %5676  ;;  %v2312_v0 = vmul.f32 1.442695, %v2173_v9  ;;  %2064 = vmax.xlane.f32.xlu1 %v6713_v1  ;;  %5400 = vmatpush3.bf16.xpose.msra.mxu0 %v5397_v30 }
 0x22c   :  { %v2342_v10 = vmul.f32 1.442695, %v2188_v14  ;;  %v1961_v54 = vpop.xlane.xlu1 %1960  ;;  %2094 = vmax.xlane.f32.xlu0 %v6722_v52  ;;  %v5429_v28 = vpack.c.bf16 %v6731_v20, %v6728_v60  ;;  %v6738_v31 = vpop.eup %5678 }
 0x22d   :  { %5688 = vpow2.f32 %v2312_v0  ;;  %v2189_v15 = vsub.f32 %v6440_v29, %v1961_v54  ;;  %v1931_v5 = vpop.xlane.xlu0 %1930 }
 0x22e   :  { %v2174_v62 = vsub.f32 %v6455_v34, %v1931_v5  ;;  %v6741_v9 = vpop.f32.mrb[48].mxu0  ;;  %5430 = vmatprep.subr.bf16.mxu1 %v5429_v28  ;;  %v6743_v30 = vpop.f32.mrb[48].mxu1  ;;  %5690 = vpow2.f32 %v2342_v10 }
 0x22f   :  { %7986 = vst [vmem:[#allocation49_spill] sm:$0xff] %v6741_v9  ;;  %7987 = vst [vmem:[#allocation50_spill] sm:$0xff] %v6743_v30  ;;  %v6745_v14 = vpop.eup %5680  ;;  %v2344_v23 = vmul.f32 1.442695, %v2189_v15  ;;  %2096 = vmax.xlane.f32.xlu1 %v6715_v22  ;;  %v6748_v52 = vpop.f32.mrb[49].mxu0  ;;  %5432 = vmatpush3.bf16.xpose.msra.mxu1 %v5429_v28 }
 0x230   :  { %7988 = vst [vmem:[#allocation51_spill] sm:$0xff] %v6748_v52  ;;  %v6750_v0 = vpop.f32.mrb[49].mxu1  ;;  %v2314_v29 = vmul.f32 1.442695, %v2174_v62  ;;  %v1933_v54 = vpop.xlane.xlu1 %1932  ;;  %2098 = vmax.xlane.f32.xlu0 %v6748_v52  ;;  %v5401_v34 = vpack.c.bf16 %v6745_v14, %v6738_v31 }
 0x231   :  { %7989 = vst [vmem:[#allocation52_spill] sm:$0xff] %v6750_v0  ;;  %5692 = vpow2.f32 %v2344_v23  ;;  %v2175_v5 = vsub.f32 %v6450_v32, %v1933_v54  ;;  %v1963_v1 = vpop.xlane.xlu0 %1962  ;;  %v6756_v15 = vpop.eup %5682 }
 0x232   :  { %v2190_v22 = vsub.f32 %v6457_v35, %v1963_v1  ;;  %5402 = vmatprep.subr.bf16.mxu0 %v5401_v34  ;;  %5694 = vpow2.f32 %v2314_v29 }
 0x233   :  { %v6759_v28 = vpop.eup %5684  ;;  %v2316_v18 = vmul.f32 1.442695, %v2175_v5  ;;  %2100 = vmax.xlane.f32.xlu1 %v6741_v9  ;;  %5404 = vmatpush3.bf16.xpose.msra.mxu0 %v5401_v34 }
 0x234   :  { %v2346_v10 = vmul.f32 1.442695, %v2190_v22  ;;  %v1965_v62 = vpop.xlane.xlu1 %1964  ;;  %2130 = vmax.xlane.f32.xlu0 %v6750_v0  ;;  %v5433_v32 = vpack.c.bf16 %v6759_v28, %v6756_v15  ;;  %v6766_v35 = vpop.eup %5686 }
 0x235   :  { %5696 = vpow2.f32 %v2316_v18  ;;  %v2191_v23 = vsub.f32 %v6452_v33, %v1965_v62  ;;  %v1935_v54 = vpop.xlane.xlu0 %1934 }
 0x236   :  { %v2176_v1 = vsub.f32 %v6467_v38, %v1935_v54  ;;  %v6769_v5 = vpop.f32.mrb[50].mxu0  ;;  %5434 = vmatprep.subr.bf16.mxu1 %v5433_v32  ;;  %v6771_v34 = vpop.f32.mrb[50].mxu1  ;;  %5698 = vpow2.f32 %v2346_v10 }
 0x237   :  { %7990 = vst [vmem:[#allocation53_spill] sm:$0xff] %v6769_v5  ;;  %7991 = vst [vmem:[#allocation54_spill] sm:$0xff] %v6771_v34  ;;  %v6773_v22 = vpop.eup %5688  ;;  %v2348_v29 = vmul.f32 1.442695, %v2191_v23  ;;  %2132 = vmax.xlane.f32.xlu1 %v6743_v30  ;;  %v6776_v0 = vpop.f32.mrb[51].mxu0  ;;  %5436 = vmatpush3.bf16.xpose.msra.mxu1 %v5433_v32 }
 0x238   :  { %7992 = vst [vmem:[#allocation55_spill] sm:$0xff] %v6776_v0  ;;  %v6778_v18 = vpop.f32.mrb[51].mxu1  ;;  %v2318_v33 = vmul.f32 1.442695, %v2176_v1  ;;  %v1937_v62 = vpop.xlane.xlu1 %1936  ;;  %2102 = vmax.xlane.f32.xlu0 %v6776_v0  ;;  %v5405_v38 = vpack.c.bf16 %v6773_v22, %v6766_v35 }
 0x239   :  { %7993 = vst [vmem:[#allocation56_spill] sm:$0xff] %v6778_v18  ;;  %5700 = vpow2.f32 %v2348_v29  ;;  %v2177_v54 = vsub.f32 %v6462_v36, %v1937_v62  ;;  %v1967_v9 = vpop.xlane.xlu0 %1966  ;;  %v6784_v23 = vpop.eup %5690 }
 0x23a   :  { %v2192_v30 = vsub.f32 %v6469_v39, %v1967_v9  ;;  %5406 = vmatprep.subr.bf16.mxu0 %v5405_v38  ;;  %5702 = vpow2.f32 %v2318_v33 }
 0x23b   :  { %v6787_v32 = vpop.eup %5692  ;;  %v2320_v52 = vmul.f32 1.442695, %v2177_v54  ;;  %2104 = vmax.xlane.f32.xlu1 %v6769_v5  ;;  %5408 = vmatpush3.bf16.xpose.msra.mxu0 %v5405_v38 }
 0x23c   :  { %v2350_v10 = vmul.f32 1.442695, %v2192_v30  ;;  %v1969_v1 = vpop.xlane.xlu1 %1968  ;;  %2134 = vmax.xlane.f32.xlu0 %v6778_v18  ;;  %v5437_v36 = vpack.c.bf16 %v6787_v32, %v6784_v23  ;;  %v6794_v39 = vpop.eup %5694 }
 0x23d   :  { %5704 = vpow2.f32 %v2320_v52  ;;  %v2193_v29 = vsub.f32 %v6464_v37, %v1969_v1  ;;  %v1971_v62 = vpop.xlane.xlu0 %1970 }
 0x23e   :  { %v2194_v9 = vsub.f32 %v6479_v42, %v1971_v62  ;;  %v6797_v54 = vpop.f32.mrb[52].mxu0  ;;  %5438 = vmatprep.subr.bf16.mxu1 %v5437_v36  ;;  %v6799_v38 = vpop.f32.mrb[52].mxu1  ;;  %5706 = vpow2.f32 %v2350_v10 }
 0x23f   :  { %7994 = vst [vmem:[#allocation57_spill] sm:$0xff] %v6797_v54  ;;  %7995 = vst [vmem:[#allocation58_spill] sm:$0xff] %v6799_v38  ;;  %v6801_v30 = vpop.eup %5696  ;;  %v2352_v33 = vmul.f32 1.442695, %v2193_v29  ;;  %2136 = vmax.xlane.f32.xlu1 %v6771_v34  ;;  %v6804_v18 = vpop.f32.mrb[53].mxu0  ;;  %5440 = vmatpush3.bf16.xpose.msra.mxu1 %v5437_v36 }
 0x240   :  { %7996 = vst [vmem:[#allocation59_spill] sm:$0xff] %v6804_v18  ;;  %v6806_v52 = vpop.f32.mrb[53].mxu1  ;;  %v2354_v37 = vmul.f32 1.442695, %v2194_v9  ;;  %v1973_v1 = vpop.xlane.xlu1 %1972  ;;  %2106 = vmax.xlane.f32.xlu0 %v6804_v18  ;;  %v5409_v42 = vpack.c.bf16 %v6801_v30, %v6794_v39 }
 0x241   :  { %7997 = vst [vmem:[#allocation60_spill] sm:$0xff] %v6806_v52  ;;  %5708 = vpow2.f32 %v2352_v33  ;;  %v2195_v62 = vsub.f32 %v6474_v40, %v1973_v1  ;;  %v2003_v5 = vpop.xlane.xlu0 %2002  ;;  %v6812_v29 = vpop.eup %5698 }
 0x242   :  { %v2210_v34 = vsub.f32 %v6481_v43, %v2003_v5  ;;  %5410 = vmatprep.subr.bf16.mxu0 %v5409_v42  ;;  %5710 = vpow2.f32 %v2354_v37 }
 0x243   :  { %v6815_v36 = vpop.eup %5700  ;;  %v2356_v0 = vmul.f32 1.442695, %v2195_v62  ;;  %2108 = vmax.xlane.f32.xlu1 %v6797_v54  ;;  %5412 = vmatpush3.bf16.xpose.msra.mxu0 %v5409_v42 }
 0x244   :  { %v2386_v10 = vmul.f32 1.442695, %v2210_v34  ;;  %v2005_v9 = vpop.xlane.xlu1 %2004  ;;  %2138 = vmax.xlane.f32.xlu0 %v6806_v52  ;;  %v5441_v40 = vpack.c.bf16 %v6815_v36, %v6812_v29  ;;  %v6822_v43 = vpop.eup %5702 }
 0x245   :  { %5712 = vpow2.f32 %v2356_v0  ;;  %v2211_v33 = vsub.f32 %v6476_v41, %v2005_v9  ;;  %v1975_v1 = vpop.xlane.xlu0 %1974 }
 0x246   :  { %v2196_v5 = vsub.f32 %v6491_v46, %v1975_v1  ;;  %v6825_v62 = vpop.f32.mrb[54].mxu0  ;;  %5442 = vmatprep.subr.bf16.mxu1 %v5441_v40  ;;  %5714 = vpow2.f32 %v2386_v10 }
 0x247   :  { %7998 = vst [vmem:[#allocation61_spill] sm:$0xff] %v6825_v62  ;;  %v6827_v42 = vpop.eup %5704  ;;  %v2388_v34 = vmul.f32 1.442695, %v2211_v33  ;;  %2140 = vmax.xlane.f32.xlu1 %v6799_v38  ;;  %v6830_v37 = vpop.f32.mrb[55].mxu0  ;;  %5444 = vmatpush3.bf16.xpose.msra.mxu1 %v5441_v40 }
 0x248   :  { %7999 = vst [vmem:[#allocation62_spill] sm:$0xff] %v6830_v37  ;;  %v2358_v0 = vmul.f32 1.442695, %v2196_v5  ;;  %v1977_v52 = vpop.xlane.xlu1 %1976  ;;  %2110 = vmax.xlane.f32.xlu0 %v6830_v37  ;;  %v6833_v41 = vpop.f32.mrb[54].mxu1  ;;  %v5413_v46 = vpack.c.bf16 %v6827_v42, %v6822_v43 }
 0x249   :  { %8000 = vst [vmem:[#allocation63_spill] sm:$0xff] %v6833_v41  ;;  %5716 = vpow2.f32 %v2388_v34  ;;  %v2197_v9 = vsub.f32 %v6486_v44, %v1977_v52  ;;  %v2007_v1 = vpop.xlane.xlu0 %2006  ;;  %v6838_v33 = vpop.f32.mrb[55].mxu1 }
 0x24a   :  { %8001 = vst [vmem:[#allocation64_spill] sm:$0xff] %v6838_v33  ;;  %v6840_v38 = vpop.eup %5706  ;;  %v2212_v40 = vsub.f32 %v6493_v47, %v2007_v1  ;;  %5414 = vmatprep.subr.bf16.mxu0 %v5413_v46  ;;  %5718 = vpow2.f32 %v2358_v0 }
 0x24b   :  { %v6843_v10 = vpop.eup %5708  ;;  %v2360_v5 = vmul.f32 1.442695, %v2197_v9  ;;  %2112 = vmax.xlane.f32.xlu1 %v6825_v62  ;;  %5416 = vmatpush3.bf16.xpose.msra.mxu0 %v5413_v46 }
 0x24c   :  { %v2390_v37 = vmul.f32 1.442695, %v2212_v40  ;;  %v2009_v54 = vpop.xlane.xlu1 %2008  ;;  %2142 = vmax.xlane.f32.xlu0 %v6838_v33  ;;  %v5445_v44 = vpack.c.bf16 %v6843_v10, %v6840_v38  ;;  %v6850_v47 = vpop.eup %5710  ;;  %v90_v33 = vld [vmem:[#allocation2 + $0x28] sm:$0xff] }
 0x24d   :  { %5720 = vpow2.f32 %v2360_v5  ;;  %v2213_v52 = vsub.f32 %v6488_v45, %v2009_v54  ;;  %v1979_v34 = vpop.xlane.xlu0 %1978 }
 0x24e   :  { %v2198_v1 = vsub.f32 %v6503_v50, %v1979_v34  ;;  %v6853_v9 = vpop.f32.mrb[56].mxu0  ;;  %5446 = vmatprep.subr.bf16.mxu1 %v5445_v44  ;;  %5722 = vpow2.f32 %v2390_v37 }
 0x24f   :  { %8002 = vst [vmem:[#allocation65_spill] sm:$0xff] %v6853_v9  ;;  %v6855_v46 = vpop.eup %5712  ;;  %v2392_v0 = vmul.f32 1.442695, %v2213_v52  ;;  %2144 = vmax.xlane.f32.xlu1 %v6833_v41  ;;  %v6858_v40 = vpop.f32.mrb[57].mxu0  ;;  %5448 = vmatpush3.bf16.xpose.msra.mxu1 %v5445_v44  ;;  %v93_v41 = vld [vmem:[#allocation2 + $0x80] sm:$0xff] }
 0x250   :  { %8003 = vst [vmem:[#allocation66_spill] sm:$0xff] %v6855_v46  ;;  %8004 = vst [vmem:[#allocation67_spill] sm:$0xff] %v6858_v40  ;;  %v2362_v5 = vmul.f32 1.442695, %v2198_v1  ;;  %v1981_v45 = vpop.xlane.xlu1 %1980  ;;  %2114 = vmax.xlane.f32.xlu0 %v6858_v40  ;;  %v6861_v54 = vpop.f32.mrb[56].mxu1  ;;  %v5449_v50 = vpack.c.bf16 %v6855_v46, %v6850_v47  ;;  %v92_v40 = vld [vmem:[#allocation2 + $0x58] sm:$0xff] }
 0x251   :  { %8005 = vst [vmem:[#allocation68_spill] sm:$0xff] %v6861_v54  ;;  %5724 = vpow2.f32 %v2392_v0  ;;  %v2199_v34 = vsub.f32 %v6498_v48, %v1981_v45  ;;  %v2011_v52 = vpop.xlane.xlu0 %2010  ;;  %v6866_v62 = vpop.f32.mrb[57].mxu1 }
 0x252   :  { %8006 = vst [vmem:[#allocation69_spill] sm:$0xff] %v6866_v62  ;;  %v6868_v18 = vpop.eup %5714  ;;  %v2214_v37 = vsub.f32 %v6505_v51, %v2011_v52  ;;  %5450 = vmatprep.subr.bf16.mxu0 %v5449_v50  ;;  %5106 = vmatmul.mubr.f32.vlgmr.msra.gmra.mrb[64].mxu0 %v90_v33  ;;  %5726 = vpow2.f32 %v2362_v5  ;;  %v95_v52 = vld [vmem:[#allocation2 + $0xb0] sm:$0xff] }
 0x253   :  { %v6871_v44 = vpop.eup %5716  ;;  %v2364_v1 = vmul.f32 1.442695, %v2199_v34  ;;  %2116 = vmax.xlane.f32.xlu1 %v6853_v9  ;;  %5452 = vmatpush3.bf16.xpose.msra.mxu0 %v5449_v50 }
 0x254   :  { %v2394_v0 = vmul.f32 1.442695, %v2214_v37  ;;  %v2013_v48 = vpop.xlane.xlu1 %2012  ;;  %2146 = vmax.xlane.f32.xlu0 %v6866_v62  ;;  %v5481_v45 = vpack.c.bf16 %v6871_v44, %v6868_v18  ;;  %5175 = vmatprep.mubr.f32.mxu0 %v93_v41  ;;  %v6878_v46 = vpop.eup %5718 }
 0x255   :  { %5728 = vpow2.f32 %v2364_v1  ;;  %v2215_v51 = vsub.f32 %v6500_v49, %v2013_v48  ;;  %v1983_v33 = vpop.xlane.xlu0 %1982 }
 0x256   :  { %v2200_v34 = vsub.f32 %v6515_v58, %v1983_v33  ;;  %v6881_v50 = vpop.f32.mrb[58].mxu0  ;;  %5482 = vmatprep.subr.bf16.mxu1 %v5481_v45  ;;  %5141 = vmatmul.mubr.f32.vlgmr.msra.gmra.mrb[64].mxu1 %v92_v40  ;;  %5730 = vpow2.f32 %v2394_v0 }
 0x257   :  { %8007 = vst [vmem:[#allocation70_spill] sm:$0xff] %v6881_v50  ;;  %v6883_v5 = vpop.eup %5720  ;;  %v2396_v37 = vmul.f32 1.442695, %v2215_v51  ;;  %2148 = vmax.xlane.f32.xlu1 %v6861_v54  ;;  %v6886_v62 = vpop.f32.mrb[59].mxu0  ;;  %5484 = vmatpush3.bf16.xpose.msra.mxu1 %v5481_v45 }
 0x258   :  { %8008 = vst [vmem:[#allocation71_spill] sm:$0xff] %v6886_v62  ;;  %v2366_v49 = vmul.f32 1.442695, %v2200_v34  ;;  %v1985_v41 = vpop.xlane.xlu1 %1984  ;;  %2118 = vmax.xlane.f32.xlu0 %v6886_v62  ;;  %v6889_v1 = vpop.f32.mrb[58].mxu1  ;;  %v5453_v58 = vpack.c.bf16 %v6883_v5, %v6878_v46  ;;  %5210 = vmatprep.mubr.f32.mxu1 %v95_v52 }
 0x259   :  { %8009 = vst [vmem:[#allocation72_spill] sm:$0xff] %v6889_v1  ;;  %5732 = vpow2.f32 %v2396_v37  ;;  %v2201_v40 = vsub.f32 %v6510_v53, %v1985_v41  ;;  %v2015_v48 = vpop.xlane.xlu0 %2014  ;;  %v6894_v51 = vpop.f32.mrb[59].mxu1 }
 0x25a   :  { %8010 = vst [vmem:[#allocation73_spill] sm:$0xff] %v6894_v51  ;;  %v6896_v33 = vpop.eup %5722  ;;  %v2216_v0 = vsub.f32 %v6517_v59, %v2015_v48  ;;  %5454 = vmatprep.subr.bf16.mxu0 %v5453_v58  ;;  %5734 = vpow2.f32 %v2366_v49 }
 0x25b   :  { %8011 = vst [vmem:[#allocation74_spill] sm:$0xff] %v6896_v33  ;;  %v6899_v45 = vpop.eup %5724  ;;  %v2368_v34 = vmul.f32 1.442695, %v2201_v40  ;;  %2120 = vmax.xlane.f32.xlu1 %v6881_v50  ;;  %5456 = vmatpush3.bf16.xpose.msra.mxu0 %v5453_v58 }
 0x25c   :  { %8012 = vst [vmem:[#allocation75_spill] sm:$0xff] %v6899_v45  ;;  %v2398_v62 = vmul.f32 1.442695, %v2216_v0  ;;  %v2017_v52 = vpop.xlane.xlu1 %2016  ;;  %2150 = vmax.xlane.f32.xlu0 %v6894_v51  ;;  %v5485_v53 = vpack.c.bf16 %v6899_v45, %v6896_v33  ;;  %v6906_v59 = vpop.eup %5726 }
 0x25d   :  { %5736 = vpow2.f32 %v2368_v34  ;;  %v2217_v37 = vsub.f32 %v6512_v57, %v2017_v52  ;;  %v1987_v41 = vpop.xlane.xlu0 %1986 }
 0x25e   :  { %v2202_v48 = vsub.f32 %v6527_v2, %v1987_v41  ;;  %v6909_v40 = vpop.f32.mrb[60].mxu0  ;;  %5486 = vmatprep.subr.bf16.mxu1 %v5485_v53  ;;  %5738 = vpow2.f32 %v2398_v62 }
 0x25f   :  { %8013 = vst [vmem:[#allocation76_spill] sm:$0xff] %v6909_v40  ;;  %v6911_v58 = vpop.eup %5728  ;;  %v2400_v49 = vmul.f32 1.442695, %v2217_v37  ;;  %2152 = vmax.xlane.f32.xlu1 %v6889_v1  ;;  %v6914_v0 = vpop.f32.mrb[61].mxu0  ;;  %5488 = vmatpush3.bf16.xpose.msra.mxu1 %v5485_v53 }
 0x260   :  { %8014 = vst [vmem:[#allocation77_spill] sm:$0xff] %v6914_v0  ;;  %v2370_v34 = vmul.f32 1.442695, %v2202_v48  ;;  %v1989_v51 = vpop.xlane.xlu1 %1988  ;;  %2122 = vmax.xlane.f32.xlu0 %v6914_v0  ;;  %v6917_v57 = vpop.f32.mrb[60].mxu1  ;;  %v5457_v2 = vpack.c.bf16 %v6911_v58, %v6906_v59 }
 0x261   :  { %8015 = vst [vmem:[#allocation78_spill] sm:$0xff] %v6917_v57  ;;  %5740 = vpow2.f32 %v2400_v49  ;;  %v2203_v52 = vsub.f32 %v6522_v61, %v1989_v51  ;;  %v2019_v41 = vpop.xlane.xlu0 %2018  ;;  %v6922_v37 = vpop.f32.mrb[61].mxu1  ;;  %v8019_v51 = vld [vmem:[#allocation8_spill] sm:$0xff] }
 0x262   :  { %8016 = vst [vmem:[#allocation79_spill] sm:$0xff] %v6922_v37  ;;  %v6924_v1 = vpop.eup %5730  ;;  %v2218_v53 = vsub.f32 %v6529_v3, %v2019_v41  ;;  %5458 = vmatprep.subr.bf16.mxu0 %v5457_v2  ;;  %5742 = vpow2.f32 %v2370_v34  ;;  %v8020_v41 = vld [vmem:[#allocation11_spill] sm:$0xff] }
 0x263   :  { %8017 = vst [vmem:[#allocation80_spill] sm:$0xff] %v6924_v1  ;;  %v6927_v62 = vpop.eup %5732  ;;  %v2372_v48 = vmul.f32 1.442695, %v2203_v52  ;;  %2124 = vmax.xlane.f32.xlu1 %v6909_v40  ;;  %5460 = vmatpush3.bf16.xpose.msra.mxu0 %v5457_v2 }
 0x264   :  { %8018 = vst [vmem:[#allocation81_spill] sm:$0xff] %v6927_v62  ;;  %v2402_v0 = vmul.f32 1.442695, %v2218_v53  ;;  %v2021_v50 = vpop.xlane.xlu1 %2020  ;;  %2154 = vmax.xlane.f32.xlu0 %v6922_v37  ;;  %v5489_v61 = vpack.c.bf16 %v6927_v62, %v6924_v1  ;;  %v6934_v3 = vpop.eup %5734  ;;  %v8026_v62 = vld [vmem:[#allocation12_spill] sm:$0xff] }
 0x265   :  { %5744 = vpow2.f32 %v2372_v48  ;;  %v2219_v49 = vsub.f32 %v8019_v51, %v2021_v50  ;;  %v1991_v54 = vpop.xlane.xlu0 %1990  ;;  %v8024_v51 = vld [vmem:[#allocation9_spill] sm:$0xff] }
 0x266   :  { %v2204_v9 = vsub.f32 %v8020_v41, %v1991_v54  ;;  %v6937_v52 = vpop.f32.mrb[62].mxu0  ;;  %5490 = vmatprep.subr.bf16.mxu1 %v5489_v61  ;;  %5746 = vpow2.f32 %v2402_v0 }
 0x267   :  { %8021 = vst [vmem:[#allocation8_spill] sm:$0xff] %v6937_v52  ;;  %v6939_v2 = vpop.eup %5736  ;;  %v2404_v34 = vmul.f32 1.442695, %v2219_v49  ;;  %2156 = vmax.xlane.f32.xlu1 %v6917_v57  ;;  %v6942_v53 = vpop.f32.mrb[63].mxu0  ;;  %5492 = vmatpush3.bf16.xpose.msra.mxu1 %v5489_v61 }
 0x268   :  { %8022 = vst [vmem:[#allocation11_spill] sm:$0xff] %v6942_v53  ;;  %v2374_v48 = vmul.f32 1.442695, %v2204_v9  ;;  %v1993_v37 = vpop.xlane.xlu1 %1992  ;;  %2126 = vmax.xlane.f32.xlu0 %v6942_v53  ;;  %v6945_v50 = vpop.f32.mrb[62].mxu1  ;;  %v5461_v54 = vpack.c.bf16 %v6939_v2, %v6934_v3 }
 0x269   :  { %8023 = vst [vmem:[#allocation82_spill] sm:$0xff] %v6945_v50  ;;  %5748 = vpow2.f32 %v2404_v34  ;;  %v2205_v41 = vsub.f32 %v8024_v51, %v1993_v37  ;;  %v2023_v40 = vpop.xlane.xlu0 %2022  ;;  %v6950_v49 = vpop.f32.mrb[63].mxu1  ;;  %v8027_v34 = vld [vmem:[#allocation10_spill] sm:$0xff] }
 0x26a   :  { %8025 = vst [vmem:[#allocation9_spill] sm:$0xff] %v6950_v49  ;;  %v6952_v57 = vpop.eup %5738  ;;  %v2220_v61 = vsub.f32 %v8026_v62, %v2023_v40  ;;  %5462 = vmatprep.subr.bf16.mxu0 %v5461_v54  ;;  %5750 = vpow2.f32 %v2374_v48  ;;  %v8028_v62 = vld [vmem:[#allocation15_spill] sm:$0xff] }
 0x26b   :  { %v6955_v9 = vpop.eup %5740  ;;  %v2376_v0 = vmul.f32 1.442695, %v2205_v41  ;;  %2128 = vmax.xlane.f32.xlu1 %v6937_v52  ;;  %5464 = vmatpush3.bf16.xpose.msra.mxu0 %v5461_v54 }
 0x26c   :  { %v2406_v53 = vmul.f32 1.442695, %v2220_v61  ;;  %v2025_v1 = vpop.xlane.xlu1 %2024  ;;  %2158 = vmax.xlane.f32.xlu0 %v6950_v49  ;;  %v5493_v37 = vpack.c.bf16 %v6955_v9, %v6952_v57  ;;  %v6962_v40 = vpop.eup %5742 }
 0x26d   :  { %5752 = vpow2.f32 %v2376_v0  ;;  %v2221_v51 = vsub.f32 %v8027_v34, %v2025_v1  ;;  %v1995_v45 = vpop.xlane.xlu0 %1994  ;;  %v8029_v0 = vld [vmem:[#allocation13_spill] sm:$0xff] }
 0x26e   :  { %v2206_v33 = vsub.f32 %v8028_v62, %v1995_v45  ;;  %5494 = vmatprep.subr.bf16.mxu1 %v5493_v37  ;;  %5754 = vpow2.f32 %v2406_v53  ;;  %v8030_v62 = vld [vmem:[#allocation16_spill] sm:$0xff] }
 0x26f   :  { %v6965_v41 = vpop.eup %5744  ;;  %v2408_v54 = vmul.f32 1.442695, %v2221_v51  ;;  %2160 = vmax.xlane.f32.xlu1 %v6945_v50  ;;  %5496 = vmatpush3.bf16.xpose.msra.mxu1 %v5493_v37 }
 0x270   :  { %v2378_v48 = vmul.f32 1.442695, %v2206_v33  ;;  %v1997_v61 = vpop.xlane.xlu1 %1996  ;;  %2546 = vadd.xlane.f32.xlu0 %v6626_v27  ;;  %v5465_v1 = vpack.c.bf16 %v6965_v41, %v6962_v40  ;;  %v6972_v45 = vpop.eup %5746 }
 0x271   :  { %5756 = vpow2.f32 %v2408_v54  ;;  %v2207_v34 = vsub.f32 %v8029_v0, %v1997_v61  ;;  %v2027_v49 = vpop.xlane.xlu0 %2026  ;;  %v8031_v54 = vld [vmem:[#allocation14_spill] sm:$0xff] }
 0x272   :  { %v2222_v52 = vsub.f32 %v8030_v62, %v2027_v49  ;;  %5466 = vmatprep.subr.bf16.mxu0 %v5465_v1  ;;  %5758 = vpow2.f32 %v2378_v48  ;;  %v8032_v62 = vld [vmem:[#allocation19_spill] sm:$0xff] }
 0x273   :  { %v6975_v51 = vpop.eup %5748  ;;  %v2380_v37 = vmul.f32 1.442695, %v2207_v34  ;;  %2548 = vadd.xlane.f32.xlu1 %v6623_v11  ;;  %5468 = vmatpush3.bf16.xpose.msra.mxu0 %v5465_v1  ;;  %v8033_v1 = vld [vmem:[#allocation17_spill] sm:$0xff] }
 0x274   :  { %v2410_v27 = vmul.f32 1.442695, %v2222_v52  ;;  %v2029_v33 = vpop.xlane.xlu1 %2028  ;;  %2550 = vadd.xlane.f32.xlu0 %v6654_v21  ;;  %v5497_v53 = vpack.c.bf16 %v6975_v51, %v6972_v45  ;;  %v6982_v49 = vpop.eup %5750 }
 0x275   :  { %5760 = vpow2.f32 %v2380_v37  ;;  %v2223_v61 = vsub.f32 %v8031_v54, %v2029_v33  ;;  %v1999_v0 = vpop.xlane.xlu0 %1998 }
 0x276   :  { %v2208_v50 = vsub.f32 %v8032_v62, %v1999_v0  ;;  %5498 = vmatprep.subr.bf16.mxu1 %v5497_v53  ;;  %5762 = vpow2.f32 %v2410_v27  ;;  %v8034_v0 = vld [vmem:[#allocation20_spill] sm:$0xff] }
 0x277   :  { %v6985_v34 = vpop.eup %5752  ;;  %v2412_v11 = vmul.f32 1.442695, %v2223_v61  ;;  %2552 = vadd.xlane.f32.xlu1 %v6661_v63  ;;  %5500 = vmatpush3.bf16.xpose.msra.mxu1 %v5497_v53  ;;  %v8035_v53 = vld [vmem:[#allocation18_spill] sm:$0xff] }
 0x278   :  { %v2382_v21 = vmul.f32 1.442695, %v2208_v50  ;;  %v2001_v52 = vpop.xlane.xlu1 %2000  ;;  %2554 = vadd.xlane.f32.xlu0 %v6682_v17  ;;  %v5469_v48 = vpack.c.bf16 %v6985_v34, %v6982_v49  ;;  %v6992_v54 = vpop.eup %5754 }
 0x279   :  { %5764 = vpow2.f32 %v2412_v11  ;;  %v2209_v37 = vsub.f32 %v8033_v1, %v2001_v52  ;;  %v2031_v33 = vpop.xlane.xlu0 %2030 }
 0x27a   :  { %v2224_v62 = vsub.f32 %v8034_v0, %v2031_v33  ;;  %5470 = vmatprep.subr.bf16.mxu0 %v5469_v48  ;;  %5766 = vpow2.f32 %v2382_v21  ;;  %v8036_v33 = vld [vmem:[#allocation23_spill] sm:$0xff] }
 0x27b   :  { %v6995_v61 = vpop.eup %5756  ;;  %v2384_v63 = vmul.f32 1.442695, %v2209_v37  ;;  %2556 = vadd.xlane.f32.xlu1 %v6689_v7  ;;  %5472 = vmatpush3.bf16.xpose.msra.mxu0 %v5469_v48 }
 0x27c   :  { %v2414_v17 = vmul.f32 1.442695, %v2224_v62  ;;  %v2033_v50 = vpop.xlane.xlu1 %2032  ;;  %2558 = vadd.xlane.f32.xlu0 %v6710_v25  ;;  %v5501_v27 = vpack.c.bf16 %v6995_v61, %v6992_v54  ;;  %v7002_v1 = vpop.eup %5758  ;;  %v8037_v62 = vld [vmem:[#allocation21_spill] sm:$0xff] }
 0x27d   :  { %5768 = vpow2.f32 %v2384_v63  ;;  %v2225_v11 = vsub.f32 %v8035_v53, %v2033_v50  ;;  %v2035_v52 = vpop.xlane.xlu0 %2034 }
 0x27e   :  { %v2226_v0 = vsub.f32 %v8036_v33, %v2035_v52  ;;  %5502 = vmatprep.subr.bf16.mxu1 %v5501_v27  ;;  %5770 = vpow2.f32 %v2414_v17  ;;  %v8038_v52 = vld [vmem:[#allocation24_spill] sm:$0xff] }
 0x27f   :  { %v7005_v37 = vpop.eup %5760  ;;  %v2416_v7 = vmul.f32 1.442695, %v2225_v11  ;;  %2560 = vadd.xlane.f32.xlu1 %v6717_v6  ;;  %5504 = vmatpush3.bf16.xpose.msra.mxu1 %v5501_v27 }
 0x280   :  { %v2418_v25 = vmul.f32 1.442695, %v2226_v0  ;;  %v2037_v21 = vpop.xlane.xlu1 %2036  ;;  %2562 = vadd.xlane.f32.xlu0 %v6738_v31  ;;  %v5473_v48 = vpack.c.bf16 %v7005_v37, %v7002_v1  ;;  %v7012_v53 = vpop.eup %5762  ;;  %v8039_v0 = vld [vmem:[#allocation22_spill] sm:$0xff] }
 0x281   :  { %5772 = vpow2.f32 %v2416_v7  ;;  %v2227_v63 = vsub.f32 %v8037_v62, %v2037_v21  ;;  %v2067_v50 = vpop.xlane.xlu0 %2066 }
 0x282   :  { %v2242_v33 = vsub.f32 %v8038_v52, %v2067_v50  ;;  %5474 = vmatprep.subr.bf16.mxu0 %v5473_v48  ;;  %5774 = vpow2.f32 %v2418_v25  ;;  %v8040_v50 = vld [vmem:[#allocation27_spill] sm:$0xff] }
 0x283   :  { %v7015_v11 = vpop.eup %5764  ;;  %v2420_v6 = vmul.f32 1.442695, %v2227_v63  ;;  %2564 = vadd.xlane.f32.xlu1 %v6745_v14  ;;  %5476 = vmatpush3.bf16.xpose.msra.mxu0 %v5473_v48 }
 0x284   :  { %v2450_v31 = vmul.f32 1.442695, %v2242_v33  ;;  %v2069_v17 = vpop.xlane.xlu1 %2068  ;;  %2566 = vadd.xlane.f32.xlu0 %v6766_v35  ;;  %v5505_v27 = vpack.c.bf16 %v7015_v11, %v7012_v53  ;;  %v7022_v62 = vpop.eup %5766  ;;  %v8041_v33 = vld [vmem:[#allocation25_spill] sm:$0xff] }
 0x285   :  { %5776 = vpow2.f32 %v2420_v6  ;;  %v2243_v7 = vsub.f32 %v8039_v0, %v2069_v17  ;;  %v2039_v21 = vpop.xlane.xlu0 %2038 }
 0x286   :  { %v2228_v52 = vsub.f32 %v8040_v50, %v2039_v21  ;;  %5506 = vmatprep.subr.bf16.mxu1 %v5505_v27  ;;  %5778 = vpow2.f32 %v2450_v31  ;;  %v8042_v21 = vld [vmem:[#allocation28_spill] sm:$0xff] }
 0x287   :  { %v7025_v63 = vpop.eup %5768  ;;  %v2452_v14 = vmul.f32 1.442695, %v2243_v7  ;;  %2568 = vadd.xlane.f32.xlu1 %v6773_v22  ;;  %5508 = vmatpush3.bf16.xpose.msra.mxu1 %v5505_v27 }
 0x288   :  { %v2422_v35 = vmul.f32 1.442695, %v2228_v52  ;;  %v2041_v25 = vpop.xlane.xlu1 %2040  ;;  %2570 = vadd.xlane.f32.xlu0 %v6794_v39  ;;  %v5477_v48 = vpack.c.bf16 %v7025_v63, %v7022_v62  ;;  %v7032_v0 = vpop.eup %5770  ;;  %v8043_v52 = vld [vmem:[#allocation26_spill] sm:$0xff] }
 0x289   :  { %5780 = vpow2.f32 %v2452_v14  ;;  %v2229_v6 = vsub.f32 %v8041_v33, %v2041_v25  ;;  %v2071_v17 = vpop.xlane.xlu0 %2070 }
 0x28a   :  { %v2244_v50 = vsub.f32 %v8042_v21, %v2071_v17  ;;  %5478 = vmatprep.subr.bf16.mxu0 %v5477_v48  ;;  %5782 = vpow2.f32 %v2422_v35  ;;  %v8044_v17 = vld [vmem:[#allocation30_spill] sm:$0xff]  ;;  %v94_v35 = vld [vmem:[#allocation2 + $0x88] sm:$0xff] }
 0x28b   :  { %v7035_v7 = vpop.eup %5772  ;;  %v2424_v22 = vmul.f32 1.442695, %v2229_v6  ;;  %2572 = vadd.xlane.f32.xlu1 %v6801_v30  ;;  %5480 = vmatpush3.bf16.xpose.msra.mxu0 %v5477_v48 }
 0x28c   :  { %v2454_v39 = vmul.f32 1.442695, %v2244_v50  ;;  %v2073_v31 = vpop.xlane.xlu1 %2072  ;;  %2574 = vadd.xlane.f32.xlu0 %v6822_v43  ;;  %v5509_v27 = vpack.c.bf16 %v7035_v7, %v7032_v0  ;;  %v7042_v33 = vpop.eup %5774 }
 0x28d   :  { %5784 = vpow2.f32 %v2424_v22  ;;  %v2245_v14 = vsub.f32 %v8043_v52, %v2073_v31  ;;  %v2043_v25 = vpop.xlane.xlu0 %2042  ;;  %v97_v52 = vld [vmem:[#allocation2 + $0xe0] sm:$0xff] }
 0x28e   :  { %v2230_v21 = vsub.f32 %v8044_v17, %v2043_v25  ;;  %5510 = vmatprep.subr.bf16.mxu1 %v5509_v27  ;;  %5786 = vpow2.f32 %v2454_v39 }
 0x28f   :  { %v7045_v6 = vpop.eup %5776  ;;  %v2456_v30 = vmul.f32 1.442695, %v2245_v14  ;;  %2576 = vadd.xlane.f32.xlu1 %v6827_v42  ;;  %5512 = vmatpush3.bf16.xpose.msra.mxu1 %v5509_v27 }
 0x290   :  { %v2426_v43 = vmul.f32 1.442695, %v2230_v21  ;;  %v2045_v48 = vpop.xlane.xlu1 %2044  ;;  %2578 = vadd.xlane.f32.xlu0 %v6647_v24  ;;  %v5513_v50 = vpack.c.bf16 %v7045_v6, %v7042_v33  ;;  %v7052_v25 = vpop.eup %5778  ;;  %v96_v24 = vld [vmem:[#allocation2 + $0xb8] sm:$0xff] }
 0x291   :  { %5788 = vpow2.f32 %v2456_v30  ;;  %v2231_v22 = vsub.f32 %v6596_v16, %v2045_v48  ;;  %v2075_v31 = vpop.xlane.xlu0 %2074 }
 0x292   :  { %v2246_v14 = vsub.f32 %v6603_v8, %v2075_v31  ;;  %5514 = vmatprep.subr.bf16.mxu0 %v5513_v50  ;;  %5176 = vmatmul.mubr.f32.vlgmr.msra.gmra.mrb[66].mxu0 %v94_v35  ;;  %5790 = vpow2.f32 %v2426_v43  ;;  %v8045_v8 = vld [vmem:[#allocation29_spill] sm:$0xff]  ;;  %v99_v35 = vld [vmem:[#allocation2 + $0x110] sm:$0xff] }
 0x293   :  { %v7055_v42 = vpop.eup %5780  ;;  %v2428_v39 = vmul.f32 1.442695, %v2231_v22  ;;  %2580 = vadd.xlane.f32.xlu1 %v6644_v26  ;;  %5516 = vmatpush3.bf16.xpose.msra.mxu0 %v5513_v50 }
 0x294   :  { %v2458_v27 = vmul.f32 1.442695, %v2246_v14  ;;  %v2077_v17 = vpop.xlane.xlu1 %2076  ;;  %2582 = vadd.xlane.f32.xlu0 %v6672_v4  ;;  %v5545_v16 = vpack.c.bf16 %v7055_v42, %v7052_v25  ;;  %5245 = vmatprep.mubr.f32.mxu0 %v97_v52  ;;  %v7062_v48 = vpop.eup %5782 }
 0x295   :  { %5792 = vpow2.f32 %v2428_v39  ;;  %v2247_v21 = vsub.f32 %v8045_v8, %v2077_v17  ;;  %v2047_v30 = vpop.xlane.xlu0 %2046  ;;  %v8046_v39 = vld [vmem:[#allocation32_spill] sm:$0xff] }
 0x296   :  { %v2232_v26 = vsub.f32 %v6616_v55, %v2047_v30  ;;  %5546 = vmatprep.subr.bf16.mxu1 %v5545_v16  ;;  %5211 = vmatmul.mubr.f32.vlgmr.msra.gmra.mrb[66].mxu1 %v96_v24  ;;  %5794 = vpow2.f32 %v2458_v27 }
 0x297   :  { %v7065_v43 = vpop.eup %5784  ;;  %v2460_v50 = vmul.f32 1.442695, %v2247_v21  ;;  %2584 = vadd.xlane.f32.xlu1 %v6675_v56  ;;  %5548 = vmatpush3.bf16.xpose.msra.mxu1 %v5545_v16  ;;  %v8047_v16 = vld [vmem:[#allocation31_spill] sm:$0xff] }
 0x298   :  { %v2430_v4 = vmul.f32 1.442695, %v2232_v26  ;;  %v2049_v22 = vpop.xlane.xlu1 %2048  ;;  %2586 = vadd.xlane.f32.xlu0 %v6700_v13  ;;  %v5517_v31 = vpack.c.bf16 %v7065_v43, %v7062_v48  ;;  %5280 = vmatprep.mubr.f32.mxu1 %v99_v35  ;;  %v7072_v14 = vpop.eup %5786  ;;  %v8048_v35 = vld [vmem:[#allocation35_spill] sm:$0xff] }
 0x299   :  { %5796 = vpow2.f32 %v2460_v50  ;;  %v2233_v55 = vsub.f32 %v6611_v19, %v2049_v22  ;;  %v2079_v52 = vpop.xlane.xlu0 %2078 }
 0x29a   :  { %v2248_v24 = vsub.f32 %v8046_v39, %v2079_v52  ;;  %5518 = vmatprep.subr.bf16.mxu0 %v5517_v31  ;;  %5798 = vpow2.f32 %v2430_v4 }
 0x29b   :  { %v7075_v56 = vpop.eup %5788  ;;  %v2432_v27 = vmul.f32 1.442695, %v2233_v55  ;;  %2588 = vadd.xlane.f32.xlu1 %v6703_v12  ;;  %5520 = vmatpush3.bf16.xpose.msra.mxu0 %v5517_v31  ;;  %v8049_v31 = vld [vmem:[#allocation33_spill] sm:$0xff] }
 0x29c   :  { %v2462_v13 = vmul.f32 1.442695, %v2248_v24  ;;  %v2081_v17 = vpop.xlane.xlu1 %2080  ;;  %2590 = vadd.xlane.f32.xlu0 %v6728_v60  ;;  %v5549_v19 = vpack.c.bf16 %v7075_v56, %v7072_v14  ;;  %v7082_v30 = vpop.eup %5790  ;;  %v8050_v24 = vld [vmem:[#allocation36_spill] sm:$0xff] }
 0x29d   :  { %5800 = vpow2.f32 %v2432_v27  ;;  %v2249_v8 = vsub.f32 %v8047_v16, %v2081_v17  ;;  %v2051_v21 = vpop.xlane.xlu0 %2050  ;;  %v8051_v16 = vld [vmem:[#allocation34_spill] sm:$0xff] }
 0x29e   :  { %v2234_v26 = vsub.f32 %v8048_v35, %v2051_v21  ;;  %5550 = vmatprep.subr.bf16.mxu1 %v5549_v19  ;;  %5802 = vpow2.f32 %v2462_v13 }
 0x29f   :  { %v7085_v50 = vpop.eup %5792  ;;  %v2464_v12 = vmul.f32 1.442695, %v2249_v8  ;;  %2592 = vadd.xlane.f32.xlu1 %v6731_v20  ;;  %5552 = vmatpush3.bf16.xpose.msra.mxu1 %v5549_v19 }
 0x2a0   :  { %v2434_v60 = vmul.f32 1.442695, %v2234_v26  ;;  %v2053_v4 = vpop.xlane.xlu1 %2052  ;;  %2594 = vadd.xlane.f32.xlu0 %v6756_v15  ;;  %v5521_v22 = vpack.c.bf16 %v7085_v50, %v7082_v30  ;;  %v7092_v39 = vpop.eup %5794  ;;  %v8052_v26 = vld [vmem:[#allocation39_spill] sm:$0xff] }
 0x2a1   :  { %5804 = vpow2.f32 %v2464_v12  ;;  %v2235_v55 = vsub.f32 %v8049_v31, %v2053_v4  ;;  %v2083_v52 = vpop.xlane.xlu0 %2082  ;;  %v8053_v31 = vld [vmem:[#allocation37_spill] sm:$0xff] }
 0x2a2   :  { %v2250_v27 = vsub.f32 %v8050_v24, %v2083_v52  ;;  %5522 = vmatprep.subr.bf16.mxu0 %v5521_v22  ;;  %5806 = vpow2.f32 %v2434_v60 }
 0x2a3   :  { %v7095_v17 = vpop.eup %5796  ;;  %v2436_v20 = vmul.f32 1.442695, %v2235_v55  ;;  %2596 = vadd.xlane.f32.xlu1 %v6759_v28  ;;  %5524 = vmatpush3.bf16.xpose.msra.mxu0 %v5521_v22 }
 0x2a4   :  { %v2466_v15 = vmul.f32 1.442695, %v2250_v27  ;;  %v2085_v13 = vpop.xlane.xlu1 %2084  ;;  %2598 = vadd.xlane.f32.xlu0 %v6784_v23  ;;  %v5553_v19 = vpack.c.bf16 %v7095_v17, %v7092_v39  ;;  %v7102_v35 = vpop.eup %5798  ;;  %v8054_v27 = vld [vmem:[#allocation40_spill] sm:$0xff] }
 0x2a5   :  { %5808 = vpow2.f32 %v2436_v20  ;;  %v2251_v8 = vsub.f32 %v8051_v16, %v2085_v13  ;;  %v2055_v21 = vpop.xlane.xlu0 %2054  ;;  %v8055_v16 = vld [vmem:[#allocation38_spill] sm:$0xff] }
 0x2a6   :  { %v2236_v12 = vsub.f32 %v8052_v26, %v2055_v21  ;;  %5554 = vmatprep.subr.bf16.mxu1 %v5553_v19  ;;  %5810 = vpow2.f32 %v2466_v15 }
 0x2a7   :  { %v7105_v4 = vpop.eup %5800  ;;  %v2468_v28 = vmul.f32 1.442695, %v2251_v8  ;;  %2600 = vadd.xlane.f32.xlu1 %v6787_v32  ;;  %5556 = vmatpush3.bf16.xpose.msra.mxu1 %v5553_v19 }
 0x2a8   :  { %v2438_v23 = vmul.f32 1.442695, %v2236_v12  ;;  %v2057_v60 = vpop.xlane.xlu1 %2056  ;;  %2602 = vadd.xlane.f32.xlu0 %v6812_v29  ;;  %v5525_v22 = vpack.c.bf16 %v7105_v4, %v7102_v35  ;;  %v7112_v24 = vpop.eup %5802  ;;  %v8056_v12 = vld [vmem:[#allocation43_spill] sm:$0xff] }
 0x2a9   :  { %5812 = vpow2.f32 %v2468_v28  ;;  %v2237_v55 = vsub.f32 %v8053_v31, %v2057_v60  ;;  %v2087_v52 = vpop.xlane.xlu0 %2086  ;;  %v8057_v31 = vld [vmem:[#allocation41_spill] sm:$0xff] }
 0x2aa   :  { %v2252_v20 = vsub.f32 %v8054_v27, %v2087_v52  ;;  %5526 = vmatprep.subr.bf16.mxu0 %v5525_v22  ;;  %5814 = vpow2.f32 %v2438_v23 }
 0x2ab   :  { %v7115_v13 = vpop.eup %5804  ;;  %v2440_v32 = vmul.f32 1.442695, %v2237_v55  ;;  %2604 = vadd.xlane.f32.xlu1 %v6815_v36  ;;  %5528 = vmatpush3.bf16.xpose.msra.mxu0 %v5525_v22 }
 0x2ac   :  { %v2470_v29 = vmul.f32 1.442695, %v2252_v20  ;;  %v2089_v15 = vpop.xlane.xlu1 %2088  ;;  %2606 = vadd.xlane.f32.xlu0 %v6840_v38  ;;  %v5557_v19 = vpack.c.bf16 %v7115_v13, %v7112_v24  ;;  %v7122_v26 = vpop.eup %5806  ;;  %v8058_v20 = vld [vmem:[#allocation44_spill] sm:$0xff] }
 0x2ad   :  { %5816 = vpow2.f32 %v2440_v32  ;;  %v2253_v8 = vsub.f32 %v8055_v16, %v2089_v15  ;;  %v2059_v21 = vpop.xlane.xlu0 %2058 }
 0x2ae   :  { %v2238_v28 = vsub.f32 %v8056_v12, %v2059_v21  ;;  %5558 = vmatprep.subr.bf16.mxu1 %v5557_v19  ;;  %5818 = vpow2.f32 %v2470_v29  ;;  %v8059_v29 = vld [vmem:[#allocation66_spill] sm:$0xff] }
 0x2af   :  { %v7125_v60 = vpop.eup %5808  ;;  %v2472_v36 = vmul.f32 1.442695, %v2253_v8  ;;  %2608 = vadd.xlane.f32.xlu1 %v6843_v10  ;;  %5560 = vmatpush3.bf16.xpose.msra.mxu1 %v5557_v19  ;;  %v8060_v8 = vld [vmem:[#allocation42_spill] sm:$0xff] }
 0x2b0   :  { %v2442_v38 = vmul.f32 1.442695, %v2238_v28  ;;  %v2061_v23 = vpop.xlane.xlu1 %2060  ;;  %2610 = vadd.xlane.f32.xlu0 %v6850_v47  ;;  %v5529_v22 = vpack.c.bf16 %v7125_v60, %v7122_v26  ;;  %v7132_v27 = vpop.eup %5810 }
 0x2b1   :  { %5820 = vpow2.f32 %v2472_v36  ;;  %v2239_v55 = vsub.f32 %v8057_v31, %v2061_v23  ;;  %v2091_v52 = vpop.xlane.xlu0 %2090  ;;  %v8061_v36 = vld [vmem:[#allocation47_spill] sm:$0xff] }
 0x2b2   :  { %v2254_v32 = vsub.f32 %v8058_v20, %v2091_v52  ;;  %5530 = vmatprep.subr.bf16.mxu0 %v5529_v22  ;;  %5822 = vpow2.f32 %v2442_v38  ;;  %v8062_v52 = vld [vmem:[#allocation45_spill] sm:$0xff] }
 0x2b3   :  { %v7135_v15 = vpop.eup %5812  ;;  %v2444_v10 = vmul.f32 1.442695, %v2239_v55  ;;  %2612 = vadd.xlane.f32.xlu1 %v8059_v29  ;;  %5532 = vmatpush3.bf16.xpose.msra.mxu0 %v5529_v22  ;;  %v8063_v29 = vld [vmem:[#allocation48_spill] sm:$0xff] }
 0x2b4   :  { %v2474_v47 = vmul.f32 1.442695, %v2254_v32  ;;  %v2093_v19 = vpop.xlane.xlu1 %2092  ;;  %2614 = vadd.xlane.f32.xlu0 %v6878_v46  ;;  %v5561_v16 = vpack.c.bf16 %v7135_v15, %v7132_v27  ;;  %v7142_v28 = vpop.eup %5814 }
 0x2b5   :  { %5824 = vpow2.f32 %v2444_v10  ;;  %v2255_v21 = vsub.f32 %v8060_v8, %v2093_v19  ;;  %v2063_v12 = vpop.xlane.xlu0 %2062 }
 0x2b6   :  { %v2240_v23 = vsub.f32 %v8061_v36, %v2063_v12  ;;  %5562 = vmatprep.subr.bf16.mxu1 %v5561_v16  ;;  %5826 = vpow2.f32 %v2474_v47 }
 0x2b7   :  { %v7145_v31 = vpop.eup %5816  ;;  %v2476_v22 = vmul.f32 1.442695, %v2255_v21  ;;  %2616 = vadd.xlane.f32.xlu1 %v6883_v5  ;;  %5564 = vmatpush3.bf16.xpose.msra.mxu1 %v5561_v16  ;;  %v8064_v21 = vld [vmem:[#allocation46_spill] sm:$0xff] }
 0x2b8   :  { %v2446_v46 = vmul.f32 1.442695, %v2240_v23  ;;  %v2065_v38 = vpop.xlane.xlu1 %2064  ;;  %2618 = vadd.xlane.f32.xlu0 %v6906_v59  ;;  %v5533_v55 = vpack.c.bf16 %v7145_v31, %v7142_v28  ;;  %v7152_v10 = vpop.eup %5818 }
 0x2b9   :  { %5828 = vpow2.f32 %v2476_v22  ;;  %v2241_v20 = vsub.f32 %v8062_v52, %v2065_v38  ;;  %v2095_v32 = vpop.xlane.xlu0 %2094  ;;  %v8065_v22 = vld [vmem:[#allocation51_spill] sm:$0xff] }
 0x2ba   :  { %v2256_v19 = vsub.f32 %v8063_v29, %v2095_v32  ;;  %5534 = vmatprep.subr.bf16.mxu0 %v5533_v55  ;;  %5830 = vpow2.f32 %v2446_v46 }
 0x2bb   :  { %v7155_v8 = vpop.eup %5820  ;;  %v2448_v5 = vmul.f32 1.442695, %v2241_v20  ;;  %2620 = vadd.xlane.f32.xlu1 %v6911_v58  ;;  %5536 = vmatpush3.bf16.xpose.msra.mxu0 %v5533_v55  ;;  %v8066_v20 = vld [vmem:[#allocation49_spill] sm:$0xff] }
 0x2bc   :  { %v2478_v59 = vmul.f32 1.442695, %v2256_v19  ;;  %v2097_v47 = vpop.xlane.xlu1 %2096  ;;  %2622 = vadd.xlane.f32.xlu0 %v6934_v3  ;;  %v5565_v16 = vpack.c.bf16 %v7155_v8, %v7152_v10  ;;  %v7162_v23 = vpop.eup %5822 }
 0x2bd   :  { %5832 = vpow2.f32 %v2448_v5  ;;  %v2257_v12 = vsub.f32 %v8064_v21, %v2097_v47  ;;  %v2099_v36 = vpop.xlane.xlu0 %2098  ;;  %v8067_v5 = vld [vmem:[#allocation52_spill] sm:$0xff] }
 0x2be   :  { %v2258_v38 = vsub.f32 %v8065_v22, %v2099_v36  ;;  %5566 = vmatprep.subr.bf16.mxu1 %v5565_v16  ;;  %5834 = vpow2.f32 %v2478_v59 }
 0x2bf   :  { %v7165_v52 = vpop.eup %5824  ;;  %v2480_v58 = vmul.f32 1.442695, %v2257_v12  ;;  %2624 = vadd.xlane.f32.xlu1 %v6939_v2  ;;  %5568 = vmatpush3.bf16.xpose.msra.mxu1 %v5565_v16  ;;  %v8068_v12 = vld [vmem:[#allocation50_spill] sm:$0xff] }
 0x2c0   :  { %v2482_v3 = vmul.f32 1.442695, %v2258_v38  ;;  %v2101_v46 = vpop.xlane.xlu1 %2100  ;;  %2626 = vadd.xlane.f32.xlu0 %v6962_v40  ;;  %v5537_v55 = vpack.c.bf16 %v7165_v52, %v7162_v23  ;;  %v7172_v19 = vpop.eup %5826 }
 0x2c1   :  { %5836 = vpow2.f32 %v2480_v58  ;;  %v2259_v32 = vsub.f32 %v8066_v20, %v2101_v46  ;;  %v2131_v29 = vpop.xlane.xlu0 %2130  ;;  %v8070_v58 = vld [vmem:[#allocation55_spill] sm:$0xff] }
 0x2c2   :  { %v2274_v47 = vsub.f32 %v8067_v5, %v2131_v29  ;;  %5538 = vmatprep.subr.bf16.mxu0 %v5537_v55  ;;  %5838 = vpow2.f32 %v2482_v3 }
 0x2c3   :  { %v7175_v21 = vpop.eup %5828  ;;  %v2484_v2 = vmul.f32 1.442695, %v2259_v32  ;;  %2628 = vadd.xlane.f32.xlu1 %v6965_v41  ;;  %5540 = vmatpush3.bf16.xpose.msra.mxu0 %v5537_v55  ;;  %v8072_v32 = vld [vmem:[#allocation53_spill] sm:$0xff] }
 0x2c4   :  { %v2514_v40 = vmul.f32 1.442695, %v2274_v47  ;;  %v2133_v59 = vpop.xlane.xlu1 %2132  ;;  %2630 = vadd.xlane.f32.xlu0 %v6982_v49  ;;  %v5569_v16 = vpack.c.bf16 %v7175_v21, %v7172_v19  ;;  %v7182_v38 = vpop.eup %5830 }
 0x2c5   :  { %5840 = vpow2.f32 %v2484_v2  ;;  %v2275_v36 = vsub.f32 %v8068_v12, %v2133_v59  ;;  %v2103_v22 = vpop.xlane.xlu0 %2102  ;;  %8069 = vst [vmem:[#allocation12_spill] sm:$0xff] %v7182_v38  ;;  %v8074_v2 = vld [vmem:[#allocation56_spill] sm:$0xff] }
 0x2c6   :  { %v2260_v46 = vsub.f32 %v8070_v58, %v2103_v22  ;;  %5570 = vmatprep.subr.bf16.mxu1 %v5569_v16  ;;  %5842 = vpow2.f32 %v2514_v40 }
 0x2c7   :  { %v7185_v20 = vpop.eup %5832  ;;  %v2516_v41 = vmul.f32 1.442695, %v2275_v36  ;;  %2632 = vadd.xlane.f32.xlu1 %v6985_v34  ;;  %5572 = vmatpush3.bf16.xpose.msra.mxu1 %v5569_v16  ;;  %v8076_v36 = vld [vmem:[#allocation54_spill] sm:$0xff] }
 0x2c8   :  { %8071 = vst [vmem:[#allocation10_spill] sm:$0xff] %v7185_v20  ;;  %v2486_v49 = vmul.f32 1.442695, %v2260_v46  ;;  %v2105_v3 = vpop.xlane.xlu1 %2104  ;;  %2634 = vadd.xlane.f32.xlu0 %v7002_v1  ;;  %v5541_v55 = vpack.c.bf16 %v7185_v20, %v7182_v38  ;;  %v7192_v47 = vpop.eup %5834  ;;  %v104_v38 = vld [vmem:[#allocation2 + $0x178] sm:$0xff] }
 0x2c9   :  { %5844 = vpow2.f32 %v2516_v41  ;;  %v2261_v29 = vsub.f32 %v8072_v32, %v2105_v3  ;;  %v2135_v5 = vpop.xlane.xlu0 %2134  ;;  %8073 = vst [vmem:[#allocation15_spill] sm:$0xff] %v7192_v47  ;;  %v8077_v41 = vld [vmem:[#allocation59_spill] sm:$0xff] }
 0x2ca   :  { %v2276_v59 = vsub.f32 %v8074_v2, %v2135_v5  ;;  %5542 = vmatprep.subr.bf16.mxu0 %v5541_v55  ;;  %5846 = vpow2.f32 %v2486_v49  ;;  %v98_v49 = vld [vmem:[#allocation2 + $0xe8] sm:$0xff] }
 0x2cb   :  { %v7195_v12 = vpop.eup %5836  ;;  %v2488_v34 = vmul.f32 1.442695, %v2261_v29  ;;  %2636 = vadd.xlane.f32.xlu1 %v7005_v37  ;;  %5544 = vmatpush3.bf16.xpose.msra.mxu0 %v5541_v55  ;;  %v8078_v5 = vld [vmem:[#allocation57_spill] sm:$0xff] }
 0x2cc   :  { %8075 = vst [vmem:[#allocation13_spill] sm:$0xff] %v7195_v12  ;;  %v2518_v1 = vmul.f32 1.442695, %v2276_v59  ;;  %v2137_v40 = vpop.xlane.xlu1 %2136  ;;  %2638 = vadd.xlane.f32.xlu0 %v7022_v62  ;;  %v5573_v16 = vpack.c.bf16 %v7195_v12, %v7192_v47  ;;  %v7202_v46 = vpop.eup %5838 }
 0x2cd   :  { %5848 = vpow2.f32 %v2488_v34  ;;  %v2277_v22 = vsub.f32 %v8076_v36, %v2137_v40  ;;  %v2107_v58 = vpop.xlane.xlu0 %2106  ;;  %v101_v34 = vld [vmem:[#allocation2 + $0x140] sm:$0xff] }
 0x2ce   :  { %v2262_v3 = vsub.f32 %v8077_v41, %v2107_v58  ;;  %5574 = vmatprep.subr.bf16.mxu1 %v5573_v16  ;;  %5850 = vpow2.f32 %v2518_v1  ;;  %v8079_v36 = vld [vmem:[#allocation60_spill] sm:$0xff]  ;;  %v8080_v41 = vld [vmem:[#allocation74_spill] sm:$0xff] }
 0x2cf   :  { %v7205_v32 = vpop.eup %5840  ;;  %v2520_v37 = vmul.f32 1.442695, %v2277_v22  ;;  %2640 = vadd.xlane.f32.xlu1 %v7025_v63  ;;  %5576 = vmatpush3.bf16.xpose.msra.mxu1 %v5573_v16 }
 0x2d0   :  { %v2490_v62 = vmul.f32 1.442695, %v2262_v3  ;;  %v2109_v55 = vpop.xlane.xlu1 %2108  ;;  %2642 = vadd.xlane.f32.xlu0 %v6868_v18  ;;  %v5577_v29 = vpack.c.bf16 %v7205_v32, %v7202_v46  ;;  %v7212_v40 = vpop.eup %5842  ;;  %v100_v18 = vld [vmem:[#allocation2 + $0x118] sm:$0xff] }
 0x2d1   :  { %5852 = vpow2.f32 %v2520_v37  ;;  %v2263_v2 = vsub.f32 %v8078_v5, %v2109_v55  ;;  %v2139_v59 = vpop.xlane.xlu0 %2138  ;;  %v8081_v37 = vld [vmem:[#allocation58_spill] sm:$0xff] }
 0x2d2   :  { %v2278_v22 = vsub.f32 %v8079_v36, %v2139_v59  ;;  %5578 = vmatprep.subr.bf16.mxu0 %v5577_v29  ;;  %5246 = vmatmul.mubr.f32.vlgmr.msra.gmra.mrb[68].mxu0 %v98_v49  ;;  %5854 = vpow2.f32 %v2490_v62  ;;  %v103_v5 = vld [vmem:[#allocation2 + $0x170] sm:$0xff]  ;;  %v8083_v36 = vld [vmem:[#allocation75_spill] sm:$0xff] }
 0x2d3   :  { %v7215_v63 = vpop.eup %5844  ;;  %v2492_v1 = vmul.f32 1.442695, %v2263_v2  ;;  %2644 = vadd.xlane.f32.xlu1 %v6871_v44  ;;  %5580 = vmatpush3.bf16.xpose.msra.mxu0 %v5577_v29  ;;  %v8082_v2 = vld [vmem:[#allocation62_spill] sm:$0xff] }
 0x2d4   :  { %v2522_v16 = vmul.f32 1.442695, %v2278_v22  ;;  %v2141_v58 = vpop.xlane.xlu1 %2140  ;;  %2646 = vadd.xlane.f32.xlu0 %v8080_v41  ;;  %v5609_v3 = vpack.c.bf16 %v7215_v63, %v7212_v40  ;;  %5315 = vmatprep.mubr.f32.mxu0 %v101_v34  ;;  %v7222_v59 = vpop.eup %5846  ;;  %v8085_v41 = vld [vmem:[#allocation61_spill] sm:$0xff] }
 0x2d5   :  { %5856 = vpow2.f32 %v2492_v1  ;;  %v2279_v55 = vsub.f32 %v8081_v37, %v2141_v58  ;;  %v2111_v49 = vpop.xlane.xlu0 %2110  ;;  %v8084_v1 = vld [vmem:[#allocation80_spill] sm:$0xff] }
 0x2d6   :  { %v2264_v44 = vsub.f32 %v8082_v2, %v2111_v49  ;;  %5610 = vmatprep.subr.bf16.mxu1 %v5609_v3  ;;  %5281 = vmatmul.mubr.f32.vlgmr.msra.gmra.mrb[68].mxu1 %v100_v18  ;;  %5858 = vpow2.f32 %v2522_v16  ;;  %v8086_v2 = vld [vmem:[#allocation64_spill] sm:$0xff] }
 0x2d7   :  { %v7225_v62 = vpop.eup %5848  ;;  %v2524_v29 = vmul.f32 1.442695, %v2279_v55  ;;  %2648 = vadd.xlane.f32.xlu1 %v8083_v36  ;;  %5612 = vmatpush3.bf16.xpose.msra.mxu1 %v5609_v3  ;;  %v8087_v3 = vld [vmem:[#allocation81_spill] sm:$0xff] }
 0x2d8   :  { %v2494_v22 = vmul.f32 1.442695, %v2264_v44  ;;  %v2113_v34 = vpop.xlane.xlu1 %2112  ;;  %2650 = vadd.xlane.f32.xlu0 %v8084_v1  ;;  %v5581_v58 = vpack.c.bf16 %v7225_v62, %v7222_v59  ;;  %5350 = vmatprep.mubr.f32.mxu1 %v103_v5  ;;  %v7232_v18 = vpop.eup %5850 }
 0x2d9   :  { %5860 = vpow2.f32 %v2524_v29  ;;  %v2265_v37 = vsub.f32 %v8085_v41, %v2113_v34  ;;  %v2143_v49 = vpop.xlane.xlu0 %2142  ;;  %v8088_v29 = vld [vmem:[#allocation63_spill] sm:$0xff] }
 0x2da   :  { %v2280_v55 = vsub.f32 %v8086_v2, %v2143_v49  ;;  %5582 = vmatprep.subr.bf16.mxu0 %v5581_v58  ;;  %5862 = vpow2.f32 %v2494_v22  ;;  %v8089_v2 = vld [vmem:[#allocation67_spill] sm:$0xff] }
 0x2db   :  { %v7235_v36 = vpop.eup %5852  ;;  %v2496_v16 = vmul.f32 1.442695, %v2265_v37  ;;  %2652 = vadd.xlane.f32.xlu1 %v8087_v3  ;;  %5584 = vmatpush3.bf16.xpose.msra.mxu0 %v5581_v58 }
 0x2dc   :  { %v2526_v44 = vmul.f32 1.442695, %v2280_v55  ;;  %v2145_v1 = vpop.xlane.xlu1 %2144  ;;  %2654 = vadd.xlane.f32.xlu0 %v6952_v57  ;;  %v5613_v5 = vpack.c.bf16 %v7235_v36, %v7232_v18  ;;  %v7242_v49 = vpop.eup %5854 }
 0x2dd   :  { %5864 = vpow2.f32 %v2496_v16  ;;  %v2281_v34 = vsub.f32 %v8088_v29, %v2145_v1  ;;  %v2115_v41 = vpop.xlane.xlu0 %2114  ;;  %v8090_v16 = vld [vmem:[#allocation65_spill] sm:$0xff] }
 0x2de   :  { %v2266_v12 = vsub.f32 %v8089_v2, %v2115_v41  ;;  %5614 = vmatprep.subr.bf16.mxu1 %v5613_v5  ;;  %5866 = vpow2.f32 %v2526_v44  ;;  %v8091_v41 = vld [vmem:[#allocation69_spill] sm:$0xff] }
 0x2df   :  { %v7245_v37 = vpop.eup %5856  ;;  %v2528_v58 = vmul.f32 1.442695, %v2281_v34  ;;  %2656 = vadd.xlane.f32.xlu1 %v6955_v9  ;;  %5616 = vmatpush3.bf16.xpose.msra.mxu1 %v5613_v5  ;;  %v8092_v5 = vld [vmem:[#allocation68_spill] sm:$0xff] }
 0x2e0   :  { %v2498_v57 = vmul.f32 1.442695, %v2266_v12  ;;  %v2117_v22 = vpop.xlane.xlu1 %2116  ;;  %2658 = vadd.xlane.f32.xlu0 %v6972_v45  ;;  %v5585_v55 = vpack.c.bf16 %v7245_v37, %v7242_v49  ;;  %v7252_v29 = vpop.eup %5858 }
 0x2e1   :  { %5868 = vpow2.f32 %v2528_v58  ;;  %v2267_v3 = vsub.f32 %v8090_v16, %v2117_v22  ;;  %v2147_v1 = vpop.xlane.xlu0 %2146 }
 0x2e2   :  { %v2282_v2 = vsub.f32 %v8091_v41, %v2147_v1  ;;  %5586 = vmatprep.subr.bf16.mxu0 %v5585_v55  ;;  %5870 = vpow2.f32 %v2498_v57  ;;  %v8093_v1 = vld [vmem:[#allocation71_spill] sm:$0xff] }
 0x2e3   :  { %v7255_v34 = vpop.eup %5860  ;;  %v2500_v9 = vmul.f32 1.442695, %v2267_v3  ;;  %2660 = vadd.xlane.f32.xlu1 %v6975_v51  ;;  %5588 = vmatpush3.bf16.xpose.msra.mxu0 %v5585_v55 }
 0x2e4   :  { %v2530_v45 = vmul.f32 1.442695, %v2282_v2  ;;  %v2149_v12 = vpop.xlane.xlu1 %2148  ;;  %2662 = vadd.xlane.f32.xlu0 %v6992_v54  ;;  %v5617_v44 = vpack.c.bf16 %v7255_v34, %v7252_v29  ;;  %v7262_v16 = vpop.eup %5862  ;;  %v8094_v2 = vld [vmem:[#allocation70_spill] sm:$0xff] }
 0x2e5   :  { %5872 = vpow2.f32 %v2500_v9  ;;  %v2283_v58 = vsub.f32 %v8092_v5, %v2149_v12  ;;  %v2119_v22 = vpop.xlane.xlu0 %2118 }
 0x2e6   :  { %v2268_v41 = vsub.f32 %v8093_v1, %v2119_v22  ;;  %5618 = vmatprep.subr.bf16.mxu1 %v5617_v44  ;;  %5874 = vpow2.f32 %v2530_v45  ;;  %v8095_v22 = vld [vmem:[#allocation73_spill] sm:$0xff] }
 0x2e7   :  { %v7265_v3 = vpop.eup %5864  ;;  %v2532_v51 = vmul.f32 1.442695, %v2283_v58  ;;  %2664 = vadd.xlane.f32.xlu1 %v6995_v61  ;;  %5620 = vmatpush3.bf16.xpose.msra.mxu1 %v5617_v44 }
 0x2e8   :  { %v2502_v54 = vmul.f32 1.442695, %v2268_v41  ;;  %v2121_v57 = vpop.xlane.xlu1 %2120  ;;  %2666 = vadd.xlane.f32.xlu0 %v7012_v53  ;;  %v5589_v55 = vpack.c.bf16 %v7265_v3, %v7262_v16  ;;  %v7272_v5 = vpop.eup %5866  ;;  %v8096_v41 = vld [vmem:[#allocation72_spill] sm:$0xff] }
 0x2e9   :  { %5876 = vpow2.f32 %v2532_v51  ;;  %v2269_v9 = vsub.f32 %v8094_v2, %v2121_v57  ;;  %v2151_v12 = vpop.xlane.xlu0 %2150 }
 0x2ea   :  { %v2284_v1 = vsub.f32 %v8095_v22, %v2151_v12  ;;  %5590 = vmatprep.subr.bf16.mxu0 %v5589_v55  ;;  %5878 = vpow2.f32 %v2502_v54  ;;  %v8097_v12 = vld [vmem:[#allocation77_spill] sm:$0xff] }
 0x2eb   :  { %v7275_v58 = vpop.eup %5868  ;;  %v2504_v61 = vmul.f32 1.442695, %v2269_v9  ;;  %2668 = vadd.xlane.f32.xlu1 %v7015_v11  ;;  %5592 = vmatpush3.bf16.xpose.msra.mxu0 %v5589_v55 }
 0x2ec   :  { %v2534_v53 = vmul.f32 1.442695, %v2284_v1  ;;  %v2153_v45 = vpop.xlane.xlu1 %2152  ;;  %2670 = vadd.xlane.f32.xlu0 %v7032_v0  ;;  %v5621_v44 = vpack.c.bf16 %v7275_v58, %v7272_v5  ;;  %v7282_v2 = vpop.eup %5870  ;;  %v8098_v1 = vld [vmem:[#allocation76_spill] sm:$0xff] }
 0x2ed   :  { %5880 = vpow2.f32 %v2504_v61  ;;  %v2285_v51 = vsub.f32 %v8096_v41, %v2153_v45  ;;  %v2123_v57 = vpop.xlane.xlu0 %2122 }
 0x2ee   :  { %v2270_v22 = vsub.f32 %v8097_v12, %v2123_v57  ;;  %5622 = vmatprep.subr.bf16.mxu1 %v5621_v44  ;;  %5882 = vpow2.f32 %v2534_v53  ;;  %v8099_v57 = vld [vmem:[#allocation79_spill] sm:$0xff] }
 0x2ef   :  { %v7285_v9 = vpop.eup %5872  ;;  %v2536_v11 = vmul.f32 1.442695, %v2285_v51  ;;  %2672 = vadd.xlane.f32.xlu1 %v7035_v7  ;;  %5624 = vmatpush3.bf16.xpose.msra.mxu1 %v5621_v44 }
 0x2f0   :  { %v2506_v0 = vmul.f32 1.442695, %v2270_v22  ;;  %v2125_v54 = vpop.xlane.xlu1 %2124  ;;  %2674 = vadd.xlane.f32.xlu0 %v7042_v33  ;;  %v5593_v55 = vpack.c.bf16 %v7285_v9, %v7282_v2  ;;  %v7292_v41 = vpop.eup %5874  ;;  %v8100_v22 = vld [vmem:[#allocation78_spill] sm:$0xff] }
 0x2f1   :  { %5884 = vpow2.f32 %v2536_v11  ;;  %v2271_v61 = vsub.f32 %v8098_v1, %v2125_v54  ;;  %v2155_v45 = vpop.xlane.xlu0 %2154 }
 0x2f2   :  { %v2286_v12 = vsub.f32 %v8099_v57, %v2155_v45  ;;  %5594 = vmatprep.subr.bf16.mxu0 %v5593_v55  ;;  %5886 = vpow2.f32 %v2506_v0  ;;  %v8101_v45 = vld [vmem:[#allocation11_spill] sm:$0xff] }
 0x2f3   :  { %v7295_v51 = vpop.eup %5876  ;;  %v2508_v7 = vmul.f32 1.442695, %v2271_v61  ;;  %2676 = vadd.xlane.f32.xlu1 %v7045_v6  ;;  %5596 = vmatpush3.bf16.xpose.msra.mxu0 %v5593_v55 }
 0x2f4   :  { %v2538_v33 = vmul.f32 1.442695, %v2286_v12  ;;  %v2157_v53 = vpop.xlane.xlu1 %2156  ;;  %2678 = vadd.xlane.f32.xlu0 %v7062_v48  ;;  %v5625_v44 = vpack.c.bf16 %v7295_v51, %v7292_v41  ;;  %v7302_v1 = vpop.eup %5878  ;;  %v8102_v12 = vld [vmem:[#allocation8_spill] sm:$0xff] }
 0x2f5   :  { %5888 = vpow2.f32 %v2508_v7  ;;  %v2287_v11 = vsub.f32 %v8100_v22, %v2157_v53  ;;  %v2127_v54 = vpop.xlane.xlu0 %2126 }
 0x2f6   :  { %v2272_v57 = vsub.f32 %v8101_v45, %v2127_v54  ;;  %5626 = vmatprep.subr.bf16.mxu1 %v5625_v44  ;;  %5890 = vpow2.f32 %v2538_v33  ;;  %v8103_v54 = vld [vmem:[#allocation9_spill] sm:$0xff] }
 0x2f7   :  { %v7305_v61 = vpop.eup %5880  ;;  %v2540_v6 = vmul.f32 1.442695, %v2287_v11  ;;  %2680 = vadd.xlane.f32.xlu1 %v7065_v43  ;;  %5628 = vmatpush3.bf16.xpose.msra.mxu1 %v5625_v44 }
 0x2f8   :  { %v2510_v48 = vmul.f32 1.442695, %v2272_v57  ;;  %v2129_v0 = vpop.xlane.xlu1 %2128  ;;  %2682 = vadd.xlane.f32.xlu0 %v7082_v30  ;;  %v5597_v55 = vpack.c.bf16 %v7305_v61, %v7302_v1  ;;  %v7312_v22 = vpop.eup %5882  ;;  %v8104_v57 = vld [vmem:[#allocation82_spill] sm:$0xff] }
 0x2f9   :  { %5892 = vpow2.f32 %v2540_v6  ;;  %v2273_v7 = vsub.f32 %v8102_v12, %v2129_v0  ;;  %v2159_v53 = vpop.xlane.xlu0 %2158  ;;  %v3658_v0 = vlaneseq }
 0x2fa   :  { %v2288_v45 = vsub.f32 %v8103_v54, %v2159_v53  ;;  %5598 = vmatprep.subr.bf16.mxu0 %v5597_v55  ;;  %5894 = vpow2.f32 %v2510_v48 }
 0x2fb   :  { %v7315_v11 = vpop.eup %5884  ;;  %v2512_v43 = vmul.f32 1.442695, %v2273_v7  ;;  %2684 = vadd.xlane.f32.xlu1 %v7085_v50  ;;  %5600 = vmatpush3.bf16.xpose.msra.mxu0 %v5597_v55  ;;  %v7330_v55 = vand.u32 127, %v3658_v0 }
 0x2fc   :  { %v2542_v30 = vmul.f32 1.442695, %v2288_v45  ;;  %v2161_v33 = vpop.xlane.xlu1 %2160  ;;  %2686 = vadd.xlane.f32.xlu0 %v7102_v35  ;;  %v5629_v44 = vpack.c.bf16 %v7315_v11, %v7312_v22  ;;  %v7322_v53 = vpop.eup %5886 }
 0x2fd   :  { %5896 = vpow2.f32 %v2512_v43  ;;  %v2289_v6 = vsub.f32 %v8104_v57, %v2161_v33  ;;  %v2547_v12 = vpop.xlane.xlu0 %2546  ;;  %v3664_v33 = vadd.s32 4294967288, %v7330_v55 }
 0x2fe   :  { %5630 = vmatprep.subr.bf16.mxu1 %v5629_v44  ;;  %5898 = vpow2.f32 %v2542_v30  ;;  %v7340_v30 = vshrl.u32 %v3658_v0, 7  ;;  %v3685_v0 = vadd.s32 4294967264, %v7330_v55 }
 0x2ff   :  { %v7324_v7 = vpop.eup %5888  ;;  %v2544_v50 = vmul.f32 1.442695, %v2289_v6  ;;  %2688 = vadd.xlane.f32.xlu1 %v7105_v4  ;;  %5632 = vmatpush3.bf16.xpose.msra.mxu1 %v5629_v44  ;;  %5900 = vrcp.f32 %v2547_v12  ;;  %v3671_v6 = vadd.s32 4294967280, %v7330_v55 }
 0x300   :  { %v2549_v35 = vpop.xlane.xlu1 %2548  ;;  %2690 = vadd.xlane.f32.xlu0 %v7122_v26  ;;  %v5601_v48 = vpack.c.bf16 %v7324_v7, %v7322_v53  ;;  %v7332_v45 = vpop.eup %5890 }
 0x301   :  { %5902 = vpow2.f32 %v2544_v50  ;;  %v2551_v54 = vpop.xlane.xlu0 %2550 }
 0x302   :  { %5904 = vrcp.f32 %v2549_v35  ;;  %5602 = vmatprep.subr.bf16.mxu0 %v5601_v48 }
 0x303   :  { %v7334_v43 = vpop.eup %5892  ;;  %5906 = vrcp.f32 %v2551_v54  ;;  %2692 = vadd.xlane.f32.xlu1 %v7125_v60  ;;  %5604 = vmatpush3.bf16.xpose.msra.mxu0 %v5601_v48  ;;  %v7358_v48 = vsub.s32 %v7330_v55, %v7340_v30  ;;  %v7361_v54 = vsub.s32 %v3664_v33, %v7340_v30  ;;  %v7373_v33 = vsub.s32 %v3685_v0, %v7340_v30 }
 0x304   :  { %v2553_v4 = vpop.xlane.xlu1 %2552  ;;  %2694 = vadd.xlane.f32.xlu0 %v7142_v28  ;;  %v5633_v26 = vpack.c.bf16 %v7334_v43, %v7332_v45  ;;  %v7343_v57 = vpop.eup %5894  ;;  %v3678_v28 = vadd.s32 4294967272, %v7330_v55 }
 0x305   :  { %5908 = vrcp.f32 %v2553_v4  ;;  %v2555_v44 = vpop.xlane.xlu0 %2554  ;;  %8105 = vst [vmem:[#allocation16_spill] sm:$0xff] %v7343_v57 }
 0x306   :  { %5910 = vrcp.f32 %v2555_v44  ;;  %5634 = vmatprep.subr.bf16.mxu1 %v5633_v26 }
 0x307   :  { %v7346_v60 = vpop.eup %5896  ;;  %2696 = vadd.xlane.f32.xlu1 %v7145_v31  ;;  %5636 = vmatpush3.bf16.xpose.msra.mxu1 %v5633_v26  ;;  %v7364_v26 = vsub.s32 %v3671_v6, %v7340_v30 }
 0x308   :  { %8106 = vst [vmem:[#allocation14_spill] sm:$0xff] %v7346_v60  ;;  %v2557_v12 = vpop.xlane.xlu1 %2556  ;;  %2698 = vadd.xlane.f32.xlu0 %v7162_v23  ;;  %v5605_v50 = vpack.c.bf16 %v7346_v60, %v7343_v57  ;;  %v7354_v35 = vpop.eup %5898  ;;  %v7370_v60 = vsub.s32 %v3678_v28, %v7340_v30 }
 0x309   :  { %8107 = vst [vmem:[#allocation19_spill] sm:$0xff] %v7354_v35  ;;  %5912 = vrcp.f32 %v2557_v12  ;;  %v2559_v31 = vpop.xlane.xlu0 %2558  ;;  %v5901_v4 = vpop.eup %5900  ;;  %v3692_v12 = vadd.s32 4294967256, %v7330_v55 }
 0x30a   :  { %5914 = vrcp.f32 %v2559_v31  ;;  %5606 = vmatprep.subr.bf16.mxu0 %v5605_v50  ;;  %v3663_v57 = vrot.slane %v5901_v4, %v7358_v48 }
 0x30b   :  { %v7366_v23 = vpop.eup %5902  ;;  %2706 = vadd.xlane.f32.xlu1 %v7052_v25  ;;  %5608 = vmatpush3.bf16.xpose.msra.mxu0 %v5605_v50  ;;  %v3699_v50 = vadd.s32 4294967248, %v7330_v55 }
 0x30c   :  { %8108 = vst [vmem:[#allocation17_spill] sm:$0xff] %v7366_v23  ;;  %v5905_v44 = vpop.eup %5904  ;;  %v2561_v20 = vpop.xlane.xlu1 %2560  ;;  %2708 = vadd.xlane.f32.xlu0 %v7055_v42  ;;  %v5637_v6 = vpack.c.bf16 %v7366_v23, %v7354_v35  ;;  %v102_v23 = vld [vmem:[#allocation2 + $0x148] sm:$0xff]  ;;  %v7387_v35 = vsub.s32 %v3692_v12, %v7340_v30 }
 0x30d   :  { %v5907_v31 = vpop.eup %5906  ;;  %v3668_v25 = vrot.slane %v5905_v44, %v7361_v54  ;;  %5916 = vrcp.f32 %v2561_v20  ;;  %v2563_v28 = vpop.xlane.xlu0 %2562  ;;  %v3706_v20 = vadd.s32 4294967240, %v7330_v55 }
 0x30e   :  { %v3675_v0 = vrot.slane %v5907_v31, %v7364_v26  ;;  %5918 = vrcp.f32 %v2563_v28  ;;  %5638 = vmatprep.subr.bf16.mxu1 %v5637_v6  ;;  %v3713_v31 = vadd.s32 4294967232, %v7330_v55 }
 0x30f   :  { %v5909_v47 = vpop.eup %5908  ;;  %v3670_v42 = vsel %vm3669_vm1, %v3668_v25, %v3663_v57  ;;  %2738 = vadd.xlane.f32.xlu1 %v7202_v46  ;;  %5640 = vmatpush3.bf16.xpose.msra.mxu1 %v5637_v6  ;;  %v7395_v46 = vsub.s32 %v3699_v50, %v7340_v30 }
 0x310   :  { %v5911_v4 = vpop.eup %5910  ;;  %v3682_v44 = vrot.slane %v5909_v47, %v7370_v60  ;;  %v2565_v28 = vpop.xlane.xlu1 %2564  ;;  %2740 = vadd.xlane.f32.xlu0 %v7205_v32  ;;  %v3677_v57 = vsel %vm3676_vm2, %v3675_v0, %v3670_v42  ;;  %v7401_v42 = vsub.s32 %v3706_v20, %v7340_v30  ;;  %v7404_v50 = vsub.s32 %v3713_v31, %v7340_v30 }
 0x311   :  { %v3689_v25 = vrot.slane %v5911_v4, %v7373_v33  ;;  %5920 = vrcp.f32 %v2565_v28  ;;  %v2567_v6 = vpop.xlane.xlu0 %2566  ;;  %v3720_v4 = vadd.s32 4294967224, %v7330_v55 }
 0x312   :  { %v3684_v47 = vsel %vm3683_vm3, %v3682_v44, %v3677_v57  ;;  %5922 = vrcp.f32 %v2567_v6  ;;  %5316 = vmatmul.mubr.f32.vlgmr.msra.gmra.mrb[70].mxu0 %v102_v23 }
 0x313   :  { %v5913_v12 = vpop.eup %5912  ;;  %2770 = vadd.xlane.f32.xlu1 %v7212_v40  ;;  %v3691_v23 = vsel %vm3690_vm4, %v3689_v25, %v3684_v47  ;;  %v3727_v40 = vadd.s32 4294967216, %v7330_v55  ;;  %v7415_v25 = vsub.s32 %v3720_v4, %v7340_v30  ;;  %v3734_v47 = vadd.s32 4294967208, %v7330_v55 }
 0x314   :  { %v5915_v32 = vpop.eup %5914  ;;  %v3696_v0 = vrot.slane %v5913_v12, %v7387_v35  ;;  %v2569_v44 = vpop.xlane.xlu1 %2568  ;;  %2772 = vadd.xlane.f32.xlu0 %v7215_v63 }
 0x315   :  { %v3703_v28 = vrot.slane %v5915_v32, %v7395_v46  ;;  %5924 = vrcp.f32 %v2569_v44  ;;  %v2571_v57 = vpop.xlane.xlu0 %2570  ;;  %v3741_v32 = vadd.s32 4294967200, %v7330_v55  ;;  %v7423_v44 = vsub.s32 %v3727_v40, %v7340_v30 }
 0x316   :  { %v3698_v6 = vsel %vm3697_vm5, %v3696_v0, %v3691_v23  ;;  %5926 = vrcp.f32 %v2571_v57  ;;  %5351 = vmatmul.mubr.f32.vlgmr.msra.gmra.mrb[70].mxu1 %v104_v38 }
 0x317   :  { %v5917_v20 = vpop.eup %5916  ;;  %2710 = vadd.xlane.f32.xlu1 %v7072_v14  ;;  %v3705_v0 = vsel %vm3704_vm6, %v3703_v28, %v3698_v6  ;;  %v7429_v28 = vsub.s32 %v3734_v47, %v7340_v30  ;;  %v7433_v40 = vsub.s32 %v3741_v32, %v7340_v30 }
 0x318   :  { %v5919_v31 = vpop.eup %5918  ;;  %v3710_v63 = vrot.slane %v5917_v20, %v7401_v42  ;;  %v2573_v12 = vpop.xlane.xlu1 %2572  ;;  %2742 = vadd.xlane.f32.xlu0 %v7222_v59  ;;  %v3748_v20 = vadd.s32 4294967192, %v7330_v55 }
 0x319   :  { %v3717_v38 = vrot.slane %v5919_v31, %v7404_v50  ;;  %5928 = vrcp.f32 %v2573_v12  ;;  %v2575_v14 = vpop.xlane.xlu0 %2574  ;;  %v3755_v12 = vadd.s32 4294967184, %v7330_v55 }
 0x31a   :  { %v3712_v23 = vsel %vm3711_vm7, %v3710_v63, %v3705_v0  ;;  %5930 = vrcp.f32 %v2575_v14 }
 0x31b   :  { %v5921_v4 = vpop.eup %5920  ;;  %2774 = vadd.xlane.f32.xlu1 %v7232_v18  ;;  %v3719_v18 = vsel %vm3718_vm8, %v3717_v38, %v3712_v23  ;;  %v3762_v38 = vadd.s32 4294967176, %v7330_v55 }
 0x31c   :  { %v5923_v59 = vpop.eup %5922  ;;  %v3724_v57 = vrot.slane %v5921_v4, %v7415_v25  ;;  %v2577_v6 = vpop.xlane.xlu1 %2576  ;;  %2712 = vadd.xlane.f32.xlu0 %v7075_v56  ;;  %v7444_v4 = vsub.s32 %v3748_v20, %v7340_v30 }
 0x31d   :  { %v3731_v31 = vrot.slane %v5923_v59, %v7423_v44  ;;  %5932 = vrcp.f32 %v2577_v6  ;;  %v2579_v63 = vpop.xlane.xlu0 %2578 }
 0x31e   :  { %v3726_v0 = vsel %vm3725_vm9, %v3724_v57, %v3719_v18  ;;  %5934 = vrcp.f32 %v2579_v63 }
 0x31f   :  { %v5925_v47 = vpop.eup %5924  ;;  %2744 = vadd.xlane.f32.xlu1 %v7225_v62  ;;  %v3733_v59 = vsel %vm3732_vm10, %v3731_v31, %v3726_v0  ;;  %v7450_v62 = vsub.s32 %v3755_v12, %v7340_v30  ;;  %v7457_v31 = vsub.s32 %v3762_v38, %v7340_v30 }
 0x320   :  { %v5927_v56 = vpop.eup %5926  ;;  %v3738_v32 = vrot.slane %v5925_v47, %v7429_v28  ;;  %v2581_v14 = vpop.xlane.xlu1 %2580  ;;  %2776 = vadd.xlane.f32.xlu0 %v7235_v36 }
 0x321   :  { %5936 = vrcp.f32 %v2581_v14  ;;  %v2583_v23 = vpop.xlane.xlu0 %2582  ;;  %v3745_v57 = vrot.slane %v5927_v56, %v7433_v40 }
 0x322   :  { %5938 = vrcp.f32 %v2583_v23  ;;  %v3740_v6 = vsel %vm3739_vm11, %v3738_v32, %v3733_v59 }
 0x323   :  { %v5929_v63 = vpop.eup %5928  ;;  %2714 = vadd.xlane.f32.xlu1 %v7092_v39  ;;  %v3747_v0 = vsel %vm3746_vm12, %v3745_v57, %v3740_v6 }
 0x324   :  { %v5931_v36 = vpop.eup %5930  ;;  %v2585_v20 = vpop.xlane.xlu1 %2584  ;;  %2746 = vadd.xlane.f32.xlu0 %v7242_v49  ;;  %v3752_v55 = vrot.slane %v5929_v63, %v7444_v4 }
 0x325   :  { %5940 = vrcp.f32 %v2585_v20  ;;  %v2587_v18 = vpop.xlane.xlu0 %2586  ;;  %v5107_v12 = vpop.f32.mrb[64].mxu0  ;;  %v3759_v47 = vrot.slane %v5931_v36, %v7450_v62 }
 0x326   :  { %5942 = vrcp.f32 %v2587_v18  ;;  %v3754_v39 = vsel %vm3753_vm13, %v3752_v55, %v3747_v0  ;;  %v2868_v56 = vpop.f32.mrb[65].mxu0 }
 0x327   :  { %v5933_v32 = vpop.eup %5932  ;;  %2778 = vadd.xlane.f32.xlu1 %v7252_v29  ;;  %v3761_v38 = vsel %vm3760_vm14, %v3759_v47, %v3754_v39 }
 0x328   :  { %v2589_v49 = vpop.xlane.xlu1 %2588  ;;  %2716 = vadd.xlane.f32.xlu0 %v7095_v17  ;;  %v3766_v30 = vrot.slane %v5933_v32, %v7457_v31  ;;  %v5935_v14 = vpop.eup %5934 }
 0x329   :  { %5944 = vrcp.f32 %v2589_v49  ;;  %v2591_v23 = vpop.xlane.xlu0 %2590  ;;  %v7466_v59 = vpop.f32.mrb[64].mxu1  ;;  %v3772_v20 = vrot.slane %v5935_v14, %v7358_v48 }
 0x32a   :  { %v3768_v57 = vsel %vm3767_vm15, %v3766_v30, %v3761_v38  ;;  %5946 = vrcp.f32 %v2591_v23  ;;  %v7469_v6 = vpop.f32.mrb[65].mxu1 }
 0x32b   :  { %v5937_v63 = vpop.eup %5936  ;;  %v4385_v29 = vmul.f32 %v5107_v12, %v3768_v57  ;;  %v4384_v36 = vmul.f32 %v3768_v57, %v2868_v56  ;;  %2748 = vadd.xlane.f32.xlu1 %v7245_v37 }
 0x32c   :  { %v5939_v17 = vpop.eup %5938  ;;  %v3776_v55 = vrot.slane %v5937_v63, %v7361_v54  ;;  %v2593_v18 = vpop.xlane.xlu1 %2592  ;;  %2780 = vadd.xlane.f32.xlu0 %v7255_v34 }
 0x32d   :  { %v3781_v0 = vrot.slane %v5939_v17, %v7364_v26  ;;  %4401 = vst [vmem:[#allocation5 + $0x8] sm:$0xff] %v4385_v29  ;;  %4400 = vst [vmem:[#allocation5] sm:$0xff] %v4384_v36  ;;  %5948 = vrcp.f32 %v2593_v18  ;;  %v2595_v47 = vpop.xlane.xlu0 %2594 }
 0x32e   :  { %v3777_v39 = vsel %vm3669_vm1, %v3776_v55, %v3772_v20  ;;  %5950 = vrcp.f32 %v2595_v47 }
 0x32f   :  { %v5941_v12 = vpop.eup %5940  ;;  %2718 = vadd.xlane.f32.xlu1 %v7112_v24  ;;  %v3782_v34 = vsel %vm3676_vm2, %v3781_v0, %v3777_v39 }
 0x330   :  { %v5943_v37 = vpop.eup %5942  ;;  %v3786_v56 = vrot.slane %v5941_v12, %v7370_v60  ;;  %v2597_v32 = vpop.xlane.xlu1 %2596  ;;  %2750 = vadd.xlane.f32.xlu0 %v7262_v16 }
 0x331   :  { %v3791_v49 = vrot.slane %v5943_v37, %v7373_v33  ;;  %5952 = vrcp.f32 %v2597_v32  ;;  %v2599_v30 = vpop.xlane.xlu0 %2598 }
 0x332   :  { %v3787_v14 = vsel %vm3683_vm3, %v3786_v56, %v3782_v34  ;;  %5954 = vrcp.f32 %v2599_v30 }
 0x333   :  { %v5945_v38 = vpop.eup %5944  ;;  %2782 = vadd.xlane.f32.xlu1 %v7272_v5  ;;  %v3792_v16 = vsel %vm3690_vm4, %v3791_v49, %v3787_v14 }
 0x334   :  { %v5947_v23 = vpop.eup %5946  ;;  %v3796_v24 = vrot.slane %v5945_v38, %v7387_v35  ;;  %v2601_v57 = vpop.xlane.xlu1 %2600  ;;  %2720 = vadd.xlane.f32.xlu0 %v7115_v13 }
 0x335   :  { %v3801_v63 = vrot.slane %v5947_v23, %v7395_v46  ;;  %5956 = vrcp.f32 %v2601_v57  ;;  %v2603_v29 = vpop.xlane.xlu0 %2602 }
 0x336   :  { %v3797_v36 = vsel %vm3697_vm5, %v3796_v24, %v3792_v16  ;;  %5958 = vrcp.f32 %v2603_v29 }
 0x337   :  { %v5949_v17 = vpop.eup %5948  ;;  %2752 = vadd.xlane.f32.xlu1 %v7265_v3  ;;  %v3802_v13 = vsel %vm3704_vm6, %v3801_v63, %v3797_v36 }
 0x338   :  { %v5951_v20 = vpop.eup %5950  ;;  %v3806_v5 = vrot.slane %v5949_v17, %v7401_v42  ;;  %v2605_v55 = vpop.xlane.xlu1 %2604  ;;  %2784 = vadd.xlane.f32.xlu0 %v7275_v58 }
 0x339   :  { %v3811_v18 = vrot.slane %v5951_v20, %v7404_v50  ;;  %5960 = vrcp.f32 %v2605_v55  ;;  %v2607_v0 = vpop.xlane.xlu0 %2606 }
 0x33a   :  { %v3807_v47 = vsel %vm3711_vm7, %v3806_v5, %v3802_v13  ;;  %5962 = vrcp.f32 %v2607_v0 }
 0x33b   :  { %v5953_v39 = vpop.eup %5952  ;;  %2722 = vadd.xlane.f32.xlu1 %v7132_v27  ;;  %v3812_v32 = vsel %vm3718_vm8, %v3811_v18, %v3807_v47 }
 0x33c   :  { %v5955_v12 = vpop.eup %5954  ;;  %v3816_v3 = vrot.slane %v5953_v39, %v7415_v25  ;;  %v2609_v37 = vpop.xlane.xlu1 %2608  ;;  %2754 = vadd.xlane.f32.xlu0 %v7282_v2 }
 0x33d   :  { %v3821_v58 = vrot.slane %v5955_v12, %v7423_v44  ;;  %5964 = vrcp.f32 %v2609_v37  ;;  %v2611_v56 = vpop.xlane.xlu0 %2610 }
 0x33e   :  { %v3817_v34 = vsel %vm3725_vm9, %v3816_v3, %v3812_v32  ;;  %5966 = vrcp.f32 %v2611_v56 }
 0x33f   :  { %v5957_v49 = vpop.eup %5956  ;;  %2786 = vadd.xlane.f32.xlu1 %v7292_v41  ;;  %v3822_v38 = vsel %vm3732_vm10, %v3821_v58, %v3817_v34 }
 0x340   :  { %v5959_v30 = vpop.eup %5958  ;;  %v3826_v27 = vrot.slane %v5957_v49, %v7429_v28  ;;  %v2613_v14 = vpop.xlane.xlu1 %2612  ;;  %2724 = vadd.xlane.f32.xlu0 %v7135_v15 }
 0x341   :  { %5968 = vrcp.f32 %v2613_v14  ;;  %v2615_v2 = vpop.xlane.xlu0 %2614  ;;  %v3831_v23 = vrot.slane %v5959_v30, %v7433_v40 }
 0x342   :  { %5970 = vrcp.f32 %v2615_v2  ;;  %v3827_v24 = vsel %vm3739_vm11, %v3826_v27, %v3822_v38 }
 0x343   :  { %v5961_v57 = vpop.eup %5960  ;;  %2756 = vadd.xlane.f32.xlu1 %v7285_v9  ;;  %v3832_v29 = vsel %vm3746_vm12, %v3831_v23, %v3827_v24 }
 0x344   :  { %v5963_v16 = vpop.eup %5962  ;;  %v2617_v41 = vpop.xlane.xlu1 %2616  ;;  %2788 = vadd.xlane.f32.xlu0 %v7295_v51  ;;  %v3836_v63 = vrot.slane %v5961_v57, %v7444_v4 }
 0x345   :  { %5972 = vrcp.f32 %v2617_v41  ;;  %v2619_v15 = vpop.xlane.xlu0 %2618  ;;  %v3841_v36 = vrot.slane %v5963_v16, %v7450_v62 }
 0x346   :  { %5974 = vrcp.f32 %v2619_v15  ;;  %v3837_v17 = vsel %vm3753_vm13, %v3836_v63, %v3832_v29 }
 0x347   :  { %v5965_v20 = vpop.eup %5964  ;;  %2726 = vadd.xlane.f32.xlu1 %v7152_v10  ;;  %v3842_v55 = vsel %vm3760_vm14, %v3841_v36, %v3837_v17 }
 0x348   :  { %v2621_v5 = vpop.xlane.xlu1 %2620  ;;  %2758 = vadd.xlane.f32.xlu0 %v7302_v1  ;;  %v3846_v9 = vrot.slane %v5965_v20, %v7457_v31  ;;  %v5967_v51 = vpop.eup %5966 }
 0x349   :  { %5976 = vrcp.f32 %v2621_v5  ;;  %v2623_v13 = vpop.xlane.xlu0 %2622  ;;  %v3851_v1 = vrot.slane %v5967_v51, %v7358_v48 }
 0x34a   :  { %v3847_v18 = vsel %vm3767_vm15, %v3846_v9, %v3842_v55  ;;  %5978 = vrcp.f32 %v2623_v13 }
 0x34b   :  { %v5969_v0 = vpop.eup %5968  ;;  %v4387_v47 = vmul.f32 %v7466_v59, %v3847_v18  ;;  %v4386_v39 = vmul.f32 %v3847_v18, %v7469_v6  ;;  %2790 = vadd.xlane.f32.xlu1 %v7312_v22 }
 0x34c   :  { %v5971_v10 = vpop.eup %5970  ;;  %v3855_v12 = vrot.slane %v5969_v0, %v7361_v54  ;;  %v2625_v3 = vpop.xlane.xlu1 %2624  ;;  %2728 = vadd.xlane.f32.xlu0 %v7155_v8  ;;  %v8109_v0 = vld [vmem:[#allocation12_spill] sm:$0xff] }
 0x34d   :  { %v3860_v37 = vrot.slane %v5971_v10, %v7364_v26  ;;  %4403 = vst [vmem:[#allocation5 + $0x18] sm:$0xff] %v4387_v47  ;;  %4402 = vst [vmem:[#allocation5 + $0x10] sm:$0xff] %v4386_v39  ;;  %5980 = vrcp.f32 %v2625_v3  ;;  %v2627_v58 = vpop.xlane.xlu0 %2626 }
 0x34e   :  { %v3856_v59 = vsel %vm3669_vm1, %v3855_v12, %v3851_v1  ;;  %5982 = vrcp.f32 %v2627_v58  ;;  %v8110_v12 = vld [vmem:[#allocation15_spill] sm:$0xff] }
 0x34f   :  { %v5973_v6 = vpop.eup %5972  ;;  %2760 = vadd.xlane.f32.xlu1 %v7305_v61  ;;  %v3861_v8 = vsel %vm3676_vm2, %v3860_v37, %v3856_v59  ;;  %v8111_v37 = vld [vmem:[#allocation16_spill] sm:$0xff] }
 0x350   :  { %v5975_v22 = vpop.eup %5974  ;;  %v3865_v56 = vrot.slane %v5973_v6, %v7370_v60  ;;  %v2629_v32 = vpop.xlane.xlu1 %2628  ;;  %2792 = vadd.xlane.f32.xlu0 %v7315_v11 }
 0x351   :  { %v3870_v34 = vrot.slane %v5975_v22, %v7373_v33  ;;  %5984 = vrcp.f32 %v2629_v32  ;;  %v2631_v49 = vpop.xlane.xlu0 %2630 }
 0x352   :  { %v3866_v30 = vsel %vm3683_vm3, %v3865_v56, %v3861_v8  ;;  %5986 = vrcp.f32 %v2631_v49  ;;  %v8112_v49 = vld [vmem:[#allocation19_spill] sm:$0xff] }
 0x353   :  { %v5977_v27 = vpop.eup %5976  ;;  %2730 = vadd.xlane.f32.xlu1 %v7172_v19  ;;  %v3871_v11 = vsel %vm3690_vm4, %v3870_v34, %v3866_v30 }
 0x354   :  { %v5979_v14 = vpop.eup %5978  ;;  %v3875_v61 = vrot.slane %v5977_v27, %v7387_v35  ;;  %v2633_v2 = vpop.xlane.xlu1 %2632  ;;  %2762 = vadd.xlane.f32.xlu0 %v7322_v53  ;;  %v8113_v27 = vld [vmem:[#allocation10_spill] sm:$0xff] }
 0x355   :  { %v3880_v38 = vrot.slane %v5979_v14, %v7395_v46  ;;  %5988 = vrcp.f32 %v2633_v2  ;;  %v2635_v23 = vpop.xlane.xlu0 %2634 }
 0x356   :  { %v3876_v24 = vsel %vm3697_vm5, %v3875_v61, %v3871_v11  ;;  %5990 = vrcp.f32 %v2635_v23 }
 0x357   :  { %v5981_v57 = vpop.eup %5980  ;;  %2794 = vadd.xlane.f32.xlu1 %v7332_v45  ;;  %v3881_v53 = vsel %vm3704_vm6, %v3880_v38, %v3876_v24 }
 0x358   :  { %v5983_v16 = vpop.eup %5982  ;;  %v3885_v19 = vrot.slane %v5981_v57, %v7401_v42  ;;  %v2637_v41 = vpop.xlane.xlu1 %2636  ;;  %2700 = vadd.xlane.f32.xlu0 %v7165_v52 }
 0x359   :  { %v3890_v63 = vrot.slane %v5983_v16, %v7404_v50  ;;  %5992 = vrcp.f32 %v2637_v41  ;;  %v2639_v15 = vpop.xlane.xlu0 %2638  ;;  %v8114_v41 = vld [vmem:[#allocation13_spill] sm:$0xff] }
 0x35a   :  { %v3886_v29 = vsel %vm3711_vm7, %v3885_v19, %v3881_v53  ;;  %5994 = vrcp.f32 %v2639_v15 }
 0x35b   :  { %v5985_v36 = vpop.eup %5984  ;;  %2732 = vadd.xlane.f32.xlu1 %v7175_v21  ;;  %v3891_v52 = vsel %vm3718_vm8, %v3890_v63, %v3886_v29 }
 0x35c   :  { %v5987_v17 = vpop.eup %5986  ;;  %v3895_v45 = vrot.slane %v5985_v36, %v7415_v25  ;;  %v2641_v20 = vpop.xlane.xlu1 %2640  ;;  %2764 = vadd.xlane.f32.xlu0 %v7324_v7  ;;  %v8115_v36 = vld [vmem:[#allocation14_spill] sm:$0xff] }
 0x35d   :  { %v3900_v5 = vrot.slane %v5987_v17, %v7423_v44  ;;  %5996 = vrcp.f32 %v2641_v20  ;;  %v2643_v9 = vpop.xlane.xlu0 %2642 }
 0x35e   :  { %v3896_v51 = vsel %vm3725_vm9, %v3895_v45, %v3891_v52  ;;  %5998 = vrcp.f32 %v2643_v9 }
 0x35f   :  { %v5989_v55 = vpop.eup %5988  ;;  %2796 = vadd.xlane.f32.xlu1 %v7334_v43  ;;  %v3901_v39 = vsel %vm3732_vm10, %v3900_v5, %v3896_v51  ;;  %v8116_v5 = vld [vmem:[#allocation17_spill] sm:$0xff] }
 0x360   :  { %v5991_v13 = vpop.eup %5990  ;;  %v3905_v21 = vrot.slane %v5989_v55, %v7429_v28  ;;  %v2645_v18 = vpop.xlane.xlu1 %2644  ;;  %2702 = vadd.xlane.f32.xlu0 %v8109_v0 }
 0x361   :  { %v3910_v7 = vrot.slane %v5991_v13, %v7433_v40  ;;  %6000 = vrcp.f32 %v2645_v18  ;;  %v2647_v47 = vpop.xlane.xlu0 %2646 }
 0x362   :  { %6002 = vrcp.f32 %v2647_v47  ;;  %v3906_v10 = vsel %vm3739_vm11, %v3905_v21, %v3901_v39 }
 0x363   :  { %v5993_v1 = vpop.eup %5992  ;;  %2734 = vadd.xlane.f32.xlu1 %v8110_v12  ;;  %v3911_v22 = vsel %vm3746_vm12, %v3910_v7, %v3906_v10 }
 0x364   :  { %v5995_v3 = vpop.eup %5994  ;;  %v2649_v43 = vpop.xlane.xlu1 %2648  ;;  %2766 = vadd.xlane.f32.xlu0 %v8111_v37  ;;  %v3915_v58 = vrot.slane %v5993_v1, %v7444_v4 }
 0x365   :  { %6004 = vrcp.f32 %v2649_v43  ;;  %v2651_v59 = vpop.xlane.xlu0 %2650  ;;  %v5177_v6 = vpop.f32.mrb[66].mxu0  ;;  %v3920_v56 = vrot.slane %v5995_v3, %v7450_v62 }
 0x366   :  { %6006 = vrcp.f32 %v2651_v59  ;;  %v3916_v32 = vsel %vm3753_vm13, %v3915_v58, %v3911_v22  ;;  %v3018_v8 = vpop.f32.mrb[67].mxu0 }
 0x367   :  { %v5997_v34 = vpop.eup %5996  ;;  %2798 = vadd.xlane.f32.xlu1 %v8112_v49  ;;  %v3921_v2 = vsel %vm3760_vm14, %v3920_v56, %v3916_v32 }
 0x368   :  { %v2653_v30 = vpop.xlane.xlu1 %2652  ;;  %2704 = vadd.xlane.f32.xlu0 %v8113_v27  ;;  %v3925_v14 = vrot.slane %v5997_v34, %v7457_v31  ;;  %v5999_v61 = vpop.eup %5998 }
 0x369   :  { %6008 = vrcp.f32 %v2653_v30  ;;  %v2655_v11 = vpop.xlane.xlu0 %2654  ;;  %v7566_v38 = vpop.f32.mrb[66].mxu1  ;;  %v3930_v63 = vrot.slane %v5999_v61, %v7358_v48 }
 0x36a   :  { %v3926_v23 = vsel %vm3767_vm15, %v3925_v14, %v3921_v2  ;;  %6010 = vrcp.f32 %v2655_v11  ;;  %v7569_v24 = vpop.f32.mrb[67].mxu1 }
 0x36b   :  { %v6001_v57 = vpop.eup %6000  ;;  %v4389_v16 = vmul.f32 %v5177_v6, %v3926_v23  ;;  %v4388_v19 = vmul.f32 %v3926_v23, %v3018_v8  ;;  %2736 = vadd.xlane.f32.xlu1 %v8114_v41 }
 0x36c   :  { %v6003_v53 = vpop.eup %6002  ;;  %v3934_v15 = vrot.slane %v6001_v57, %v7361_v54  ;;  %v2657_v29 = vpop.xlane.xlu1 %2656  ;;  %2768 = vadd.xlane.f32.xlu0 %v8115_v36 }
 0x36d   :  { %v3939_v17 = vrot.slane %v6003_v53, %v7364_v26  ;;  %4405 = vst [vmem:[#allocation5 + $0x28] sm:$0xff] %v4389_v16  ;;  %4404 = vst [vmem:[#allocation5 + $0x20] sm:$0xff] %v4388_v19  ;;  %6012 = vrcp.f32 %v2657_v29  ;;  %v2659_v45 = vpop.xlane.xlu0 %2658 }
 0x36e   :  { %v3935_v20 = vsel %vm3669_vm1, %v3934_v15, %v3930_v63  ;;  %6014 = vrcp.f32 %v2659_v45 }
 0x36f   :  { %v6005_v52 = vpop.eup %6004  ;;  %2800 = vadd.xlane.f32.xlu1 %v8116_v5  ;;  %v3940_v13 = vsel %vm3676_vm2, %v3939_v17, %v3935_v20 }
 0x370   :  { %v6007_v9 = vpop.eup %6006  ;;  %v3944_v51 = vrot.slane %v6005_v52, %v7370_v60  ;;  %v2661_v55 = vpop.xlane.xlu1 %2660 }
 0x371   :  { %v3949_v21 = vrot.slane %v6007_v9, %v7373_v33  ;;  %6016 = vrcp.f32 %v2661_v55  ;;  %v2663_v18 = vpop.xlane.xlu0 %2662 }
 0x372   :  { %v3945_v0 = vsel %vm3683_vm3, %v3944_v51, %v3940_v13  ;;  %6018 = vrcp.f32 %v2663_v18 }
 0x373   :  { %v6009_v7 = vpop.eup %6008  ;;  %v3950_v1 = vsel %vm3690_vm4, %v3949_v21, %v3945_v0 }
 0x374   :  { %v6011_v47 = vpop.eup %6010  ;;  %v3954_v39 = vrot.slane %v6009_v7, %v7387_v35  ;;  %v2665_v10 = vpop.xlane.xlu1 %2664 }
 0x375   :  { %v3959_v12 = vrot.slane %v6011_v47, %v7395_v46  ;;  %6020 = vrcp.f32 %v2665_v10  ;;  %v2667_v3 = vpop.xlane.xlu0 %2666 }
 0x376   :  { %v3955_v43 = vsel %vm3697_vm5, %v3954_v39, %v3950_v1  ;;  %6022 = vrcp.f32 %v2667_v3 }
 0x377   :  { %v6013_v37 = vpop.eup %6012  ;;  %v3960_v22 = vsel %vm3704_vm6, %v3959_v12, %v3955_v43 }
 0x378   :  { %v6015_v58 = vpop.eup %6014  ;;  %v3964_v59 = vrot.slane %v6013_v37, %v7401_v42  ;;  %v2669_v6 = vpop.xlane.xlu1 %2668 }
 0x379   :  { %v3969_v56 = vrot.slane %v6015_v58, %v7404_v50  ;;  %6024 = vrcp.f32 %v2669_v6  ;;  %v2671_v32 = vpop.xlane.xlu0 %2670 }
 0x37a   :  { %v3965_v8 = vsel %vm3711_vm7, %v3964_v59, %v3960_v22  ;;  %6026 = vrcp.f32 %v2671_v32 }
 0x37b   :  { %v6017_v34 = vpop.eup %6016  ;;  %v3970_v14 = vsel %vm3718_vm8, %v3969_v56, %v3965_v8 }
 0x37c   :  { %v6019_v49 = vpop.eup %6018  ;;  %v3974_v30 = vrot.slane %v6017_v34, %v7415_v25  ;;  %v2673_v27 = vpop.xlane.xlu1 %2672 }
 0x37d   :  { %v3979_v61 = vrot.slane %v6019_v49, %v7423_v44  ;;  %6028 = vrcp.f32 %v2673_v27  ;;  %v2675_v2 = vpop.xlane.xlu0 %2674 }
 0x37e   :  { %v3975_v11 = vsel %vm3725_vm9, %v3974_v30, %v3970_v14  ;;  %6030 = vrcp.f32 %v2675_v2 }
 0x37f   :  { %v6021_v23 = vpop.eup %6020  ;;  %v3980_v63 = vsel %vm3732_vm10, %v3979_v61, %v3975_v11 }
 0x380   :  { %v6023_v57 = vpop.eup %6022  ;;  %v3984_v16 = vrot.slane %v6021_v23, %v7429_v28  ;;  %v2677_v19 = vpop.xlane.xlu1 %2676 }
 0x381   :  { %v3989_v41 = vrot.slane %v6023_v57, %v7433_v40  ;;  %6032 = vrcp.f32 %v2677_v19  ;;  %v2679_v53 = vpop.xlane.xlu0 %2678 }
 0x382   :  { %6034 = vrcp.f32 %v2679_v53  ;;  %v3985_v15 = vsel %vm3739_vm11, %v3984_v16, %v3980_v63 }
 0x383   :  { %v6025_v29 = vpop.eup %6024  ;;  %v3990_v52 = vsel %vm3746_vm12, %v3989_v41, %v3985_v15 }
 0x384   :  { %v6027_v36 = vpop.eup %6026  ;;  %v2681_v17 = vpop.xlane.xlu1 %2680  ;;  %v3994_v45 = vrot.slane %v6025_v29, %v7444_v4 }
 0x385   :  { %6036 = vrcp.f32 %v2681_v17  ;;  %v2683_v20 = vpop.xlane.xlu0 %2682  ;;  %v3999_v5 = vrot.slane %v6027_v36, %v7450_v62 }
 0x386   :  { %6038 = vrcp.f32 %v2683_v20  ;;  %v3995_v9 = vsel %vm3753_vm13, %v3994_v45, %v3990_v52 }
 0x387   :  { %v6029_v51 = vpop.eup %6028  ;;  %v4000_v18 = vsel %vm3760_vm14, %v3999_v5, %v3995_v9 }
 0x388   :  { %v2685_v55 = vpop.xlane.xlu1 %2684  ;;  %v4004_v13 = vrot.slane %v6029_v51, %v7457_v31  ;;  %v6031_v21 = vpop.eup %6030 }
 0x389   :  { %6040 = vrcp.f32 %v2685_v55  ;;  %v2687_v0 = vpop.xlane.xlu0 %2686  ;;  %v4009_v12 = vrot.slane %v6031_v21, %v7358_v48 }
 0x38a   :  { %v4005_v7 = vsel %vm3767_vm15, %v4004_v13, %v4000_v18  ;;  %6042 = vrcp.f32 %v2687_v0 }
 0x38b   :  { %v6033_v47 = vpop.eup %6032  ;;  %v4391_v39 = vmul.f32 %v7566_v38, %v4005_v7  ;;  %v4390_v10 = vmul.f32 %v4005_v7, %v7569_v24 }
 0x38c   :  { %v6035_v1 = vpop.eup %6034  ;;  %v4013_v3 = vrot.slane %v6033_v47, %v7361_v54  ;;  %v2689_v43 = vpop.xlane.xlu1 %2688 }
 0x38d   :  { %v4018_v37 = vrot.slane %v6035_v1, %v7364_v26  ;;  %4407 = vst [vmem:[#allocation5 + $0x38] sm:$0xff] %v4391_v39  ;;  %4406 = vst [vmem:[#allocation5 + $0x30] sm:$0xff] %v4390_v10  ;;  %6044 = vrcp.f32 %v2689_v43  ;;  %v2691_v58 = vpop.xlane.xlu0 %2690 }
 0x38e   :  { %v4014_v59 = vsel %vm3669_vm1, %v4013_v3, %v4009_v12  ;;  %6046 = vrcp.f32 %v2691_v58 }
 0x38f   :  { %v6037_v6 = vpop.eup %6036  ;;  %v4019_v38 = vsel %vm3676_vm2, %v4018_v37, %v4014_v59 }
 0x390   :  { %v6039_v22 = vpop.eup %6038  ;;  %v4023_v24 = vrot.slane %v6037_v6, %v7370_v60  ;;  %v2693_v56 = vpop.xlane.xlu1 %2692 }
 0x391   :  { %v4028_v32 = vrot.slane %v6039_v22, %v7373_v33  ;;  %6048 = vrcp.f32 %v2693_v56  ;;  %v2695_v8 = vpop.xlane.xlu0 %2694 }
 0x392   :  { %v4024_v34 = vsel %vm3683_vm3, %v4023_v24, %v4019_v38  ;;  %6050 = vrcp.f32 %v2695_v8 }
 0x393   :  { %v6041_v49 = vpop.eup %6040  ;;  %v4029_v30 = vsel %vm3690_vm4, %v4028_v32, %v4024_v34 }
 0x394   :  { %v6043_v27 = vpop.eup %6042  ;;  %v4033_v14 = vrot.slane %v6041_v49, %v7387_v35  ;;  %v2697_v61 = vpop.xlane.xlu1 %2696 }
 0x395   :  { %v4038_v2 = vrot.slane %v6043_v27, %v7395_v46  ;;  %6052 = vrcp.f32 %v2697_v61  ;;  %v2699_v11 = vpop.xlane.xlu0 %2698 }
 0x396   :  { %v4034_v23 = vsel %vm3697_vm5, %v4033_v14, %v4029_v30  ;;  %6054 = vrcp.f32 %v2699_v11 }
 0x397   :  { %v6045_v57 = vpop.eup %6044  ;;  %v4039_v16 = vsel %vm3704_vm6, %v4038_v2, %v4034_v23 }
 0x398   :  { %v6047_v19 = vpop.eup %6046  ;;  %v4043_v41 = vrot.slane %v6045_v57, %v7401_v42  ;;  %v2707_v53 = vpop.xlane.xlu1 %2706 }
 0x399   :  { %v4048_v63 = vrot.slane %v6047_v19, %v7404_v50  ;;  %6056 = vrcp.f32 %v2707_v53  ;;  %v2709_v15 = vpop.xlane.xlu0 %2708 }
 0x39a   :  { %v4044_v29 = vsel %vm3711_vm7, %v4043_v41, %v4039_v16  ;;  %6058 = vrcp.f32 %v2709_v15 }
 0x39b   :  { %v6049_v36 = vpop.eup %6048  ;;  %v4049_v17 = vsel %vm3718_vm8, %v4048_v63, %v4044_v29 }
 0x39c   :  { %v6051_v45 = vpop.eup %6050  ;;  %v4053_v20 = vrot.slane %v6049_v36, %v7415_v25  ;;  %v2739_v52 = vpop.xlane.xlu1 %2738 }
 0x39d   :  { %v4058_v5 = vrot.slane %v6051_v45, %v7423_v44  ;;  %6060 = vrcp.f32 %v2739_v52  ;;  %v2741_v9 = vpop.xlane.xlu0 %2740 }
 0x39e   :  { %v4054_v51 = vsel %vm3725_vm9, %v4053_v20, %v4049_v17  ;;  %6062 = vrcp.f32 %v2741_v9 }
 0x39f   :  { %v6053_v55 = vpop.eup %6052  ;;  %v4059_v13 = vsel %vm3732_vm10, %v4058_v5, %v4054_v51 }
 0x3a0   :  { %v6055_v21 = vpop.eup %6054  ;;  %v4063_v18 = vrot.slane %v6053_v55, %v7429_v28  ;;  %v2771_v0 = vpop.xlane.xlu1 %2770 }
 0x3a1   :  { %v4068_v7 = vrot.slane %v6055_v21, %v7433_v40  ;;  %6064 = vrcp.f32 %v2771_v0  ;;  %v2773_v47 = vpop.xlane.xlu0 %2772 }
 0x3a2   :  { %v4064_v39 = vsel %vm3739_vm11, %v4063_v18, %v4059_v13  ;;  %6066 = vrcp.f32 %v2773_v47 }
 0x3a3   :  { %v6057_v10 = vpop.eup %6056  ;;  %v7632_v1 = vsel %vm3746_vm12, %v4068_v7, %v4064_v39 }
 0x3a4   :  { %v6059_v12 = vpop.eup %6058  ;;  %v4088_v3 = vrot.slane %v6057_v10, %v7358_v48  ;;  %v2711_v43 = vpop.xlane.xlu1 %2710 }
 0x3a5   :  { %v4092_v37 = vrot.slane %v6059_v12, %v7361_v54  ;;  %6068 = vrcp.f32 %v2711_v43  ;;  %v2743_v58 = vpop.xlane.xlu0 %2742  ;;  %v7636_v59 = vpop.f32.mrb[68].mxu0 }
 0x3a6   :  { %6070 = vrcp.f32 %v2743_v58  ;;  %v7638_v6 = vpop.f32.mrb[69].mxu0 }
 0x3a7   :  { %v6061_v38 = vpop.eup %6060  ;;  %v4093_v22 = vsel %vm3669_vm1, %v4092_v37, %v4088_v3 }
 0x3a8   :  { %v6063_v24 = vpop.eup %6062  ;;  %v4167_v56 = vrot.slane %v6061_v38, %v7358_v48  ;;  %v2775_v32 = vpop.xlane.xlu1 %2774 }
 0x3a9   :  { %v4171_v8 = vrot.slane %v6063_v24, %v7361_v54  ;;  %6072 = vrcp.f32 %v2775_v32  ;;  %v2713_v34 = vpop.xlane.xlu0 %2712  ;;  %v7643_v49 = vpop.f32.mrb[68].mxu1 }
 0x3aa   :  { %6074 = vrcp.f32 %v2713_v34  ;;  %v7645_v30 = vpop.f32.mrb[69].mxu1 }
 0x3ab   :  { %v6065_v27 = vpop.eup %6064  ;;  %v4172_v14 = vsel %vm3669_vm1, %v4171_v8, %v4167_v56 }
 0x3ac   :  { %v6067_v61 = vpop.eup %6066  ;;  %v4246_v2 = vrot.slane %v6065_v27, %v7358_v48  ;;  %v2745_v11 = vpop.xlane.xlu1 %2744 }
 0x3ad   :  { %v4250_v23 = vrot.slane %v6067_v61, %v7361_v54  ;;  %6076 = vrcp.f32 %v2745_v11  ;;  %v2777_v57 = vpop.xlane.xlu0 %2776 }
 0x3ae   :  { %6078 = vrcp.f32 %v2777_v57 }
 0x3af   :  { %v6069_v16 = vpop.eup %6068  ;;  %v4251_v19 = vsel %vm3669_vm1, %v4250_v23, %v4246_v2 }
 0x3b0   :  { %v6071_v41 = vpop.eup %6070  ;;  %v4097_v53 = vrot.slane %v6069_v16, %v7364_v26  ;;  %v2715_v63 = vpop.xlane.xlu1 %2714 }
 0x3b1   :  { %v4176_v15 = vrot.slane %v6071_v41, %v7364_v26  ;;  %v2747_v29 = vpop.xlane.xlu0 %2746  ;;  %6080 = vrcp.f32 %v2715_v63 }
 0x3b2   :  { %v4098_v36 = vsel %vm3676_vm2, %v4097_v53, %v4093_v22  ;;  %6082 = vrcp.f32 %v2747_v29 }
 0x3b3   :  { %v6073_v17 = vpop.eup %6072  ;;  %v4177_v48 = vsel %vm3676_vm2, %v4176_v15, %v4172_v14 }
 0x3b4   :  { %v6075_v45 = vpop.eup %6074  ;;  %v4255_v54 = vrot.slane %v6073_v17, %v7364_v26  ;;  %v2779_v20 = vpop.xlane.xlu1 %2778 }
 0x3b5   :  { %v4102_v52 = vrot.slane %v6075_v45, %v7370_v60  ;;  %v2717_v5 = vpop.xlane.xlu0 %2716  ;;  %6084 = vrcp.f32 %v2779_v20 }
 0x3b6   :  { %v4256_v9 = vsel %vm3676_vm2, %v4255_v54, %v4251_v19  ;;  %6086 = vrcp.f32 %v2717_v5 }
 0x3b7   :  { %v6077_v51 = vpop.eup %6076  ;;  %v7659_v55 = vsel %vm3683_vm3, %v4102_v52, %v4098_v36 }
 0x3b8   :  { %v6079_v13 = vpop.eup %6078  ;;  %v4181_v21 = vrot.slane %v6077_v51, %v7370_v60  ;;  %v2749_v18 = vpop.xlane.xlu1 %2748 }
 0x3b9   :  { %v4260_v0 = vrot.slane %v6079_v13, %v7370_v60  ;;  %v2781_v7 = vpop.xlane.xlu0 %2780  ;;  %6088 = vrcp.f32 %v2749_v18 }
 0x3ba   :  { %v7664_v47 = vsel %vm3683_vm3, %v4181_v21, %v4177_v48  ;;  %6090 = vrcp.f32 %v2781_v7 }
 0x3bb   :  { %v7667_v26 = vsel %vm3683_vm3, %v4260_v0, %v4256_v9  ;;  %v6081_v2 = vpop.eup %6080 }
 0x3bc   :  { %v2719_v39 = vpop.xlane.xlu1 %2718  ;;  %v7669_v11 = vpop.eup %6082 }
 0x3bd   :  { %v2751_v10 = vpop.xlane.xlu0 %2750  ;;  %6092 = vrcp.f32 %v2719_v39 }
 0x3be   :  { %6094 = vrcp.f32 %v2751_v10 }
 0x3bf   :  { %v7671_v57 = vpop.eup %6084 }
 0x3c0   :  { %v2783_v12 = vpop.xlane.xlu1 %2782  ;;  %v7673_v19 = vpop.eup %6086 }
 0x3c1   :  { %v2721_v3 = vpop.xlane.xlu0 %2720  ;;  %6096 = vrcp.f32 %v2783_v12 }
 0x3c2   :  { %6098 = vrcp.f32 %v2721_v3  ;;  %v4107_v3 = vrot.slane %v6081_v2, %v7373_v33 }
 0x3c3   :  { %v7675_v41 = vpop.eup %6088 }
 0x3c4   :  { %v2753_v43 = vpop.xlane.xlu1 %2752  ;;  %v7677_v53 = vpop.eup %6090 }
 0x3c5   :  { %v2785_v37 = vpop.xlane.xlu0 %2784  ;;  %6100 = vrcp.f32 %v2753_v43 }
 0x3c6   :  { %6102 = vrcp.f32 %v2785_v37  ;;  %v4186_v37 = vrot.slane %v7669_v11, %v7373_v33 }
 0x3c7   :  { %v7679_v15 = vpop.eup %6092 }
 0x3c8   :  { %v2723_v58 = vpop.xlane.xlu1 %2722  ;;  %v7683_v17 = vpop.eup %6094 }
 0x3c9   :  { %v2755_v38 = vpop.xlane.xlu0 %2754  ;;  %6104 = vrcp.f32 %v2723_v58  ;;  %v4196_v2 = vrot.slane %v7683_v17, %v7395_v46 }
 0x3ca   :  { %6106 = vrcp.f32 %v2755_v38 }
 0x3cb   :  { %v7687_v45 = vpop.eup %6096 }
 0x3cc   :  { %v2787_v22 = vpop.xlane.xlu1 %2786  ;;  %v7689_v54 = vpop.eup %6098 }
 0x3cd   :  { %v2725_v24 = vpop.xlane.xlu0 %2724  ;;  %6108 = vrcp.f32 %v2787_v22  ;;  %v4265_v22 = vrot.slane %v7671_v57, %v7373_v33  ;;  %v4275_v57 = vrot.slane %v7687_v45, %v7395_v46 }
 0x3ce   :  { %6110 = vrcp.f32 %v2725_v24  ;;  %v4112_v24 = vrot.slane %v7673_v19, %v7387_v35 }
 0x3cf   :  { %v7691_v52 = vpop.eup %6100 }
 0x3d0   :  { %v2757_v56 = vpop.xlane.xlu1 %2756  ;;  %v7695_v51 = vpop.eup %6102 }
 0x3d1   :  { %v2789_v32 = vpop.xlane.xlu0 %2788  ;;  %6112 = vrcp.f32 %v2757_v56 }
 0x3d2   :  { %6114 = vrcp.f32 %v2789_v32 }
 0x3d3   :  { %v7699_v21 = vpop.eup %6104 }
 0x3d4   :  { %v2727_v60 = vpop.xlane.xlu1 %2726  ;;  %v7701_v18 = vpop.eup %6106 }
 0x3d5   :  { %v2759_v8 = vpop.xlane.xlu0 %2758  ;;  %6116 = vrcp.f32 %v2727_v60  ;;  %v4191_v60 = vrot.slane %v7675_v41, %v7387_v35  ;;  %v4122_v41 = vrot.slane %v7689_v54, %v7401_v42  ;;  %v4206_v54 = vrot.slane %v7701_v18, %v7404_v50 }
 0x3d6   :  { %6118 = vrcp.f32 %v2759_v8 }
 0x3d7   :  { %v7703_v7 = vpop.eup %6108 }
 0x3d8   :  { %v2791_v34 = vpop.xlane.xlu1 %2790  ;;  %v7705_v10 = vpop.eup %6110 }
 0x3d9   :  { %v2729_v27 = vpop.xlane.xlu0 %2728  ;;  %6120 = vrcp.f32 %v2791_v34  ;;  %v4108_v34 = vsel %vm3690_vm4, %v4107_v3, %v7659_v55  ;;  %v4266_v55 = vsel %vm3690_vm4, %v4265_v22, %v7667_v26 }
 0x3da   :  { %6122 = vrcp.f32 %v2729_v27  ;;  %v4270_v27 = vrot.slane %v7677_v53, %v7387_v35  ;;  %v4113_v35 = vsel %vm3697_vm5, %v4112_v24, %v4108_v34  ;;  %v4201_v53 = vrot.slane %v7691_v52, %v7401_v42 }
 0x3db   :  { %v7707_v12 = vpop.eup %6112 }
 0x3dc   :  { %v2761_v14 = vpop.xlane.xlu1 %2760  ;;  %v7710_v43 = vpop.eup %6114  ;;  %v4271_v26 = vsel %vm3697_vm5, %v4270_v27, %v4266_v55  ;;  %v4211_v18 = vrot.slane %v7707_v12, %v7415_v25 }
 0x3dd   :  { %v2793_v61 = vpop.xlane.xlu0 %2792  ;;  %6124 = vrcp.f32 %v2761_v14  ;;  %v4187_v14 = vsel %vm3690_vm4, %v4186_v37, %v7664_v47 }
 0x3de   :  { %6126 = vrcp.f32 %v2793_v61  ;;  %v4117_v61 = vrot.slane %v7679_v15, %v7395_v46  ;;  %v4192_v19 = vsel %vm3697_vm5, %v4191_v60, %v4187_v14  ;;  %v4280_v15 = vrot.slane %v7695_v51, %v7401_v42 }
 0x3df   :  { %v7714_v38 = vpop.eup %6116  ;;  %v4127_v46 = vrot.slane %v7699_v21, %v7404_v50  ;;  %v4197_v45 = vsel %vm3704_vm6, %v4196_v2, %v4192_v19  ;;  %v4285_v42 = vrot.slane %v7703_v7, %v7404_v50  ;;  %v4132_v51 = vrot.slane %v7705_v10, %v7415_v25 }
 0x3e0   :  { %v2731_v23 = vpop.xlane.xlu1 %2730  ;;  %v7720_v32 = vpop.eup %6118  ;;  %v4118_v17 = vsel %vm3704_vm6, %v4117_v61, %v4113_v35  ;;  %v4202_v3 = vsel %vm3711_vm7, %v4201_v53, %v4197_v45  ;;  %v4290_v50 = vrot.slane %v7710_v43, %v7415_v25  ;;  %v4137_v7 = vrot.slane %v7714_v38, %v7423_v44 }
 0x3e1   :  { %v2763_v16 = vpop.xlane.xlu0 %2762  ;;  %6128 = vrcp.f32 %v2731_v23  ;;  %v4207_v24 = vsel %vm3718_vm8, %v4206_v54, %v4202_v3 }
 0x3e2   :  { %6130 = vrcp.f32 %v2763_v16 }
 0x3e3   :  { %v7724_v8 = vpop.eup %6120 }
 0x3e4   :  { %v2795_v63 = vpop.xlane.xlu1 %2794  ;;  %v7730_v33 = vpop.eup %6122  ;;  %v4295_v12 = vrot.slane %v7724_v8, %v7423_v44  ;;  %v4212_v8 = vsel %vm3725_vm9, %v4211_v18, %v4207_v24 }
 0x3e5   :  { %v2701_v29 = vpop.xlane.xlu0 %2700  ;;  %v7681_v36 = vpop.f32.mrb[70].mxu0  ;;  %6132 = vrcp.f32 %v2795_v63  ;;  %v4142_v60 = vrot.slane %v7730_v33, %v7429_v28 }
 0x3e6   :  { %v7685_v48 = vpop.f32.mrb[71].mxu0  ;;  %6134 = vrcp.f32 %v2701_v29 }
 0x3e7   :  { %v7738_v23 = vpop.eup %6124 }
 0x3e8   :  { %v2733_v20 = vpop.xlane.xlu1 %2732  ;;  %v7745_v16 = vpop.eup %6126  ;;  %v4221_v61 = vrot.slane %v7738_v23, %v7429_v28 }
 0x3e9   :  { %v2765_v5 = vpop.xlane.xlu0 %2764  ;;  %v7693_v9 = vpop.f32.mrb[70].mxu1  ;;  %v4300_v23 = vrot.slane %v7745_v16, %v7429_v28 }
 0x3ea   :  { %v7697_v13 = vpop.f32.mrb[71].mxu1 }
 0x3eb   :  { %v6129_v63 = vpop.eup %6128 }
 0x3ec   :  { %v2797_v0 = vpop.xlane.xlu1 %2796  ;;  %v7757_v29 = vpop.eup %6130 }
 0x3ed   :  { %v2703_v39 = vpop.xlane.xlu0 %2702 }
 0x3ee   :  { %6136 = vrcp.f32 %v2703_v39  ;;  %v4123_v39 = vsel %vm3711_vm7, %v4122_v41, %v4118_v17 }
 0x3ef   :  { %6138 = vrcp.f32 %v2733_v20  ;;  %v7763_v52 = vpop.eup %6132  ;;  %v4128_v22 = vsel %vm3718_vm8, %v4127_v46, %v4123_v39 }
 0x3f0   :  { %v2735_v58 = vpop.xlane.xlu1 %2734  ;;  %6140 = vrcp.f32 %v2765_v5  ;;  %v4276_v5 = vsel %vm3704_vm6, %v4275_v57, %v4271_v26  ;;  %v4133_v25 = vsel %vm3725_vm9, %v4132_v51, %v4128_v22 }
 0x3f1   :  { %v2767_v56 = vpop.xlane.xlu0 %2766  ;;  %6142 = vrcp.f32 %v2735_v58  ;;  %v4281_v58 = vsel %vm3711_vm7, %v4280_v15, %v4276_v5  ;;  %v4138_v2 = vsel %vm3732_vm10, %v4137_v7, %v4133_v25 }
 0x3f2   :  { %6144 = vrcp.f32 %v2767_v56  ;;  %v4216_v56 = vrot.slane %v7720_v32, %v7423_v44  ;;  %v4286_v14 = vsel %vm3718_vm8, %v4285_v42, %v4281_v58  ;;  %v4147_v32 = vrot.slane %v6129_v63, %v7433_v40 }
 0x3f3   :  { %v4291_v35 = vsel %vm3725_vm9, %v4290_v50, %v4286_v14 }
 0x3f4   :  { %v2799_v11 = vpop.xlane.xlu1 %2798  ;;  %v4217_v19 = vsel %vm3732_vm10, %v4216_v56, %v4212_v8  ;;  %v4296_v41 = vsel %vm3732_vm10, %v4295_v12, %v4291_v35 }
 0x3f5   :  { %v2705_v47 = vpop.xlane.xlu0 %2704  ;;  %v4222_v28 = vsel %vm3739_vm11, %v4221_v61, %v4217_v19 }
 0x3f6   :  { %6146 = vrcp.f32 %v2705_v47  ;;  %v4143_v47 = vsel %vm3739_vm11, %v4142_v60, %v4138_v2 }
 0x3f7   :  { %6148 = vrcp.f32 %v2797_v0  ;;  %v6135_v0 = vpop.eup %6134  ;;  %v4148_v17 = vsel %vm3746_vm12, %v4147_v32, %v4143_v47 }
 0x3f8   :  { %6150 = vrcp.f32 %v2799_v11  ;;  %v2737_v20 = vpop.xlane.xlu1 %2736  ;;  %v6137_v37 = vpop.eup %6136  ;;  %v4073_v43 = vrot.slane %v6135_v0, %v7444_v4  ;;  %v4226_v11 = vrot.slane %v7757_v29, %v7433_v40 }
 0x3f9   :  { %6152 = vrcp.f32 %v2737_v20  ;;  %v2769_v21 = vpop.xlane.xlu0 %2768  ;;  %v6139_v10 = vpop.eup %6138  ;;  %v4078_v44 = vrot.slane %v6137_v37, %v7450_v62  ;;  %v4305_v20 = vrot.slane %v7763_v52, %v7433_v40 }
 0x3fa   :  { %6154 = vrcp.f32 %v2769_v21  ;;  %v6141_v27 = vpop.eup %6140  ;;  %v4152_v55 = vrot.slane %v6139_v10, %v7444_v4  ;;  %v4074_v63 = vsel %vm3753_vm13, %v4073_v43, %v7632_v1  ;;  %v4227_v42 = vsel %vm3746_vm12, %v4226_v11, %v4222_v28 }
 0x3fb   :  { %v6143_v38 = vpop.eup %6142  ;;  %v4231_v46 = vrot.slane %v6141_v27, %v7444_v4  ;;  %v4079_v45 = vsel %vm3760_vm14, %v4078_v44, %v4074_v63 }
 0x3fc   :  { %v2801_v34 = vpop.xlane.xlu1 %2800  ;;  %v6145_v33 = vpop.eup %6144  ;;  %v4157_v26 = vrot.slane %v6143_v38, %v7450_v62  ;;  %v4153_v1 = vsel %vm3753_vm13, %v4152_v55, %v4148_v17 }
 0x3fd   :  { %6156 = vrcp.f32 %v2801_v34  ;;  %v4236_v16 = vrot.slane %v6145_v33, %v7450_v62  ;;  %v4232_v37 = vsel %vm3753_vm13, %v4231_v46, %v4227_v42 }
 0x3fe   :  { %v4158_v18 = vsel %vm3760_vm14, %v4157_v26, %v4153_v1 }
 0x400   :  { %v6147_v57 = vpop.eup %6146 }
 0x401   :  { %v6149_v53 = vpop.eup %6148  ;;  %v4083_v15 = vrot.slane %v6147_v57, %v7457_v31 }
 0x402   :  { %v6151_v29 = vpop.eup %6150  ;;  %v4310_v3 = vrot.slane %v6149_v53, %v7444_v4 }
 0x403   :  { %v6153_v54 = vpop.eup %6152  ;;  %v4084_v5 = vsel %vm3767_vm15, %v4083_v15, %v4079_v45  ;;  %v4315_v52 = vrot.slane %v6151_v29, %v7450_v62 }
 0x404   :  { %v6155_v51 = vpop.eup %6154  ;;  %v4392_v21 = vmul.f32 %v4084_v5, %v7638_v6  ;;  %v4393_v0 = vmul.f32 %v7636_v59, %v4084_v5  ;;  %v4162_v39 = vrot.slane %v6153_v54, %v7457_v31  ;;  %v4237_v6 = vsel %vm3760_vm14, %v4236_v16, %v4232_v37 }
 0x405   :  { %v4241_v40 = vrot.slane %v6155_v51, %v7457_v31  ;;  %v4301_v59 = vsel %vm3739_vm11, %v4300_v23, %v4296_v41 }
 0x406   :  { %4408 = vst [vmem:[#allocation5 + $0x40] sm:$0xff] %v4392_v21  ;;  %4409 = vst [vmem:[#allocation5 + $0x48] sm:$0xff] %v4393_v0  ;;  %v4163_v58 = vsel %vm3767_vm15, %v4162_v39, %v4158_v18  ;;  %v4306_v10 = vsel %vm3746_vm12, %v4305_v20, %v4301_v59 }
 0x407   :  { %v6157_v22 = vpop.eup %6156  ;;  %v4394_v50 = vmul.f32 %v4163_v58, %v7645_v30  ;;  %v4395_v4 = vmul.f32 %v7643_v49, %v4163_v58  ;;  %v4242_v7 = vsel %vm3767_vm15, %v4241_v40, %v4237_v6  ;;  %v4311_v56 = vsel %vm3753_vm13, %v4310_v3, %v4306_v10 }
 0x408   :  { %v4397_v24 = vmul.f32 %v7681_v36, %v4242_v7  ;;  %v4396_v62 = vmul.f32 %v4242_v7, %v7685_v48  ;;  %v4320_v12 = vrot.slane %v6157_v22, %v7457_v31  ;;  %v4316_v30 = vsel %vm3760_vm14, %v4315_v52, %v4311_v56 }
 0x409   :  { %4410 = vst [vmem:[#allocation5 + $0x50] sm:$0xff] %v4394_v50  ;;  %4411 = vst [vmem:[#allocation5 + $0x58] sm:$0xff] %v4395_v4 }
 0x40a   :  { %4413 = vst [vmem:[#allocation5 + $0x68] sm:$0xff] %v4397_v24  ;;  %4412 = vst [vmem:[#allocation5 + $0x60] sm:$0xff] %v4396_v62  ;;  %v4321_v49 = vsel %vm3767_vm15, %v4320_v12, %v4316_v30 }
 0x40b   :  { %v4399_v60 = vmul.f32 %v7693_v9, %v4321_v49  ;;  %v4398_v36 = vmul.f32 %v4321_v49, %v7697_v13 }
 0x40d   :  { %4415 = vst [vmem:[#allocation5 + $0x78] sm:$0xff] %v4399_v60  ;;  %4414 = vst [vmem:[#allocation5 + $0x70] sm:$0xff] %v4398_v36 }
 0x40e   :  { %6191 = shalt.err (!%p6188_p12)
}
 0x40f   :  { %s6192_s24 = scalar_lea.hbm %s7858_s1, 2048 }
 0x410   :  { %p6193_p13 = scmp.ne.s32.totalorder %s7858_s1, %s6192_s24  ;;  %p6196_p0 = scmp.lt.u32.totalorder %s6192_s24, %s7858_s1 }
 0x412   :  { %p6198_p1 = pnand %p6196_p0, %p6193_p13 }
 0x414   :  { %6201 = shalt.err (!%p6198_p1)
}
 0x415   :  { %4427 = dma.vmem_to_hbm [thread:$0]  %s4422_s20, 2048, %s7858_s1, [#allocation4], %s6207_s16, %s6207_s16, %s6208_s17  }
 0x416   :  { %6204 = dma.done.wait [#allocation4], 2048  }
 0x417   :  { %6205 = vsyncadd [#allocation4], 4294965248 }
 0x418   :  { %4431 = vsyncpa [#allocation3], 1 }
 0x419   :  { %4432 = vsyncpa [#allocation4], 1 }

</bundles_post_ra>
